<compile_context>
chip_gen: v7x
topology: tpu7x:2x2x1
jax: 0.10.0
libtpu: 0.0.40
codegen_flags: <defaults>
</compile_context>

<pallas_src>
import numpy as np

import jax
import jax.numpy as jnp
from jax import lax
from jax.experimental import pallas as pl
from jax.experimental.pallas import tpu as pltpu


# --------------------------------------------------------------------------
# Fused decoder kernel
# --------------------------------------------------------------------------

def make_decoder_kernel(n_batch, blocks_cfg, p_lin, eps=1e-5):
    """Build the fused decoder kernel (linear -> 4 conv-transpose/BN/act/dropout blocks)."""
    nblk = len(blocks_cfg)
    n = n_batch

    def kernel(*refs):
        # ---- unpack refs according to the static config ----
        z_ref, lw_ref, lb_ref = refs[0], refs[1], refs[2]
        idx = 3
        lin_mask_ref = None
        if p_lin > 0.0:
            lin_mask_ref = refs[idx]
            idx += 1
        blk_refs = []
        for bc in blocks_cfg:
            cnt_in = 6 if bc['p'] > 0.0 else 5
            blk_refs.append(refs[idx: idx + cnt_in])
            idx += cnt_in
        o_ref = refs[idx]

        # ---- Linear(latent -> Cin) + MCDropout (host-drawn pre-scaled keep mask) ----
        h = jnp.dot(z_ref[...], lw_ref[...],
                    preferred_element_type=jnp.float32) + lb_ref[...]
        if lin_mask_ref is not None:
            h = h * lin_mask_ref[...]

        # ---- Reshape (Cin,1,1) + UpsamplingBilinear2d of a 1x1 map == constant
        #      broadcast.  Build block-0's zero-padded, row-flattened slab ONCE:
        #      (N, H0+2, (W0+2)*Ci0), bf16. ----
        b0 = blocks_cfg[0]
        ci0, h0, w0 = b0['Ci'], b0['H'], b0['W']
        zc0 = jnp.zeros((n, ci0), jnp.float32)
        irow = jnp.concatenate([zc0] + [h] * w0 + [zc0], axis=1).astype(jnp.bfloat16)
        zrow = jnp.zeros_like(irow)
        slab = jnp.stack([zrow] + [irow] * h0 + [zrow], axis=1)

        # ---- ConvTranspose2d / BatchNorm2d / activation / MC-dropout blocks ----
        for bi, bc in enumerate(blocks_cfg):
            ci, co, hh, ww = bc['Ci'], bc['Co'], bc['H'], bc['W']
            p_drop, slope = bc['p'], bc['slope']
            kin = (ww + 2) * ci
            k2 = 2 * ww * co
            m = n * hh
            last = (bi == nblk - 1)
            r = blk_refs[bi]
            w_ref, gamma_ref, beta_ref, g_ref, gt_ref = r[:5]
            mask_ref = r[5] if p_drop > 0.0 else None

            # ConvTranspose2d(k=4, s=2, p=1): one batched banded matmul per output
            # row parity.  LHS = [padded rows a..a+H | rows a+1..a+1+H] K-concatenated
            # over all samples (M = N*H); RHS = host-stacked (2*kin, 2W*Co) weights.
            def lhs(a):
                left = slab[:, a:a + hh, :]
                right = slab[:, a + 1:a + 1 + hh, :]
                return jnp.concatenate([left, right], axis=2).reshape(m, 2 * kin)

            y0 = jnp.dot(lhs(0), w_ref[0], preferred_element_type=jnp.float32)
            y1 = jnp.dot(lhs(1), w_ref[1], preferred_element_type=jnp.float32)

            # BatchNorm2d (training mode): biased batch stats, one pass, all f32.
            row_sum = (jnp.sum(y0, axis=0, keepdims=True)
                       + jnp.sum(y1, axis=0, keepdims=True))            # (1, k2)
            sq_sum = (jnp.sum(y0 * y0, axis=0, keepdims=True)
                      + jnp.sum(y1 * y1, axis=0, keepdims=True))
            cnt = float(n * 2 * hh * 2 * ww)
            ch_sum = jnp.dot(row_sum, g_ref[...], preferred_element_type=jnp.float32)
            ch_sq = jnp.dot(sq_sum, g_ref[...], preferred_element_type=jnp.float32)
            mean = ch_sum / cnt
            var = jnp.maximum(ch_sq / cnt - mean * mean, 0.0)
            scale = gamma_ref[...] * lax.rsqrt(var + eps)                # (1, Co)
            shift = beta_ref[...] - mean * scale
            scale_f = jnp.dot(scale, gt_ref[...],
                              preferred_element_type=jnp.float32)        # (1, k2)
            shift_f = jnp.dot(shift, gt_ref[...],
                              preferred_element_type=jnp.float32)

            # normalize + activation, still batched over all N*H rows per parity
            y0 = y0 * scale_f + shift_f
            y1 = y1 * scale_f + shift_f
            if slope > 0.0:                                   # LeakyReLU(slope)
                y0 = jnp.where(y0 >= 0.0, y0, slope * y0)
                y1 = jnp.where(y1 >= 0.0, y1, slope * y1)
            else:                                             # ReLU
                y0 = jnp.maximum(y0, 0.0)
                y1 = jnp.maximum(y1, 0.0)

            # interleave parities in registers -> (N, 2H, 2W*Co)
            y = jnp.stack([y0.reshape(n, hh, k2), y1.reshape(n, hh, k2)],
                          axis=2).reshape(n, 2 * hh, k2)

            # MC dropout: single batched multiply with the pre-scaled keep mask
            if mask_ref is not None:
                y = y * mask_ref[...]

            if last:
                o_ref[...] = y                                # one dense store
            else:
                # Build the next block's zero-padded slab fully in registers
                # (border zeros included), single bf16 value -> no scratch clears.
                zc = jnp.zeros((n, 2 * hh, co), jnp.float32)
                rows = jnp.concatenate([zc, y, zc], axis=2)
                zr = jnp.zeros((n, 1, (2 * ww + 2) * co), jnp.float32)
                slab = jnp.concatenate([zr, rows, zr], axis=1).astype(jnp.bfloat16)

    return kernel


# --------------------------------------------------------------------------
# Host-side parameter construction
# --------------------------------------------------------------------------

def _banded_convt_weights(wt, w_in, ci, co):
    """wt: (Ci, Co, 4, 4) torch ConvTranspose2d weight (numpy) ->
       (4, (w_in+2)*Ci, 2*w_in*Co) banded matrices indexed by 2*a + e."""
    wp = w_in + 2
    k2 = 2 * w_in * co
    out = np.zeros((4, wp * ci, k2), np.float32)
    for a in range(2):
        for e in range(2):
            kh = 3 - a - 2 * e
            for q in range(w_in):
                for b in range(2):
                    for f in range(2):
                        j = q + b + f
                        kw = 3 - b - 2 * f
                        out[2 * a + e,
                            j * ci:(j + 1) * ci,
                            (2 * q + b) * co:(2 * q + b + 1) * co] = wt[:, :, kh, kw]
    return out


def init_decoder_params(key, in_channels, output_shape, latent_dim,
                        drop_out_rate, num_blocks):
    out_channels = output_shape[0]
    conv_spatial = output_shape[1] // (2 ** num_blocks)

    chans = []
    ci = in_channels
    for _ in range(num_blocks - 1):
        chans.append((ci, ci // 2, 0.2, float(drop_out_rate)))   # LeakyReLU blocks
        ci //= 2
    chans.append((ci, out_channels, 0.0, 0.0))                    # final ReLU block

    keys = jax.random.split(key, 2 + num_blocks)
    params = {
        'lin_w': (jax.random.normal(keys[0], (latent_dim, in_channels)) * 0.1
                  ).astype(jnp.float32),
        'lin_b': (jax.random.normal(keys[1], (1, in_channels)) * 0.1
                  ).astype(jnp.float32),
        'blocks': [],
    }
    blocks_cfg = []
    h = w = conv_spatial
    for i, (cin, cout, slope, p) in enumerate(chans):
        wt = np.asarray(jax.random.normal(keys[2 + i], (cin, cout, 4, 4),
                                          jnp.float32)) / (4.0 * np.sqrt(cin))
        banded = _banded_convt_weights(wt, w, cin, cout)   # (4, (w+2)Ci, 2wCo)
        # K-concatenate the two row-shift bands per parity -> one matmul per parity.
        wcat = np.stack([np.concatenate([banded[0], banded[1]], axis=0),
                         np.concatenate([banded[2], banded[3]], axis=0)], axis=0)
        grp = np.tile(np.eye(cout, dtype=np.float32), (2 * w, 1))   # (2w*Co, Co)
        params['blocks'].append({
            'w': jnp.asarray(wcat, jnp.bfloat16),          # (2, 2*(w+2)*Ci, 2w*Co)
            'gamma': jnp.ones((1, cout), jnp.float32),     # BatchNorm2d affine defaults
            'beta': jnp.zeros((1, cout), jnp.float32),
            'G': jnp.asarray(grp, jnp.float32),            # per-channel grouping
            'GT': jnp.asarray(grp.T.copy(), jnp.float32),
        })
        blocks_cfg.append({'Ci': cin, 'Co': cout, 'H': h, 'W': w,
                           'p': float(p), 'slope': float(slope)})
        h, w = 2 * h, 2 * w
    return params, blocks_cfg


# --------------------------------------------------------------------------
# pallas_call wrapper
# --------------------------------------------------------------------------

_VMEM = pl.BlockSpec(memory_space=pltpu.MemorySpace.VMEM)


def decoder_forward(z, dropout_key, params, blocks_cfg, drop_out_rate):
    n = z.shape[0]
    p_lin = float(drop_out_rate)
    last = blocks_cfg[-1]
    ho, wo, co = 2 * last['H'], 2 * last['W'], last['Co']

    # Host-side MC-dropout keep masks, pre-scaled by 1/(1-p) (inverted dropout).
    nmask = (1 if p_lin > 0.0 else 0) + sum(1 for bc in blocks_cfg if bc['p'] > 0.0)
    mkeys = list(jax.random.split(dropout_key, max(nmask, 1)))

    def drop_scale(k, p, shape):
        keep = jax.random.bernoulli(k, 1.0 - p, shape)
        return keep.astype(jnp.float32) * (1.0 / (1.0 - p))

    inputs = [z, params['lin_w'], params['lin_b']]
    ki = 0
    if p_lin > 0.0:
        inputs.append(drop_scale(mkeys[ki], p_lin, (n, params['lin_w'].shape[1])))
        ki += 1
    for bp, bc in zip(params['blocks'], blocks_cfg):
        inputs += [bp['w'], bp['gamma'], bp['beta'], bp['G'], bp['GT']]
        if bc['p'] > 0.0:
            inputs.append(drop_scale(mkeys[ki], bc['p'],
                                     (n, 2 * bc['H'], 2 * bc['W'] * bc['Co'])))
            ki += 1

    out_flat = pl.pallas_call(
        make_decoder_kernel(n, blocks_cfg, p_lin),
        out_shape=jax.ShapeDtypeStruct((n, ho, wo * co), jnp.float32),
        in_specs=[_VMEM] * len(inputs),
        out_specs=_VMEM,
    )(*inputs)

    # (N, 2H, 2W*Co) -> (N, Co, 2H, 2W) NCHW to match the PyTorch module.
    # TODO(synk): skip this host-side transpose if the consumer accepts NHWC.
    return out_flat.reshape(n, ho, wo, co).transpose(0, 3, 1, 2)


# --------------------------------------------------------------------------
# main
# --------------------------------------------------------------------------

if __name__ == "__main__":
    N = 2
    latent_dim = 16
    in_channels = 32
    output_shape = (3, 32, 32)      # conv_input_shape spatial = 32 // 2**4 = 2
    num_blocks = 4
    drop_out_rate = 0.25

    key = jax.random.PRNGKey(0)
    k_param, k_z, k_drop = jax.random.split(key, 3)

    params, blocks_cfg = init_decoder_params(k_param, in_channels, output_shape,
                                             latent_dim, drop_out_rate, num_blocks)
    z = jax.random.normal(k_z, (N, latent_dim), jnp.float32)

    out = decoder_forward(z, k_drop, params, blocks_cfg, drop_out_rate)
    out = jax.block_until_ready(out)

    assert out.shape == (N,) + output_shape, out.shape
    assert out.dtype == jnp.float32
    assert bool(jnp.isfinite(out).all())
    print("KERNEL_OK")
</pallas_src>

<mosaic_0001>
module attributes {stable_mosaic.version = 11 : i64} {
  func.func @kernel(%arg0: memref<2x16xf32, #tpu.memory_space<vmem>>, %arg1: memref<16x32xf32, #tpu.memory_space<vmem>>, %arg2: memref<1x32xf32, #tpu.memory_space<vmem>>, %arg3: memref<2x32xf32, #tpu.memory_space<vmem>>, %arg4: memref<2x256x64xbf16, #tpu.memory_space<vmem>>, %arg5: memref<1x16xf32, #tpu.memory_space<vmem>>, %arg6: memref<1x16xf32, #tpu.memory_space<vmem>>, %arg7: memref<64x16xf32, #tpu.memory_space<vmem>>, %arg8: memref<16x64xf32, #tpu.memory_space<vmem>>, %arg9: memref<2x4x64xf32, #tpu.memory_space<vmem>>, %arg10: memref<2x192x64xbf16, #tpu.memory_space<vmem>>, %arg11: memref<1x8xf32, #tpu.memory_space<vmem>>, %arg12: memref<1x8xf32, #tpu.memory_space<vmem>>, %arg13: memref<64x8xf32, #tpu.memory_space<vmem>>, %arg14: memref<8x64xf32, #tpu.memory_space<vmem>>, %arg15: memref<2x8x64xf32, #tpu.memory_space<vmem>>, %arg16: memref<2x160x64xbf16, #tpu.memory_space<vmem>>, %arg17: memref<1x4xf32, #tpu.memory_space<vmem>>, %arg18: memref<1x4xf32, #tpu.memory_space<vmem>>, %arg19: memref<64x4xf32, #tpu.memory_space<vmem>>, %arg20: memref<4x64xf32, #tpu.memory_space<vmem>>, %arg21: memref<2x16x64xf32, #tpu.memory_space<vmem>>, %arg22: memref<2x144x96xbf16, #tpu.memory_space<vmem>>, %arg23: memref<1x3xf32, #tpu.memory_space<vmem>>, %arg24: memref<1x3xf32, #tpu.memory_space<vmem>>, %arg25: memref<96x3xf32, #tpu.memory_space<vmem>>, %arg26: memref<3x96xf32, #tpu.memory_space<vmem>>, %arg27: memref<2x32x96xf32, #tpu.memory_space<vmem>>) attributes {dimension_semantics = [], scalar_prefetch = 0 : i64, scratch_operands = 0 : i64, tpu.core_type = #tpu.core_type<tc>} {
    %c0 = arith.constant 0 : index
    %c0_0 = arith.constant 0 : index
    %0 = vector.load %arg0[%c0, %c0_0] : memref<2x16xf32, #tpu.memory_space<vmem>>, vector<2x16xf32>
    %c0_1 = arith.constant 0 : index
    %c0_2 = arith.constant 0 : index
    %1 = vector.load %arg1[%c0_1, %c0_2] : memref<16x32xf32, #tpu.memory_space<vmem>>, vector<16x32xf32>
    %cst = arith.constant dense<0.000000e+00> : vector<2x32xf32>
    %2 = tpu.matmul %0, %1, %cst {dimension_numbers = #tpu.dot_dimension_numbers<[1], [0], [0], [1], [0, 0, 1, 1], [], []>} : vector<2x16xf32>, vector<16x32xf32>, vector<2x32xf32> -> vector<2x32xf32>
    %c0_3 = arith.constant 0 : index
    %c0_4 = arith.constant 0 : index
    %3 = vector.load %arg2[%c0_3, %c0_4] : memref<1x32xf32, #tpu.memory_space<vmem>>, vector<1x32xf32>
    %4 = vector.broadcast %3 : vector<1x32xf32> to vector<2x32xf32>
    %5 = arith.addf %2, %4 : vector<2x32xf32>
    %c0_5 = arith.constant 0 : index
    %c0_6 = arith.constant 0 : index
    %6 = vector.load %arg3[%c0_5, %c0_6] : memref<2x32xf32, #tpu.memory_space<vmem>>, vector<2x32xf32>
    %7 = arith.mulf %5, %6 : vector<2x32xf32>
    %cst_7 = arith.constant 0.000000e+00 : f32
    %8 = vector.broadcast %cst_7 : f32 to vector<2x32xf32>
    %9 = tpu.concatenate %8, %7, %7, %8 in 1 : vector<2x32xf32>, vector<2x32xf32>, vector<2x32xf32>, vector<2x32xf32> -> vector<2x128xf32>
    %10 = arith.truncf %9 : vector<2x128xf32> to vector<2x128xbf16>
    %cst_8 = arith.constant 0.000000e+00 : bf16
    %11 = vector.broadcast %cst_8 : bf16 to vector<2x128xbf16>
    %12 = vector.shape_cast %11 : vector<2x128xbf16> to vector<2x1x128xbf16>
    %13 = vector.shape_cast %10 : vector<2x128xbf16> to vector<2x1x128xbf16>
    %14 = vector.shape_cast %10 : vector<2x128xbf16> to vector<2x1x128xbf16>
    %15 = vector.shape_cast %11 : vector<2x128xbf16> to vector<2x1x128xbf16>
    %16 = tpu.concatenate %12, %13, %14, %15 in 1 : vector<2x1x128xbf16>, vector<2x1x128xbf16>, vector<2x1x128xbf16>, vector<2x1x128xbf16> -> vector<2x4x128xbf16>
    %17 = vector.extract_strided_slice %16 {offsets = [0, 0, 0], sizes = [2, 2, 128], strides = [1, 1, 1]} : vector<2x4x128xbf16> to vector<2x2x128xbf16>
    %18 = vector.extract_strided_slice %16 {offsets = [0, 1, 0], sizes = [2, 2, 128], strides = [1, 1, 1]} : vector<2x4x128xbf16> to vector<2x2x128xbf16>
    %19 = tpu.concatenate %17, %18 in 2 : vector<2x2x128xbf16>, vector<2x2x128xbf16> -> vector<2x2x256xbf16>
    %20 = vector.shape_cast %19 : vector<2x2x256xbf16> to vector<4x256xbf16>
    %c0_9 = arith.constant 0 : index
    %c0_10 = arith.constant 0 : index
    %c0_11 = arith.constant 0 : index
    %21 = vector.load %arg4[%c0_9, %c0_10, %c0_11] : memref<2x256x64xbf16, #tpu.memory_space<vmem>>, vector<1x256x64xbf16>
    %22 = vector.shape_cast %21 : vector<1x256x64xbf16> to vector<256x64xbf16>
    %cst_12 = arith.constant dense<0.000000e+00> : vector<4x64xf32>
    %23 = tpu.matmul %20, %22, %cst_12 {dimension_numbers = #tpu.dot_dimension_numbers<[1], [0], [0], [1], [0, 0, 1, 1], [], []>} : vector<4x256xbf16>, vector<256x64xbf16>, vector<4x64xf32> -> vector<4x64xf32>
    %24 = vector.extract_strided_slice %16 {offsets = [0, 1, 0], sizes = [2, 2, 128], strides = [1, 1, 1]} : vector<2x4x128xbf16> to vector<2x2x128xbf16>
    %25 = vector.extract_strided_slice %16 {offsets = [0, 2, 0], sizes = [2, 2, 128], strides = [1, 1, 1]} : vector<2x4x128xbf16> to vector<2x2x128xbf16>
    %26 = tpu.concatenate %24, %25 in 2 : vector<2x2x128xbf16>, vector<2x2x128xbf16> -> vector<2x2x256xbf16>
    %27 = vector.shape_cast %26 : vector<2x2x256xbf16> to vector<4x256xbf16>
    %c1 = arith.constant 1 : index
    %c0_13 = arith.constant 0 : index
    %c0_14 = arith.constant 0 : index
    %28 = vector.load %arg4[%c1, %c0_13, %c0_14] : memref<2x256x64xbf16, #tpu.memory_space<vmem>>, vector<1x256x64xbf16>
    %29 = vector.shape_cast %28 : vector<1x256x64xbf16> to vector<256x64xbf16>
    %cst_15 = arith.constant dense<0.000000e+00> : vector<4x64xf32>
    %30 = tpu.matmul %27, %29, %cst_15 {dimension_numbers = #tpu.dot_dimension_numbers<[1], [0], [0], [1], [0, 0, 1, 1], [], []>} : vector<4x256xbf16>, vector<256x64xbf16>, vector<4x64xf32> -> vector<4x64xf32>
    %cst_16 = arith.constant dense<0.000000e+00> : vector<64xf32>
    %31 = vector.multi_reduction <add>, %23, %cst_16 [0] : vector<4x64xf32> to vector<64xf32>
    %32 = vector.shape_cast %31 : vector<64xf32> to vector<1x64xf32>
    %cst_17 = arith.constant dense<0.000000e+00> : vector<64xf32>
    %33 = vector.multi_reduction <add>, %30, %cst_17 [0] : vector<4x64xf32> to vector<64xf32>
    %34 = vector.shape_cast %33 : vector<64xf32> to vector<1x64xf32>
    %35 = arith.addf %32, %34 : vector<1x64xf32>
    %36 = arith.mulf %23, %23 : vector<4x64xf32>
    %cst_18 = arith.constant dense<0.000000e+00> : vector<64xf32>
    %37 = vector.multi_reduction <add>, %36, %cst_18 [0] : vector<4x64xf32> to vector<64xf32>
    %38 = vector.shape_cast %37 : vector<64xf32> to vector<1x64xf32>
    %39 = arith.mulf %30, %30 : vector<4x64xf32>
    %cst_19 = arith.constant dense<0.000000e+00> : vector<64xf32>
    %40 = vector.multi_reduction <add>, %39, %cst_19 [0] : vector<4x64xf32> to vector<64xf32>
    %41 = vector.shape_cast %40 : vector<64xf32> to vector<1x64xf32>
    %42 = arith.addf %38, %41 : vector<1x64xf32>
    %c0_20 = arith.constant 0 : index
    %c0_21 = arith.constant 0 : index
    %43 = vector.load %arg7[%c0_20, %c0_21] : memref<64x16xf32, #tpu.memory_space<vmem>>, vector<64x16xf32>
    %cst_22 = arith.constant dense<0.000000e+00> : vector<1x16xf32>
    %44 = tpu.matmul %35, %43, %cst_22 {dimension_numbers = #tpu.dot_dimension_numbers<[1], [0], [0], [1], [0, 0, 1, 1], [], []>} : vector<1x64xf32>, vector<64x16xf32>, vector<1x16xf32> -> vector<1x16xf32>
    %c0_23 = arith.constant 0 : index
    %c0_24 = arith.constant 0 : index
    %45 = vector.load %arg7[%c0_23, %c0_24] : memref<64x16xf32, #tpu.memory_space<vmem>>, vector<64x16xf32>
    %cst_25 = arith.constant dense<0.000000e+00> : vector<1x16xf32>
    %46 = tpu.matmul %42, %45, %cst_25 {dimension_numbers = #tpu.dot_dimension_numbers<[1], [0], [0], [1], [0, 0, 1, 1], [], []>} : vector<1x64xf32>, vector<64x16xf32>, vector<1x16xf32> -> vector<1x16xf32>
    %cst_26 = arith.constant 3.200000e+01 : f32
    %47 = vector.broadcast %cst_26 : f32 to vector<1x16xf32>
    %48 = arith.divf %44, %47 : vector<1x16xf32>
    %cst_27 = arith.constant 3.200000e+01 : f32
    %49 = vector.broadcast %cst_27 : f32 to vector<1x16xf32>
    %50 = arith.divf %46, %49 : vector<1x16xf32>
    %51 = arith.mulf %48, %48 : vector<1x16xf32>
    %52 = arith.subf %50, %51 : vector<1x16xf32>
    %cst_28 = arith.constant 0.000000e+00 : f32
    %53 = vector.broadcast %cst_28 : f32 to vector<1x16xf32>
    %54 = arith.maximumf %52, %53 : vector<1x16xf32>
    %c0_29 = arith.constant 0 : index
    %c0_30 = arith.constant 0 : index
    %55 = vector.load %arg5[%c0_29, %c0_30] : memref<1x16xf32, #tpu.memory_space<vmem>>, vector<1x16xf32>
    %cst_31 = arith.constant 9.99999974E-6 : f32
    %56 = vector.broadcast %cst_31 : f32 to vector<1x16xf32>
    %57 = arith.addf %54, %56 : vector<1x16xf32>
    %58 = math.rsqrt %57 : vector<1x16xf32>
    %59 = arith.mulf %55, %58 : vector<1x16xf32>
    %c0_32 = arith.constant 0 : index
    %c0_33 = arith.constant 0 : index
    %60 = vector.load %arg6[%c0_32, %c0_33] : memref<1x16xf32, #tpu.memory_space<vmem>>, vector<1x16xf32>
    %61 = arith.mulf %48, %59 : vector<1x16xf32>
    %62 = arith.subf %60, %61 : vector<1x16xf32>
    %c0_34 = arith.constant 0 : index
    %c0_35 = arith.constant 0 : index
    %63 = vector.load %arg8[%c0_34, %c0_35] : memref<16x64xf32, #tpu.memory_space<vmem>>, vector<16x64xf32>
    %cst_36 = arith.constant dense<0.000000e+00> : vector<1x64xf32>
    %64 = tpu.matmul %59, %63, %cst_36 {dimension_numbers = #tpu.dot_dimension_numbers<[1], [0], [0], [1], [0, 0, 1, 1], [], []>} : vector<1x16xf32>, vector<16x64xf32>, vector<1x64xf32> -> vector<1x64xf32>
    %c0_37 = arith.constant 0 : index
    %c0_38 = arith.constant 0 : index
    %65 = vector.load %arg8[%c0_37, %c0_38] : memref<16x64xf32, #tpu.memory_space<vmem>>, vector<16x64xf32>
    %cst_39 = arith.constant dense<0.000000e+00> : vector<1x64xf32>
    %66 = tpu.matmul %62, %65, %cst_39 {dimension_numbers = #tpu.dot_dimension_numbers<[1], [0], [0], [1], [0, 0, 1, 1], [], []>} : vector<1x16xf32>, vector<16x64xf32>, vector<1x64xf32> -> vector<1x64xf32>
    %67 = vector.broadcast %64 : vector<1x64xf32> to vector<4x64xf32>
    %68 = arith.mulf %23, %67 : vector<4x64xf32>
    %69 = vector.broadcast %66 : vector<1x64xf32> to vector<4x64xf32>
    %70 = arith.addf %68, %69 : vector<4x64xf32>
    %71 = vector.broadcast %64 : vector<1x64xf32> to vector<4x64xf32>
    %72 = arith.mulf %30, %71 : vector<4x64xf32>
    %73 = vector.broadcast %66 : vector<1x64xf32> to vector<4x64xf32>
    %74 = arith.addf %72, %73 : vector<4x64xf32>
    %cst_40 = arith.constant 0.000000e+00 : f32
    %75 = vector.broadcast %cst_40 : f32 to vector<4x64xf32>
    %76 = arith.cmpf oge, %70, %75 : vector<4x64xf32>
    %cst_41 = arith.constant 2.000000e-01 : f32
    %77 = vector.broadcast %cst_41 : f32 to vector<4x64xf32>
    %78 = arith.mulf %77, %70 : vector<4x64xf32>
    %79 = arith.select %76, %70, %78 : vector<4x64xi1>, vector<4x64xf32>
    %cst_42 = arith.constant 0.000000e+00 : f32
    %80 = vector.broadcast %cst_42 : f32 to vector<4x64xf32>
    %81 = arith.cmpf oge, %74, %80 : vector<4x64xf32>
    %cst_43 = arith.constant 2.000000e-01 : f32
    %82 = vector.broadcast %cst_43 : f32 to vector<4x64xf32>
    %83 = arith.mulf %82, %74 : vector<4x64xf32>
    %84 = arith.select %81, %74, %83 : vector<4x64xi1>, vector<4x64xf32>
    %85 = vector.shape_cast %79 : vector<4x64xf32> to vector<2x2x64xf32>
    %86 = vector.shape_cast %84 : vector<4x64xf32> to vector<2x2x64xf32>
    %87 = vector.shape_cast %85 : vector<2x2x64xf32> to vector<2x2x1x64xf32>
    %88 = vector.shape_cast %86 : vector<2x2x64xf32> to vector<2x2x1x64xf32>
    %89 = tpu.concatenate %87, %88 in 2 : vector<2x2x1x64xf32>, vector<2x2x1x64xf32> -> vector<2x2x2x64xf32>
    %90 = vector.shape_cast %89 : vector<2x2x2x64xf32> to vector<2x4x64xf32>
    %c0_44 = arith.constant 0 : index
    %c0_45 = arith.constant 0 : index
    %c0_46 = arith.constant 0 : index
    %91 = vector.load %arg9[%c0_44, %c0_45, %c0_46] : memref<2x4x64xf32, #tpu.memory_space<vmem>>, vector<2x4x64xf32>
    %92 = arith.mulf %90, %91 : vector<2x4x64xf32>
    %cst_47 = arith.constant 0.000000e+00 : f32
    %93 = vector.broadcast %cst_47 : f32 to vector<2x4x16xf32>
    %94 = tpu.concatenate %93, %92, %93 in 2 : vector<2x4x16xf32>, vector<2x4x64xf32>, vector<2x4x16xf32> -> vector<2x4x96xf32>
    %cst_48 = arith.constant 0.000000e+00 : f32
    %95 = vector.broadcast %cst_48 : f32 to vector<2x1x96xf32>
    %96 = tpu.concatenate %95, %94, %95 in 1 : vector<2x1x96xf32>, vector<2x4x96xf32>, vector<2x1x96xf32> -> vector<2x6x96xf32>
    %97 = arith.truncf %96 : vector<2x6x96xf32> to vector<2x6x96xbf16>
    %98 = vector.extract_strided_slice %97 {offsets = [0, 0, 0], sizes = [2, 4, 96], strides = [1, 1, 1]} : vector<2x6x96xbf16> to vector<2x4x96xbf16>
    %99 = vector.extract_strided_slice %97 {offsets = [0, 1, 0], sizes = [2, 4, 96], strides = [1, 1, 1]} : vector<2x6x96xbf16> to vector<2x4x96xbf16>
    %100 = tpu.concatenate %98, %99 in 2 : vector<2x4x96xbf16>, vector<2x4x96xbf16> -> vector<2x4x192xbf16>
    %101 = vector.shape_cast %100 : vector<2x4x192xbf16> to vector<8x192xbf16>
    %c0_49 = arith.constant 0 : index
    %c0_50 = arith.constant 0 : index
    %c0_51 = arith.constant 0 : index
    %102 = vector.load %arg10[%c0_49, %c0_50, %c0_51] : memref<2x192x64xbf16, #tpu.memory_space<vmem>>, vector<1x192x64xbf16>
    %103 = vector.shape_cast %102 : vector<1x192x64xbf16> to vector<192x64xbf16>
    %cst_52 = arith.constant dense<0.000000e+00> : vector<8x64xf32>
    %104 = tpu.matmul %101, %103, %cst_52 {dimension_numbers = #tpu.dot_dimension_numbers<[1], [0], [0], [1], [0, 0, 1, 1], [], []>} : vector<8x192xbf16>, vector<192x64xbf16>, vector<8x64xf32> -> vector<8x64xf32>
    %105 = vector.extract_strided_slice %97 {offsets = [0, 1, 0], sizes = [2, 4, 96], strides = [1, 1, 1]} : vector<2x6x96xbf16> to vector<2x4x96xbf16>
    %106 = vector.extract_strided_slice %97 {offsets = [0, 2, 0], sizes = [2, 4, 96], strides = [1, 1, 1]} : vector<2x6x96xbf16> to vector<2x4x96xbf16>
    %107 = tpu.concatenate %105, %106 in 2 : vector<2x4x96xbf16>, vector<2x4x96xbf16> -> vector<2x4x192xbf16>
    %108 = vector.shape_cast %107 : vector<2x4x192xbf16> to vector<8x192xbf16>
    %c1_53 = arith.constant 1 : index
    %c0_54 = arith.constant 0 : index
    %c0_55 = arith.constant 0 : index
    %109 = vector.load %arg10[%c1_53, %c0_54, %c0_55] : memref<2x192x64xbf16, #tpu.memory_space<vmem>>, vector<1x192x64xbf16>
    %110 = vector.shape_cast %109 : vector<1x192x64xbf16> to vector<192x64xbf16>
    %cst_56 = arith.constant dense<0.000000e+00> : vector<8x64xf32>
    %111 = tpu.matmul %108, %110, %cst_56 {dimension_numbers = #tpu.dot_dimension_numbers<[1], [0], [0], [1], [0, 0, 1, 1], [], []>} : vector<8x192xbf16>, vector<192x64xbf16>, vector<8x64xf32> -> vector<8x64xf32>
    %cst_57 = arith.constant dense<0.000000e+00> : vector<64xf32>
    %112 = vector.multi_reduction <add>, %104, %cst_57 [0] : vector<8x64xf32> to vector<64xf32>
    %113 = vector.shape_cast %112 : vector<64xf32> to vector<1x64xf32>
    %cst_58 = arith.constant dense<0.000000e+00> : vector<64xf32>
    %114 = vector.multi_reduction <add>, %111, %cst_58 [0] : vector<8x64xf32> to vector<64xf32>
    %115 = vector.shape_cast %114 : vector<64xf32> to vector<1x64xf32>
    %116 = arith.addf %113, %115 : vector<1x64xf32>
    %117 = arith.mulf %104, %104 : vector<8x64xf32>
    %cst_59 = arith.constant dense<0.000000e+00> : vector<64xf32>
    %118 = vector.multi_reduction <add>, %117, %cst_59 [0] : vector<8x64xf32> to vector<64xf32>
    %119 = vector.shape_cast %118 : vector<64xf32> to vector<1x64xf32>
    %120 = arith.mulf %111, %111 : vector<8x64xf32>
    %cst_60 = arith.constant dense<0.000000e+00> : vector<64xf32>
    %121 = vector.multi_reduction <add>, %120, %cst_60 [0] : vector<8x64xf32> to vector<64xf32>
    %122 = vector.shape_cast %121 : vector<64xf32> to vector<1x64xf32>
    %123 = arith.addf %119, %122 : vector<1x64xf32>
    %c0_61 = arith.constant 0 : index
    %c0_62 = arith.constant 0 : index
    %124 = vector.load %arg13[%c0_61, %c0_62] : memref<64x8xf32, #tpu.memory_space<vmem>>, vector<64x8xf32>
    %cst_63 = arith.constant dense<0.000000e+00> : vector<1x8xf32>
    %125 = tpu.matmul %116, %124, %cst_63 {dimension_numbers = #tpu.dot_dimension_numbers<[1], [0], [0], [1], [0, 0, 1, 1], [], []>} : vector<1x64xf32>, vector<64x8xf32>, vector<1x8xf32> -> vector<1x8xf32>
    %c0_64 = arith.constant 0 : index
    %c0_65 = arith.constant 0 : index
    %126 = vector.load %arg13[%c0_64, %c0_65] : memref<64x8xf32, #tpu.memory_space<vmem>>, vector<64x8xf32>
    %cst_66 = arith.constant dense<0.000000e+00> : vector<1x8xf32>
    %127 = tpu.matmul %123, %126, %cst_66 {dimension_numbers = #tpu.dot_dimension_numbers<[1], [0], [0], [1], [0, 0, 1, 1], [], []>} : vector<1x64xf32>, vector<64x8xf32>, vector<1x8xf32> -> vector<1x8xf32>
    %cst_67 = arith.constant 1.280000e+02 : f32
    %128 = vector.broadcast %cst_67 : f32 to vector<1x8xf32>
    %129 = arith.divf %125, %128 : vector<1x8xf32>
    %cst_68 = arith.constant 1.280000e+02 : f32
    %130 = vector.broadcast %cst_68 : f32 to vector<1x8xf32>
    %131 = arith.divf %127, %130 : vector<1x8xf32>
    %132 = arith.mulf %129, %129 : vector<1x8xf32>
    %133 = arith.subf %131, %132 : vector<1x8xf32>
    %cst_69 = arith.constant 0.000000e+00 : f32
    %134 = vector.broadcast %cst_69 : f32 to vector<1x8xf32>
    %135 = arith.maximumf %133, %134 : vector<1x8xf32>
    %c0_70 = arith.constant 0 : index
    %c0_71 = arith.constant 0 : index
    %136 = vector.load %arg11[%c0_70, %c0_71] : memref<1x8xf32, #tpu.memory_space<vmem>>, vector<1x8xf32>
    %cst_72 = arith.constant 9.99999974E-6 : f32
    %137 = vector.broadcast %cst_72 : f32 to vector<1x8xf32>
    %138 = arith.addf %135, %137 : vector<1x8xf32>
    %139 = math.rsqrt %138 : vector<1x8xf32>
    %140 = arith.mulf %136, %139 : vector<1x8xf32>
    %c0_73 = arith.constant 0 : index
    %c0_74 = arith.constant 0 : index
    %141 = vector.load %arg12[%c0_73, %c0_74] : memref<1x8xf32, #tpu.memory_space<vmem>>, vector<1x8xf32>
    %142 = arith.mulf %129, %140 : vector<1x8xf32>
    %143 = arith.subf %141, %142 : vector<1x8xf32>
    %c0_75 = arith.constant 0 : index
    %c0_76 = arith.constant 0 : index
    %144 = vector.load %arg14[%c0_75, %c0_76] : memref<8x64xf32, #tpu.memory_space<vmem>>, vector<8x64xf32>
    %cst_77 = arith.constant dense<0.000000e+00> : vector<1x64xf32>
    %145 = tpu.matmul %140, %144, %cst_77 {dimension_numbers = #tpu.dot_dimension_numbers<[1], [0], [0], [1], [0, 0, 1, 1], [], []>} : vector<1x8xf32>, vector<8x64xf32>, vector<1x64xf32> -> vector<1x64xf32>
    %c0_78 = arith.constant 0 : index
    %c0_79 = arith.constant 0 : index
    %146 = vector.load %arg14[%c0_78, %c0_79] : memref<8x64xf32, #tpu.memory_space<vmem>>, vector<8x64xf32>
    %cst_80 = arith.constant dense<0.000000e+00> : vector<1x64xf32>
    %147 = tpu.matmul %143, %146, %cst_80 {dimension_numbers = #tpu.dot_dimension_numbers<[1], [0], [0], [1], [0, 0, 1, 1], [], []>} : vector<1x8xf32>, vector<8x64xf32>, vector<1x64xf32> -> vector<1x64xf32>
    %148 = vector.broadcast %145 : vector<1x64xf32> to vector<8x64xf32>
    %149 = arith.mulf %104, %148 : vector<8x64xf32>
    %150 = vector.broadcast %147 : vector<1x64xf32> to vector<8x64xf32>
    %151 = arith.addf %149, %150 : vector<8x64xf32>
    %152 = vector.broadcast %145 : vector<1x64xf32> to vector<8x64xf32>
    %153 = arith.mulf %111, %152 : vector<8x64xf32>
    %154 = vector.broadcast %147 : vector<1x64xf32> to vector<8x64xf32>
    %155 = arith.addf %153, %154 : vector<8x64xf32>
    %cst_81 = arith.constant 0.000000e+00 : f32
    %156 = vector.broadcast %cst_81 : f32 to vector<8x64xf32>
    %157 = arith.cmpf oge, %151, %156 : vector<8x64xf32>
    %cst_82 = arith.constant 2.000000e-01 : f32
    %158 = vector.broadcast %cst_82 : f32 to vector<8x64xf32>
    %159 = arith.mulf %158, %151 : vector<8x64xf32>
    %160 = arith.select %157, %151, %159 : vector<8x64xi1>, vector<8x64xf32>
    %cst_83 = arith.constant 0.000000e+00 : f32
    %161 = vector.broadcast %cst_83 : f32 to vector<8x64xf32>
    %162 = arith.cmpf oge, %155, %161 : vector<8x64xf32>
    %cst_84 = arith.constant 2.000000e-01 : f32
    %163 = vector.broadcast %cst_84 : f32 to vector<8x64xf32>
    %164 = arith.mulf %163, %155 : vector<8x64xf32>
    %165 = arith.select %162, %155, %164 : vector<8x64xi1>, vector<8x64xf32>
    %166 = vector.shape_cast %160 : vector<8x64xf32> to vector<2x4x64xf32>
    %167 = vector.shape_cast %165 : vector<8x64xf32> to vector<2x4x64xf32>
    %168 = vector.shape_cast %166 : vector<2x4x64xf32> to vector<2x4x1x64xf32>
    %169 = vector.shape_cast %167 : vector<2x4x64xf32> to vector<2x4x1x64xf32>
    %170 = tpu.concatenate %168, %169 in 2 : vector<2x4x1x64xf32>, vector<2x4x1x64xf32> -> vector<2x4x2x64xf32>
    %171 = vector.shape_cast %170 : vector<2x4x2x64xf32> to vector<2x8x64xf32>
    %c0_85 = arith.constant 0 : index
    %c0_86 = arith.constant 0 : index
    %c0_87 = arith.constant 0 : index
    %172 = vector.load %arg15[%c0_85, %c0_86, %c0_87] : memref<2x8x64xf32, #tpu.memory_space<vmem>>, vector<2x8x64xf32>
    %173 = arith.mulf %171, %172 : vector<2x8x64xf32>
    %cst_88 = arith.constant 0.000000e+00 : f32
    %174 = vector.broadcast %cst_88 : f32 to vector<2x8x8xf32>
    %175 = tpu.concatenate %174, %173, %174 in 2 : vector<2x8x8xf32>, vector<2x8x64xf32>, vector<2x8x8xf32> -> vector<2x8x80xf32>
    %cst_89 = arith.constant 0.000000e+00 : f32
    %176 = vector.broadcast %cst_89 : f32 to vector<2x1x80xf32>
    %177 = tpu.concatenate %176, %175, %176 in 1 : vector<2x1x80xf32>, vector<2x8x80xf32>, vector<2x1x80xf32> -> vector<2x10x80xf32>
    %178 = arith.truncf %177 : vector<2x10x80xf32> to vector<2x10x80xbf16>
    %179 = vector.extract_strided_slice %178 {offsets = [0, 0, 0], sizes = [2, 8, 80], strides = [1, 1, 1]} : vector<2x10x80xbf16> to vector<2x8x80xbf16>
    %180 = vector.extract_strided_slice %178 {offsets = [0, 1, 0], sizes = [2, 8, 80], strides = [1, 1, 1]} : vector<2x10x80xbf16> to vector<2x8x80xbf16>
    %181 = tpu.concatenate %179, %180 in 2 : vector<2x8x80xbf16>, vector<2x8x80xbf16> -> vector<2x8x160xbf16>
    %182 = vector.shape_cast %181 : vector<2x8x160xbf16> to vector<16x160xbf16>
    %c0_90 = arith.constant 0 : index
    %c0_91 = arith.constant 0 : index
    %c0_92 = arith.constant 0 : index
    %183 = vector.load %arg16[%c0_90, %c0_91, %c0_92] : memref<2x160x64xbf16, #tpu.memory_space<vmem>>, vector<1x160x64xbf16>
    %184 = vector.shape_cast %183 : vector<1x160x64xbf16> to vector<160x64xbf16>
    %cst_93 = arith.constant dense<0.000000e+00> : vector<16x64xf32>
    %185 = tpu.matmul %182, %184, %cst_93 {dimension_numbers = #tpu.dot_dimension_numbers<[1], [0], [0], [1], [0, 0, 1, 1], [], []>} : vector<16x160xbf16>, vector<160x64xbf16>, vector<16x64xf32> -> vector<16x64xf32>
    %186 = vector.extract_strided_slice %178 {offsets = [0, 1, 0], sizes = [2, 8, 80], strides = [1, 1, 1]} : vector<2x10x80xbf16> to vector<2x8x80xbf16>
    %187 = vector.extract_strided_slice %178 {offsets = [0, 2, 0], sizes = [2, 8, 80], strides = [1, 1, 1]} : vector<2x10x80xbf16> to vector<2x8x80xbf16>
    %188 = tpu.concatenate %186, %187 in 2 : vector<2x8x80xbf16>, vector<2x8x80xbf16> -> vector<2x8x160xbf16>
    %189 = vector.shape_cast %188 : vector<2x8x160xbf16> to vector<16x160xbf16>
    %c1_94 = arith.constant 1 : index
    %c0_95 = arith.constant 0 : index
    %c0_96 = arith.constant 0 : index
    %190 = vector.load %arg16[%c1_94, %c0_95, %c0_96] : memref<2x160x64xbf16, #tpu.memory_space<vmem>>, vector<1x160x64xbf16>
    %191 = vector.shape_cast %190 : vector<1x160x64xbf16> to vector<160x64xbf16>
    %cst_97 = arith.constant dense<0.000000e+00> : vector<16x64xf32>
    %192 = tpu.matmul %189, %191, %cst_97 {dimension_numbers = #tpu.dot_dimension_numbers<[1], [0], [0], [1], [0, 0, 1, 1], [], []>} : vector<16x160xbf16>, vector<160x64xbf16>, vector<16x64xf32> -> vector<16x64xf32>
    %cst_98 = arith.constant dense<0.000000e+00> : vector<64xf32>
    %193 = vector.multi_reduction <add>, %185, %cst_98 [0] : vector<16x64xf32> to vector<64xf32>
    %194 = vector.shape_cast %193 : vector<64xf32> to vector<1x64xf32>
    %cst_99 = arith.constant dense<0.000000e+00> : vector<64xf32>
    %195 = vector.multi_reduction <add>, %192, %cst_99 [0] : vector<16x64xf32> to vector<64xf32>
    %196 = vector.shape_cast %195 : vector<64xf32> to vector<1x64xf32>
    %197 = arith.addf %194, %196 : vector<1x64xf32>
    %198 = arith.mulf %185, %185 : vector<16x64xf32>
    %cst_100 = arith.constant dense<0.000000e+00> : vector<64xf32>
    %199 = vector.multi_reduction <add>, %198, %cst_100 [0] : vector<16x64xf32> to vector<64xf32>
    %200 = vector.shape_cast %199 : vector<64xf32> to vector<1x64xf32>
    %201 = arith.mulf %192, %192 : vector<16x64xf32>
    %cst_101 = arith.constant dense<0.000000e+00> : vector<64xf32>
    %202 = vector.multi_reduction <add>, %201, %cst_101 [0] : vector<16x64xf32> to vector<64xf32>
    %203 = vector.shape_cast %202 : vector<64xf32> to vector<1x64xf32>
    %204 = arith.addf %200, %203 : vector<1x64xf32>
    %c0_102 = arith.constant 0 : index
    %c0_103 = arith.constant 0 : index
    %205 = vector.load %arg19[%c0_102, %c0_103] : memref<64x4xf32, #tpu.memory_space<vmem>>, vector<64x4xf32>
    %cst_104 = arith.constant dense<0.000000e+00> : vector<1x4xf32>
    %206 = tpu.matmul %197, %205, %cst_104 {dimension_numbers = #tpu.dot_dimension_numbers<[1], [0], [0], [1], [0, 0, 1, 1], [], []>} : vector<1x64xf32>, vector<64x4xf32>, vector<1x4xf32> -> vector<1x4xf32>
    %c0_105 = arith.constant 0 : index
    %c0_106 = arith.constant 0 : index
    %207 = vector.load %arg19[%c0_105, %c0_106] : memref<64x4xf32, #tpu.memory_space<vmem>>, vector<64x4xf32>
    %cst_107 = arith.constant dense<0.000000e+00> : vector<1x4xf32>
    %208 = tpu.matmul %204, %207, %cst_107 {dimension_numbers = #tpu.dot_dimension_numbers<[1], [0], [0], [1], [0, 0, 1, 1], [], []>} : vector<1x64xf32>, vector<64x4xf32>, vector<1x4xf32> -> vector<1x4xf32>
    %cst_108 = arith.constant 5.120000e+02 : f32
    %209 = vector.broadcast %cst_108 : f32 to vector<1x4xf32>
    %210 = arith.divf %206, %209 : vector<1x4xf32>
    %cst_109 = arith.constant 5.120000e+02 : f32
    %211 = vector.broadcast %cst_109 : f32 to vector<1x4xf32>
    %212 = arith.divf %208, %211 : vector<1x4xf32>
    %213 = arith.mulf %210, %210 : vector<1x4xf32>
    %214 = arith.subf %212, %213 : vector<1x4xf32>
    %cst_110 = arith.constant 0.000000e+00 : f32
    %215 = vector.broadcast %cst_110 : f32 to vector<1x4xf32>
    %216 = arith.maximumf %214, %215 : vector<1x4xf32>
    %c0_111 = arith.constant 0 : index
    %c0_112 = arith.constant 0 : index
    %217 = vector.load %arg17[%c0_111, %c0_112] : memref<1x4xf32, #tpu.memory_space<vmem>>, vector<1x4xf32>
    %cst_113 = arith.constant 9.99999974E-6 : f32
    %218 = vector.broadcast %cst_113 : f32 to vector<1x4xf32>
    %219 = arith.addf %216, %218 : vector<1x4xf32>
    %220 = math.rsqrt %219 : vector<1x4xf32>
    %221 = arith.mulf %217, %220 : vector<1x4xf32>
    %c0_114 = arith.constant 0 : index
    %c0_115 = arith.constant 0 : index
    %222 = vector.load %arg18[%c0_114, %c0_115] : memref<1x4xf32, #tpu.memory_space<vmem>>, vector<1x4xf32>
    %223 = arith.mulf %210, %221 : vector<1x4xf32>
    %224 = arith.subf %222, %223 : vector<1x4xf32>
    %c0_116 = arith.constant 0 : index
    %c0_117 = arith.constant 0 : index
    %225 = vector.load %arg20[%c0_116, %c0_117] : memref<4x64xf32, #tpu.memory_space<vmem>>, vector<4x64xf32>
    %cst_118 = arith.constant dense<0.000000e+00> : vector<1x64xf32>
    %226 = tpu.matmul %221, %225, %cst_118 {dimension_numbers = #tpu.dot_dimension_numbers<[1], [0], [0], [1], [0, 0, 1, 1], [], []>} : vector<1x4xf32>, vector<4x64xf32>, vector<1x64xf32> -> vector<1x64xf32>
    %c0_119 = arith.constant 0 : index
    %c0_120 = arith.constant 0 : index
    %227 = vector.load %arg20[%c0_119, %c0_120] : memref<4x64xf32, #tpu.memory_space<vmem>>, vector<4x64xf32>
    %cst_121 = arith.constant dense<0.000000e+00> : vector<1x64xf32>
    %228 = tpu.matmul %224, %227, %cst_121 {dimension_numbers = #tpu.dot_dimension_numbers<[1], [0], [0], [1], [0, 0, 1, 1], [], []>} : vector<1x4xf32>, vector<4x64xf32>, vector<1x64xf32> -> vector<1x64xf32>
    %229 = vector.broadcast %226 : vector<1x64xf32> to vector<16x64xf32>
    %230 = arith.mulf %185, %229 : vector<16x64xf32>
    %231 = vector.broadcast %228 : vector<1x64xf32> to vector<16x64xf32>
    %232 = arith.addf %230, %231 : vector<16x64xf32>
    %233 = vector.broadcast %226 : vector<1x64xf32> to vector<16x64xf32>
    %234 = arith.mulf %192, %233 : vector<16x64xf32>
    %235 = vector.broadcast %228 : vector<1x64xf32> to vector<16x64xf32>
    %236 = arith.addf %234, %235 : vector<16x64xf32>
    %cst_122 = arith.constant 0.000000e+00 : f32
    %237 = vector.broadcast %cst_122 : f32 to vector<16x64xf32>
    %238 = arith.cmpf oge, %232, %237 : vector<16x64xf32>
    %cst_123 = arith.constant 2.000000e-01 : f32
    %239 = vector.broadcast %cst_123 : f32 to vector<16x64xf32>
    %240 = arith.mulf %239, %232 : vector<16x64xf32>
    %241 = arith.select %238, %232, %240 : vector<16x64xi1>, vector<16x64xf32>
    %cst_124 = arith.constant 0.000000e+00 : f32
    %242 = vector.broadcast %cst_124 : f32 to vector<16x64xf32>
    %243 = arith.cmpf oge, %236, %242 : vector<16x64xf32>
    %cst_125 = arith.constant 2.000000e-01 : f32
    %244 = vector.broadcast %cst_125 : f32 to vector<16x64xf32>
    %245 = arith.mulf %244, %236 : vector<16x64xf32>
    %246 = arith.select %243, %236, %245 : vector<16x64xi1>, vector<16x64xf32>
    %247 = vector.shape_cast %241 : vector<16x64xf32> to vector<2x8x64xf32>
    %248 = vector.shape_cast %246 : vector<16x64xf32> to vector<2x8x64xf32>
    %249 = vector.shape_cast %247 : vector<2x8x64xf32> to vector<2x8x1x64xf32>
    %250 = vector.shape_cast %248 : vector<2x8x64xf32> to vector<2x8x1x64xf32>
    %251 = tpu.concatenate %249, %250 in 2 : vector<2x8x1x64xf32>, vector<2x8x1x64xf32> -> vector<2x8x2x64xf32>
    %252 = vector.shape_cast %251 : vector<2x8x2x64xf32> to vector<2x16x64xf32>
    %c0_126 = arith.constant 0 : index
    %c0_127 = arith.constant 0 : index
    %c0_128 = arith.constant 0 : index
    %253 = vector.load %arg21[%c0_126, %c0_127, %c0_128] : memref<2x16x64xf32, #tpu.memory_space<vmem>>, vector<2x16x64xf32>
    %254 = arith.mulf %252, %253 : vector<2x16x64xf32>
    %cst_129 = arith.constant 0.000000e+00 : f32
    %255 = vector.broadcast %cst_129 : f32 to vector<2x16x4xf32>
    %256 = tpu.concatenate %255, %254, %255 in 2 : vector<2x16x4xf32>, vector<2x16x64xf32>, vector<2x16x4xf32> -> vector<2x16x72xf32>
    %cst_130 = arith.constant 0.000000e+00 : f32
    %257 = vector.broadcast %cst_130 : f32 to vector<2x1x72xf32>
    %258 = tpu.concatenate %257, %256, %257 in 1 : vector<2x1x72xf32>, vector<2x16x72xf32>, vector<2x1x72xf32> -> vector<2x18x72xf32>
    %259 = arith.truncf %258 : vector<2x18x72xf32> to vector<2x18x72xbf16>
    %260 = vector.extract_strided_slice %259 {offsets = [0, 0, 0], sizes = [2, 16, 72], strides = [1, 1, 1]} : vector<2x18x72xbf16> to vector<2x16x72xbf16>
    %261 = vector.extract_strided_slice %259 {offsets = [0, 1, 0], sizes = [2, 16, 72], strides = [1, 1, 1]} : vector<2x18x72xbf16> to vector<2x16x72xbf16>
    %262 = tpu.concatenate %260, %261 in 2 : vector<2x16x72xbf16>, vector<2x16x72xbf16> -> vector<2x16x144xbf16>
    %263 = vector.shape_cast %262 : vector<2x16x144xbf16> to vector<32x144xbf16>
    %c0_131 = arith.constant 0 : index
    %c0_132 = arith.constant 0 : index
    %c0_133 = arith.constant 0 : index
    %264 = vector.load %arg22[%c0_131, %c0_132, %c0_133] : memref<2x144x96xbf16, #tpu.memory_space<vmem>>, vector<1x144x96xbf16>
    %265 = vector.shape_cast %264 : vector<1x144x96xbf16> to vector<144x96xbf16>
    %cst_134 = arith.constant dense<0.000000e+00> : vector<32x96xf32>
    %266 = tpu.matmul %263, %265, %cst_134 {dimension_numbers = #tpu.dot_dimension_numbers<[1], [0], [0], [1], [0, 0, 1, 1], [], []>} : vector<32x144xbf16>, vector<144x96xbf16>, vector<32x96xf32> -> vector<32x96xf32>
    %267 = vector.extract_strided_slice %259 {offsets = [0, 1, 0], sizes = [2, 16, 72], strides = [1, 1, 1]} : vector<2x18x72xbf16> to vector<2x16x72xbf16>
    %268 = vector.extract_strided_slice %259 {offsets = [0, 2, 0], sizes = [2, 16, 72], strides = [1, 1, 1]} : vector<2x18x72xbf16> to vector<2x16x72xbf16>
    %269 = tpu.concatenate %267, %268 in 2 : vector<2x16x72xbf16>, vector<2x16x72xbf16> -> vector<2x16x144xbf16>
    %270 = vector.shape_cast %269 : vector<2x16x144xbf16> to vector<32x144xbf16>
    %c1_135 = arith.constant 1 : index
    %c0_136 = arith.constant 0 : index
    %c0_137 = arith.constant 0 : index
    %271 = vector.load %arg22[%c1_135, %c0_136, %c0_137] : memref<2x144x96xbf16, #tpu.memory_space<vmem>>, vector<1x144x96xbf16>
    %272 = vector.shape_cast %271 : vector<1x144x96xbf16> to vector<144x96xbf16>
    %cst_138 = arith.constant dense<0.000000e+00> : vector<32x96xf32>
    %273 = tpu.matmul %270, %272, %cst_138 {dimension_numbers = #tpu.dot_dimension_numbers<[1], [0], [0], [1], [0, 0, 1, 1], [], []>} : vector<32x144xbf16>, vector<144x96xbf16>, vector<32x96xf32> -> vector<32x96xf32>
    %cst_139 = arith.constant dense<0.000000e+00> : vector<96xf32>
    %274 = vector.multi_reduction <add>, %266, %cst_139 [0] : vector<32x96xf32> to vector<96xf32>
    %275 = vector.shape_cast %274 : vector<96xf32> to vector<1x96xf32>
    %cst_140 = arith.constant dense<0.000000e+00> : vector<96xf32>
    %276 = vector.multi_reduction <add>, %273, %cst_140 [0] : vector<32x96xf32> to vector<96xf32>
    %277 = vector.shape_cast %276 : vector<96xf32> to vector<1x96xf32>
    %278 = arith.addf %275, %277 : vector<1x96xf32>
    %279 = arith.mulf %266, %266 : vector<32x96xf32>
    %cst_141 = arith.constant dense<0.000000e+00> : vector<96xf32>
    %280 = vector.multi_reduction <add>, %279, %cst_141 [0] : vector<32x96xf32> to vector<96xf32>
    %281 = vector.shape_cast %280 : vector<96xf32> to vector<1x96xf32>
    %282 = arith.mulf %273, %273 : vector<32x96xf32>
    %cst_142 = arith.constant dense<0.000000e+00> : vector<96xf32>
    %283 = vector.multi_reduction <add>, %282, %cst_142 [0] : vector<32x96xf32> to vector<96xf32>
    %284 = vector.shape_cast %283 : vector<96xf32> to vector<1x96xf32>
    %285 = arith.addf %281, %284 : vector<1x96xf32>
    %c0_143 = arith.constant 0 : index
    %c0_144 = arith.constant 0 : index
    %286 = vector.load %arg25[%c0_143, %c0_144] : memref<96x3xf32, #tpu.memory_space<vmem>>, vector<96x3xf32>
    %cst_145 = arith.constant dense<0.000000e+00> : vector<1x3xf32>
    %287 = tpu.matmul %278, %286, %cst_145 {dimension_numbers = #tpu.dot_dimension_numbers<[1], [0], [0], [1], [0, 0, 1, 1], [], []>} : vector<1x96xf32>, vector<96x3xf32>, vector<1x3xf32> -> vector<1x3xf32>
    %c0_146 = arith.constant 0 : index
    %c0_147 = arith.constant 0 : index
    %288 = vector.load %arg25[%c0_146, %c0_147] : memref<96x3xf32, #tpu.memory_space<vmem>>, vector<96x3xf32>
    %cst_148 = arith.constant dense<0.000000e+00> : vector<1x3xf32>
    %289 = tpu.matmul %285, %288, %cst_148 {dimension_numbers = #tpu.dot_dimension_numbers<[1], [0], [0], [1], [0, 0, 1, 1], [], []>} : vector<1x96xf32>, vector<96x3xf32>, vector<1x3xf32> -> vector<1x3xf32>
    %cst_149 = arith.constant 2.048000e+03 : f32
    %290 = vector.broadcast %cst_149 : f32 to vector<1x3xf32>
    %291 = arith.divf %287, %290 : vector<1x3xf32>
    %cst_150 = arith.constant 2.048000e+03 : f32
    %292 = vector.broadcast %cst_150 : f32 to vector<1x3xf32>
    %293 = arith.divf %289, %292 : vector<1x3xf32>
    %294 = arith.mulf %291, %291 : vector<1x3xf32>
    %295 = arith.subf %293, %294 : vector<1x3xf32>
    %cst_151 = arith.constant 0.000000e+00 : f32
    %296 = vector.broadcast %cst_151 : f32 to vector<1x3xf32>
    %297 = arith.maximumf %295, %296 : vector<1x3xf32>
    %c0_152 = arith.constant 0 : index
    %c0_153 = arith.constant 0 : index
    %298 = vector.load %arg23[%c0_152, %c0_153] : memref<1x3xf32, #tpu.memory_space<vmem>>, vector<1x3xf32>
    %cst_154 = arith.constant 9.99999974E-6 : f32
    %299 = vector.broadcast %cst_154 : f32 to vector<1x3xf32>
    %300 = arith.addf %297, %299 : vector<1x3xf32>
    %301 = math.rsqrt %300 : vector<1x3xf32>
    %302 = arith.mulf %298, %301 : vector<1x3xf32>
    %c0_155 = arith.constant 0 : index
    %c0_156 = arith.constant 0 : index
    %303 = vector.load %arg24[%c0_155, %c0_156] : memref<1x3xf32, #tpu.memory_space<vmem>>, vector<1x3xf32>
    %304 = arith.mulf %291, %302 : vector<1x3xf32>
    %305 = arith.subf %303, %304 : vector<1x3xf32>
    %c0_157 = arith.constant 0 : index
    %c0_158 = arith.constant 0 : index
    %306 = vector.load %arg26[%c0_157, %c0_158] : memref<3x96xf32, #tpu.memory_space<vmem>>, vector<3x96xf32>
    %cst_159 = arith.constant dense<0.000000e+00> : vector<1x96xf32>
    %307 = tpu.matmul %302, %306, %cst_159 {dimension_numbers = #tpu.dot_dimension_numbers<[1], [0], [0], [1], [0, 0, 1, 1], [], []>} : vector<1x3xf32>, vector<3x96xf32>, vector<1x96xf32> -> vector<1x96xf32>
    %c0_160 = arith.constant 0 : index
    %c0_161 = arith.constant 0 : index
    %308 = vector.load %arg26[%c0_160, %c0_161] : memref<3x96xf32, #tpu.memory_space<vmem>>, vector<3x96xf32>
    %cst_162 = arith.constant dense<0.000000e+00> : vector<1x96xf32>
    %309 = tpu.matmul %305, %308, %cst_162 {dimension_numbers = #tpu.dot_dimension_numbers<[1], [0], [0], [1], [0, 0, 1, 1], [], []>} : vector<1x3xf32>, vector<3x96xf32>, vector<1x96xf32> -> vector<1x96xf32>
    %310 = vector.broadcast %307 : vector<1x96xf32> to vector<32x96xf32>
    %311 = arith.mulf %266, %310 : vector<32x96xf32>
    %312 = vector.broadcast %309 : vector<1x96xf32> to vector<32x96xf32>
    %313 = arith.addf %311, %312 : vector<32x96xf32>
    %314 = vector.broadcast %307 : vector<1x96xf32> to vector<32x96xf32>
    %315 = arith.mulf %273, %314 : vector<32x96xf32>
    %316 = vector.broadcast %309 : vector<1x96xf32> to vector<32x96xf32>
    %317 = arith.addf %315, %316 : vector<32x96xf32>
    %cst_163 = arith.constant 0.000000e+00 : f32
    %318 = vector.broadcast %cst_163 : f32 to vector<32x96xf32>
    %319 = arith.maximumf %313, %318 : vector<32x96xf32>
    %cst_164 = arith.constant 0.000000e+00 : f32
    %320 = vector.broadcast %cst_164 : f32 to vector<32x96xf32>
    %321 = arith.maximumf %317, %320 : vector<32x96xf32>
    %322 = vector.shape_cast %319 : vector<32x96xf32> to vector<2x16x96xf32>
    %323 = vector.shape_cast %321 : vector<32x96xf32> to vector<2x16x96xf32>
    %324 = vector.shape_cast %322 : vector<2x16x96xf32> to vector<2x16x1x96xf32>
    %325 = vector.shape_cast %323 : vector<2x16x96xf32> to vector<2x16x1x96xf32>
    %326 = tpu.concatenate %324, %325 in 2 : vector<2x16x1x96xf32>, vector<2x16x1x96xf32> -> vector<2x16x2x96xf32>
    %327 = vector.shape_cast %326 : vector<2x16x2x96xf32> to vector<2x32x96xf32>
    %c0_165 = arith.constant 0 : index
    %c0_166 = arith.constant 0 : index
    %c0_167 = arith.constant 0 : index
    %328 = vector.load %arg27[%c0_165, %c0_166, %c0_167] : memref<2x32x96xf32, #tpu.memory_space<vmem>>, vector<2x32x96xf32>
    tpu.vector_store %arg27[%c0_165, %c0_166, %c0_167], %327 {strides = array<i32>} : memref<2x32x96xf32, #tpu.memory_space<vmem>>, vector<2x32x96xf32>,
    return
  }
}

</mosaic_0001>

<bundles_post_ra>
// kernel: tpu_custom_call.1
= control target key start
LH: loop header
LB: loop body
LE: loop exit
PB: predicated region body
PF: predicated region fallthrough
CT: control target
= control target key end

     0   :  { %s7560_s0 = inlined_call_operand.vmem [shape: f32[2,16], index: 0, kind: input, shape index: {}]   ;;  %s7561_s1 = inlined_call_operand.vmem [shape: f32[16,32], index: 1, kind: input, shape index: {}]   ;;  %s7562_s2 = inlined_call_operand.vmem [shape: f32[1,32], index: 2, kind: input, shape index: {}]   ;;  %s7563_s3 = inlined_call_operand.vmem [shape: f32[2,32], index: 3, kind: input, shape index: {}]   ;;  %s7564_s4 = inlined_call_operand.vmem [shape: bf16[2,256,64], index: 4, kind: input, shape index: {}]   ;;  %s7565_s5 = inlined_call_operand.vmem [shape: f32[1,16], index: 5, kind: input, shape index: {}]   ;;  %s7566_s6 = inlined_call_operand.vmem [shape: f32[1,16], index: 6, kind: input, shape index: {}]   ;;  %s7567_s7 = inlined_call_operand.vmem [shape: f32[64,16], index: 7, kind: input, shape index: {}]   ;;  %s7568_s8 = inlined_call_operand.vmem [shape: f32[16,64], index: 8, kind: input, shape index: {}]   ;;  %s7569_s9 = inlined_call_operand.vmem [shape: f32[2,4,64], index: 9, kind: input, shape index: {}]   ;;  %s7570_s10 = inlined_call_operand.vmem [shape: bf16[2,192,64], index: 10, kind: input, shape index: {}]   ;;  %s7571_s11 = inlined_call_operand.vmem [shape: f32[1,8], index: 11, kind: input, shape index: {}]   ;;  %s7572_s12 = inlined_call_operand.vmem [shape: f32[1,8], index: 12, kind: input, shape index: {}]   ;;  %s7573_s13 = inlined_call_operand.vmem [shape: f32[64,8], index: 13, kind: input, shape index: {}]   ;;  %s7574_s14 = inlined_call_operand.vmem [shape: f32[8,64], index: 14, kind: input, shape index: {}]   ;;  %s7575_s15 = inlined_call_operand.vmem [shape: f32[2,8,64], index: 15, kind: input, shape index: {}]   ;;  %s7576_s16 = inlined_call_operand.vmem [shape: bf16[2,160,64], index: 16, kind: input, shape index: {}]   ;;  %s7577_s17 = inlined_call_operand.vmem [shape: f32[1,4], index: 17, kind: input, shape index: {}]   ;;  %s7578_s18 = inlined_call_operand.vmem [shape: f32[1,4], index: 18, kind: input, shape index: {}]   ;;  %s7579_s19 = inlined_call_operand.vmem [shape: f32[64,4], index: 19, kind: input, shape index: {}]   ;;  %s7580_s20 = inlined_call_operand.vmem [shape: f32[4,64], index: 20, kind: input, shape index: {}]   ;;  %s7581_s21 = inlined_call_operand.vmem [shape: f32[2,16,64], index: 21, kind: input, shape index: {}]   ;;  %s7582_s22 = inlined_call_operand.vmem [shape: bf16[2,144,96], index: 22, kind: input, shape index: {}]   ;;  %s7583_s23 = inlined_call_operand.vmem [shape: f32[1,3], index: 23, kind: input, shape index: {}]   ;;  %s7584_s24 = inlined_call_operand.vmem [shape: f32[1,3], index: 24, kind: input, shape index: {}]   ;;  %s7585_s25 = inlined_call_operand.vmem [shape: f32[96,3], index: 25, kind: input, shape index: {}]   ;;  %s7586_s26 = inlined_call_operand.vmem [shape: f32[3,96], index: 26, kind: input, shape index: {}]   ;;  %s7587_s27 = inlined_call_operand.hbm [shape: f32[2,32,96], index: 27, kind: output, shape index: {}]  }
   0x1   :  { %7595 = sst [smem:[#allocation5_spill]] %s7560_s0 }
   0x2   :  { %7596 = sst [smem:[#allocation6_spill]] %s7561_s1 }
   0x3   :  { %7597 = sst [smem:[#allocation7_spill]] %s7562_s2 }
   0x4   :  { %7598 = sst [smem:[#allocation8_spill]] %s7563_s3 }
   0x5   :  { %7599 = sst [smem:[#allocation9_spill]] %s7564_s4 }
   0x6   :  { %7600 = sst [smem:[#allocation10_spill]] %s7565_s5 }
   0x7   :  { %7601 = sst [smem:[#allocation11_spill]] %s7566_s6 }
   0x8   :  { %7602 = sst [smem:[#allocation12_spill]] %s7567_s7 }
   0x9   :  { %7603 = sst [smem:[#allocation13_spill]] %s7568_s8 }
   0xa   :  { %7604 = sst [smem:[#allocation14_spill]] %s7569_s9 }
   0xb   :  { %7605 = sst [smem:[#allocation15_spill]] %s7570_s10 }
   0xc   :  { %7606 = sst [smem:[#allocation16_spill]] %s7571_s11 }
   0xd   :  { %s7607_s8 = sld [smem:[#allocation6_spill]]  ;;  %v5975_v2 = vmov 0.0|0.0   ;;  %vm5976_vm0 = vmmov 0   ;;  %v5977_v4 = vmov 0.0   ;;  %s7608_s0 = sld [smem:[#allocation5_spill]]  ;;  %vm98_vm1 = vcmask 130048  }
   0xe   :  { %5690 = vmatprep.subr.bf16.mxu0 %v5975_v2  ;;  %5475 = vmatprep.mubr.msk.f32.mxu0 %vm5976_vm0, %v5977_v4 }
  0x13   :  { %v89_v0 = vld [vmem:[%s7607_s8] sm:$0xff]  ;;  %v90_v1 = vld [vmem:[%s7607_s8 + $0x8] sm:$0xff] }
  0x14   :  { %v5691_v3 = vpack.c.bf16 %v90_v1, %v89_v0  ;;  %v88_v5 = vld [vmem:[%s7608_s0] sm:$0x3] }
  0x16   :  { %5692 = vmatpush3.bf16.msra.mxu0 %v5691_v3 }
  0x19   :  { %5476 = vmatmul.mubr.msk.f32.vlgmr.msra.gmra.mrb[0].mxu0 %vm98_vm1, %v88_v5 }
  0x1a   :  { %32 = vsyncpa [#allocation3], 0  ;;  %s7609_s1 = sld [smem:[#allocation7_spill]]  ;;  %s7610_s2 = sld [smem:[#allocation8_spill]]  ;;  %v5980_v44 = vmov 1966171168   ;;  %v192_v46 = vlaneseq }
  0x1b   :  { %s7611_s4 = sld [smem:[#allocation9_spill]]  ;;  %s5978_s28 = smov 32   ;;  %v190_v45 = vunpack.c.l.s4 %v5980_v44  ;;  %vm7594_vm2 = vcmask 261120   ;;  %vm183_vm3 = vcmask 523264   ;;  %vm185_vm4 = vcmask 785408  }
  0x1c   :  { %s5979_s7 = smov 64   ;;  %v6248_v49 = vshrl.u32 %v192_v46, 7  ;;  %vm217_vm5 = vcmask 1040384   ;;  %vm218_vm6 = vsmask.f32 256  ;;  %vm231_vm7 = vcmask 1041408  }
  0x1d   :  { %v191_v48 = vunpack.c.0.s8 %v190_v45  ;;  %vm232_vm8 = vsmask.f32 1280  ;;  %vm219_vm9 = vmand %vm217_vm5, %vm218_vm6  ;;  %vm491_vm10 = vsmask.f32 1284  ;;  %vm493_vm13 = vsmask.f32 2312 }
  0x1e   :  { %v6258_v57 = vsub.s32 0, %v6248_v49  ;;  %vm233_vm11 = vmand %vm231_vm7, %vm232_vm8  ;;  %vm495_vm15 = vsmask.f32 3340  ;;  %vm497_vm7 = vsmask.f32 4368  ;;  %s7612_s6 = sld [smem:[#allocation12_spill]] }
  0x1f   :  { %v6252_v52 = vsub.s32 %v191_v48, %v6248_v49  ;;  %vm492_vm12 = vmor %vm218_vm6, %vm491_vm10  ;;  %vm499_vm10 = vsmask.f32 5396  ;;  %s7614_s9 = sld [smem:[#allocation10_spill]]  ;;  %s7615_s0 = sld [smem:[#allocation11_spill]] }
  0x20   :  { %v5095_v6 = vld [vmem:[%s7609_s1] ss:$0 sm:$0xff]  ;;  %vm494_vm14 = vmor %vm492_vm12, %vm493_vm13  ;;  %vm501_vm12 = vsmask.f32 6424  ;;  %s5982_s11 = smov 16   ;;  %s5984_s8 = smov 96  }
  0x21   :  { %v172_v8 = vld [vmem:[%s7610_s2] sm:$0x3]  ;;  %v5845_v14 = vld [vmem:[%s7611_s4 + $0x48] sm:$0xff]   ;;  %v5849_v18 = vld [vmem:[%s7611_s4 + $0x50] sm:$0xff]   ;;  %s7613_s2 = sld [smem:[#allocation13_spill]]  ;;  %s5986_s5 = smov 80  }
  0x22   :  { %v5843_v9 = vld [vmem:[%s7611_s4 + $0x40] sm:$0xff]   ;;  %v5846_v15 = vld [vmem:[%s7611_s4 + $0x8] sm:$0xff]   ;;  %v5850_v19 = vld [vmem:[%s7611_s4 + $0x10] sm:$0xff]  }
  0x23   :  { %v5844_v12 = vld [vmem:[%s7611_s4] sm:$0xff]   ;;  %5329 = vmatprep.subr.bf16.mxu1 %v5843_v9  ;;  %v5851_v20 = vld [vmem:[%s7611_s4 + $0xc8] sm:$0xff]   ;;  %v5853_v22 = vld [vmem:[%s7611_s4 + $0x58] sm:$0xff]  }
  0x24   :  { %5330 = vmatpush3.bf16.msra.mxu1 %v5844_v12  ;;  %v5847_v16 = vld [vmem:[%s7611_s4 + $0xc0] sm:$0xff]   ;;  %v5852_v21 = vld [vmem:[%s7611_s4 + $0x88] sm:$0xff]   ;;  %v5854_v23 = vld [vmem:[%s7611_s4 + $0x18] sm:$0xff]  }
  0x25   :  { %5331 = vmatprep.subr.bf16.mxu1 %v5845_v14  ;;  %v5848_v17 = vld [vmem:[%s7611_s4 + $0x80] sm:$0xff]   ;;  %5351 = vmatprep.subr.bf16.mxu0 %v5847_v16  ;;  %v5855_v24 = vld [vmem:[%s7611_s4 + $0xd0] sm:$0xff]   ;;  %v5859_v27 = vld [vmem:[%s7611_s4 + $0xd8] sm:$0xff]  }
  0x26   :  { %5352 = vmatpush3.bf16.msra.mxu0 %v5848_v17  ;;  %v5856_v25 = vld [vmem:[%s7611_s4 + $0x90] sm:$0xff]   ;;  %v5857_v26 = vld [vmem:[%s7611_s4 + $0x60] sm:$0xff]   ;;  %v5860_v29 = vld [vmem:[%s7611_s4 + $0x98] sm:$0xff]  }
  0x27   :  { %5353 = vmatprep.subr.bf16.mxu0 %v5851_v20  ;;  %v5858_v28 = vld [vmem:[%s7611_s4 + $0x20] sm:$0xff]   ;;  %v5861_v30 = vld [vmem:[%s7611_s4 + $0x68] sm:$0xff]   ;;  %v5865_v34 = vld [vmem:[%s7611_s4 + $0x70] sm:$0xff]  }
  0x28   :  { %5332 = vmatpush3.bf16.msra.mxu1 %v5846_v15  ;;  %v5863_v31 = vld [vmem:[%s7611_s4 + $0xe0] sm:$0xff]   ;;  %v5862_v32 = vld [vmem:[%s7611_s4 + $0x28] sm:$0xff]   ;;  %v5866_v36 = vld [vmem:[%s7611_s4 + $0x30] sm:$0xff]  }
  0x29   :  { %5333 = vmatprep.subr.bf16.mxu1 %v5849_v18  ;;  %v5864_v33 = vld [vmem:[%s7611_s4 + $0xa0] sm:$0xff]   ;;  %v5867_v35 = vld [vmem:[%s7611_s4 + $0xe8] sm:$0xff]   ;;  %v5869_v38 = vld [vmem:[%s7611_s4 + $0x78] sm:$0xff]  }
  0x2a   :  { %5354 = vmatpush3.bf16.msra.mxu0 %v5852_v21  ;;  %v5868_v37 = vld [vmem:[%s7611_s4 + $0xa8] sm:$0xff]   ;;  %v5871_v39 = vld [vmem:[%s7611_s4 + $0xf0] sm:$0xff]   ;;  %v5870_v40 = vld [vmem:[%s7611_s4 + $0x38] sm:$0xff]  }
  0x2b   :  { %5355 = vmatprep.subr.bf16.mxu0 %v5855_v24  ;;  %v5872_v41 = vld [vmem:[%s7611_s4 + $0xb0] sm:$0xff]   ;;  %v5873_v42 = vld [vmem:[%s7611_s4 + $0xf8] sm:$0xff]   ;;  %v754_v48 = vld [vmem:[%s7612_s6 + $0x20] sm:$0xff] }
  0x2c   :  { %5334 = vmatpush3.bf16.msra.mxu1 %v5850_v19  ;;  %v5874_v43 = vld [vmem:[%s7611_s4 + $0xb8] sm:$0xff]   ;;  %v752_v45 = vld [vmem:[%s7612_s6 + $0x10] sm:$0xff]  ;;  %s7616_s4 = sld [smem:[#allocation14_spill]] }
  0x2d   :  { %5335 = vmatprep.subr.bf16.mxu1 %v5853_v22  ;;  %v753_v46 = vld [vmem:[%s7612_s6 + $0x18] sm:$0xff] }
  0x2e   :  { %5356 = vmatpush3.bf16.msra.mxu0 %v5856_v25 }
  0x2f   :  { %5357 = vmatprep.subr.bf16.mxu0 %v5859_v27 }
  0x30   :  { %5336 = vmatpush3.bf16.msra.mxu1 %v5854_v23 }
  0x31   :  { %5337 = vmatprep.subr.bf16.mxu1 %v5857_v26 }
  0x32   :  { %5358 = vmatpush3.bf16.msra.mxu0 %v5860_v29 }
  0x33   :  { %5359 = vmatprep.subr.bf16.mxu0 %v5863_v31 }
  0x34   :  { %5338 = vmatpush3.bf16.msra.mxu1 %v5858_v28 }
  0x35   :  { %5339 = vmatprep.subr.bf16.mxu1 %v5861_v30 }
  0x36   :  { %5360 = vmatpush3.bf16.msra.mxu0 %v5864_v33 }
  0x37   :  { %5361 = vmatprep.subr.bf16.mxu0 %v5867_v35 }
  0x38   :  { %5340 = vmatpush3.bf16.msra.mxu1 %v5862_v32 }
  0x39   :  { %5341 = vmatprep.subr.bf16.mxu1 %v5865_v34 }
  0x3a   :  { %5362 = vmatpush3.bf16.msra.mxu0 %v5868_v37 }
  0x3b   :  { %5363 = vmatprep.subr.bf16.mxu0 %v5871_v39 }
  0x3c   :  { %5342 = vmatpush3.bf16.msra.mxu1 %v5866_v36 }
  0x3d   :  { %5343 = vmatprep.subr.bf16.mxu1 %v5869_v38 }
  0x3e   :  { %5364 = vmatpush3.bf16.msra.mxu0 %v5872_v41 }
  0x3f   :  { %5365 = vmatprep.subr.bf16.mxu0 %v5873_v42  ;;  %v750_v42 = vld [vmem:[%s7612_s6] sm:$0xff] }
  0x40   :  { %5344 = vmatpush3.bf16.msra.mxu1 %v5870_v40 }
  0x41   :  { %5693 = vmatprep.subr.bf16.mxu1 %v5975_v2 }
  0x42   :  { %5366 = vmatpush3.bf16.msra.mxu0 %v5874_v43  ;;  %v751_v43 = vld [vmem:[%s7612_s6 + $0x8] sm:$0xff] }
  0x43   :  { %5705 = vmatprep.subr.bf16.mxu0 %v5975_v2  ;;  %v5694_v44 = vpack.c.bf16 %v751_v43, %v750_v42 }
  0xec   :  { %v168_v7 = vpop.f32.mrb[0].mxu0 }
  0xed   :  { %v169_v10 = vadd.f32 %v5095_v6, %v168_v7  ;;  %v5477_v11 = vpop.f32.mrb[1].mxu0 }
  0xef   :  { %v173_v13 = vmul.f32 %v172_v8, %v169_v10 }
  0xf1   :  { %175 = vrot.lane.b32.xlu0 %v173_v13, %s5978_s28 }
  0xf5   :  { %178 = vrot.lane.b32.xlu0 %v173_v13, %s5979_s7  ;;  %s7617_s7 = sld [smem:[#allocation15_spill]] }
 0x163   :  { %v176_v47 = vpop.permute.xlu0 %175 }
 0x164   :  { %v182_v50 = vsel %vm7594_vm2, 0.0, %v176_v47  ;;  %vm496_vm2 = vmor %vm494_vm14, %vm495_vm15  ;;  %v5697_v47 = vpack.c.bf16 %v753_v46, %v752_v45  ;;  %vm717_vm14 = vcmask 519168  }
 0x165   :  { %vm498_vm6 = vmor %vm496_vm2, %vm497_vm7 }
 0x167   :  { %v179_v51 = vpop.permute.xlu0 %178 }
 0x168   :  { %v184_v53 = vsel %vm183_vm3, %v182_v50, %v179_v51  ;;  %v755_v50 = vld [vmem:[%s7612_s6 + $0x28] sm:$0xff] }
 0x169   :  { %v186_v54 = vsel %vm185_vm4, %v184_v53, 0.0  ;;  %v5700_v51 = vpack.c.bf16 %v755_v50, %v754_v48  ;;  %v756_v53 = vld [vmem:[%s7612_s6 + $0x30] sm:$0xff] }
 0x16a   :  { %v187_v55 = vpack.c.bf16 %v186_v54, %v186_v54  ;;  %v757_v54 = vld [vmem:[%s7612_s6 + $0x38] sm:$0xff] }
 0x16c   :  { %v195_v56 = vrot.slane %v187_v55, %v6252_v52  ;;  %v5703_v55 = vpack.c.bf16 %v757_v54, %v756_v53 }
 0x16e   :  { %v202_v58 = vrot.slane %v195_v56, %v6252_v52 }
 0x170   :  { %v204_v59 = vunpack.i.h.s16 %v202_v58  ;;  %v5097_v60 = vpack.i.b16 %v202_v58, %v202_v58 }
 0x172   :  { %v206_v61 = vpack.i.b16 %v204_v59, %v204_v59  ;;  %v210_v62 = vrot.slane %v5097_v60, %v6258_v57 }
 0x174   :  { %v214_v63 = vrot.slane %v206_v61, %v6258_v57  ;;  %v220_v0 = vsel %vm219_vm9, 0, %v210_v62 }
 0x175   :  { %v225_v1 = vsel %vm217_vm5, %v220_v0, %v210_v62 }
 0x176   :  { %v221_v3 = vsel %vm219_vm9, 0, %v214_v63  ;;  %v234_v5 = vsel %vm233_vm11, %v225_v1, 0  ;;  %vm500_vm9 = vmor %vm498_vm6, %vm499_vm10  ;;  %vm1217_vm6 = vcmask 654336   ;;  %vm1228_vm10 = vcmask 1044480  }
 0x177   :  { %v229_v6 = vsel %vm217_vm5, %v221_v3, %v214_v63  ;;  %v239_v7 = vshll.u32 %v234_v5, 16  ;;  %v237_v9 = vshrl.u32 %v234_v5, 16  ;;  %vm502_vm13 = vmor %vm500_vm9, %vm501_vm12  ;;  %vm1424_vm9 = vsmask.f32 3336 }
 0x178   :  { %v235_v8 = vsel %vm233_vm11, %v229_v6, 0  ;;  %vm503_vm11 = vsmask.f32 7452  ;;  %vm1425_vm12 = vmor %vm232_vm8, %vm1424_vm9  ;;  %vm7619_vm9 = vcmask 261120  }
 0x179   :  { %v241_v10 = vrot.slane %v239_v7, 1  ;;  %v246_v11 = vshll.u32 %v235_v8, 16  ;;  %v244_v13 = vshrl.u32 %v235_v8, 16  ;;  %vm504_vm2 = vmor %vm502_vm13, %vm503_vm11  ;;  %vm1426_vm11 = vsmask.f32 5392 }
 0x17a   :  { %vm1427_vm13 = vmor %vm1425_vm12, %vm1426_vm11  ;;  %vm2411_vm12 = vsmask.f32 3328  ;;  %vm2412_vm11 = vsmask.f32 7440 }
 0x17b   :  { %v242_v12 = vor.u32 %v241_v10, %v237_v9  ;;  %v248_v14 = vrot.slane %v246_v11, 1 }
 0x17d   :  { %v249_v15 = vor.u32 %v248_v14, %v244_v13  ;;  %v252_v16 = vcombine.low %v234_v5, %v242_v12 }
 0x17f   :  { %v259_v17 = vrot.slane %v252_v16, %v6252_v52  ;;  %v267_v18 = vcombine.low %v235_v8, %v249_v15 }
 0x181   :  { %v274_v19 = vrot.slane %v267_v18, %v6252_v52  ;;  %v475_v20 = vcombine.high %v259_v17, %v259_v17  ;;  %v266_v21 = vrot.slane %v259_v17, %v6252_v52 }
 0x183   :  { %v281_v22 = vrot.slane %v274_v19, %v6252_v52  ;;  %v482_v23 = vrot.slane %v475_v20, %v6252_v52  ;;  %v483_v24 = vcombine.high %v274_v19, %v274_v19  ;;  %v506_v29 = vshrl.u32 %v266_v21, 16 }
 0x185   :  { %v314_v25 = vcombine.low %v266_v21, %v281_v22  ;;  %v490_v26 = vrot.slane %v483_v24, %v6252_v52  ;;  %v511_v27 = vshll.u32 %v482_v23, 16  ;;  %v515_v30 = vshrl.u32 %v281_v22, 16 }
 0x187   :  { %v321_v28 = vrot.slane %v314_v25, %v6252_v52  ;;  %v520_v31 = vshll.u32 %v490_v26, 16  ;;  %v513_v33 = vsel %vm504_vm2, %v506_v29, %v511_v27 }
 0x189   :  { %v322_v32 = vcombine.high %v321_v28, %v321_v28  ;;  %v522_v34 = vsel %vm504_vm2, %v515_v30, %v520_v31  ;;  %v329_v37 = vrot.slane %v321_v28, %v6252_v52  ;;  %vm1428_vm2 = vsmask.f32 7448 }
 0x18a   :  { %v556_v35 = vcombine.low %v513_v33, %v522_v34  ;;  %vm1429_vm8 = vmor %vm1427_vm13, %vm1428_vm2  ;;  %vm2788_vm2 = vcmask 1043456  }
 0x18b   :  { %v336_v36 = vrot.slane %v322_v32, %v6252_v52  ;;  %vm7620_vm13 = vmmov %vm7619_vm9 }
 0x18c   :  { %v563_v38 = vrot.slane %v556_v35, %v6252_v52 }
 0x18d   :  { %467 = vmatprep.mubr.bf16.mxu1 %v336_v36 }
 0x18e   :  { %468 = vmatmul.mubr.bf16.vlgmr.msra.gmra.mrb[0].mxu1 %v329_v37  ;;  %v564_v39 = vcombine.high %v563_v38, %v563_v38  ;;  %v571_v41 = vrot.slane %v563_v38, %v6252_v52  ;;  %v917_v37 = vld [vmem:[%s7613_s2] sm:$0xff]  ;;  %v918_v38 = vld [vmem:[%s7613_s2 + $0x8] sm:$0xff] }
 0x18f   :  { %5494 = vmatprep.mubr.msk.f32.mxu1 %vm5976_vm0, %v5977_v4  ;;  %5695 = vmatpush3.bf16.msra.mxu1 %v5694_v44 }
 0x190   :  { %v578_v40 = vrot.slane %v564_v39, %v6252_v52  ;;  %5696 = vmatprep.subr.bf16.mxu1 %v5975_v2  ;;  %v5718_v39 = vpack.c.bf16 %v918_v38, %v917_v37 }
 0x192   :  { %709 = vmatprep.mubr.bf16.mxu0 %v578_v40 }
 0x193   :  { %710 = vmatmul.mubr.bf16.vlgmr.msra.gmra.mrb[4].mxu0 %v571_v41  ;;  %5698 = vmatpush3.bf16.msra.mxu1 %v5697_v47 }
 0x194   :  { %5513 = vmatprep.mubr.msk.f32.mxu0 %vm5976_vm0, %v5977_v4  ;;  %5707 = vmatpush3.bf16.msra.mxu0 %v5694_v44 }
 0x195   :  { %5708 = vmatprep.subr.bf16.mxu0 %v5975_v2  ;;  %5699 = vmatprep.subr.bf16.mxu1 %v5975_v2 }
 0x197   :  { %5701 = vmatpush3.bf16.msra.mxu1 %v5700_v51 }
 0x198   :  { %5710 = vmatpush3.bf16.msra.mxu0 %v5697_v47  ;;  %5702 = vmatprep.subr.bf16.mxu1 %v5975_v2 }
 0x199   :  { %5711 = vmatprep.subr.bf16.mxu0 %v5975_v2 }
 0x19b   :  { %5704 = vmatpush3.bf16.msra.mxu1 %v5703_v55 }
 0x19c   :  { %5713 = vmatpush3.bf16.msra.mxu0 %v5700_v51  ;;  %5717 = vmatprep.subr.bf16.mxu1 %v5975_v2  ;;  %v910_v51 = vld [vmem:[%s7614_s9] sm:$0x1] }
 0x19d   :  { %5714 = vmatprep.subr.bf16.mxu0 %v5975_v2 }
 0x1a0   :  { %5716 = vmatpush3.bf16.msra.mxu0 %v5703_v55  ;;  %v914_v55 = vld [vmem:[%s7615_s0] sm:$0x1] }
 0x1a1   :  { %5720 = vmatprep.subr.bf16.mxu0 %v5975_v2 }
 0x261   :  { %v5345_v56 = vpop.f32.mrb[0].mxu1 }
 0x262   :  { %v5346_v58 = vpop.f32.mrb[1].mxu1 }
 0x263   :  { %v6315_v59 = vadd.f32 %v5346_v58, %v5345_v56  ;;  %v5348_v60 = vpop.f32.mrb[2].mxu1 }
 0x264   :  { %v5349_v61 = vpop.f32.mrb[3].mxu1 }
 0x265   :  { %v718_v62 = vsel %vm717_vm14, %v6315_v59, 0.0  ;;  %v733_v63 = vmul.f32 %v6315_v59, %v6315_v59 }
 0x266   :  { %v719_v0 = vrot.slane %v718_v62, 4  ;;  %v5367_v1 = vpop.f32.mrb[4].mxu0 }
 0x267   :  { %v734_v3 = vsel %vm717_vm14, %v733_v63, 0.0  ;;  %v5368_v5 = vpop.f32.mrb[5].mxu0 }
 0x268   :  { %v720_v6 = vadd.f32 %v719_v0, %v718_v62  ;;  %v735_v7 = vrot.slane %v734_v3, 4  ;;  %v5369_v8 = vadd.f32 %v5368_v5, %v5367_v1  ;;  %v5370_v9 = vpop.f32.mrb[6].mxu0 }
 0x269   :  { %v5371_v10 = vpop.f32.mrb[7].mxu0 }
 0x26a   :  { %v721_v11 = vrot.slane %v720_v6, 2  ;;  %v736_v12 = vadd.f32 %v735_v7, %v734_v3  ;;  %v725_v13 = vsel %vm717_vm14, %v5369_v8, 0.0  ;;  %v741_v14 = vmul.f32 %v5369_v8, %v5369_v8 }
 0x26b   :  { %v726_v15 = vrot.slane %v725_v13, 4 }
 0x26c   :  { %v737_v16 = vrot.slane %v736_v12, 2  ;;  %v742_v17 = vsel %vm717_vm14, %v741_v14, 0.0  ;;  %v722_v18 = vadd.f32 %v721_v11, %v720_v6  ;;  %vm1808_vm14 = vcmask 64512  }
 0x26d   :  { %v727_v19 = vadd.f32 %v726_v15, %v725_v13  ;;  %v743_v20 = vrot.slane %v742_v17, 4 }
 0x26e   :  { %v738_v21 = vadd.f32 %v737_v16, %v736_v12  ;;  %v723_v24 = vrot.slane %v722_v18, 1 }
 0x26f   :  { %v728_v22 = vrot.slane %v727_v19, 2  ;;  %v744_v23 = vadd.f32 %v743_v20, %v742_v17  ;;  %v5168_v17 = vld.sshfl [vmem:[%s7616_s4] sm:$0x33 pattern:$0x76325410] }
 0x270   :  { %v739_v27 = vrot.slane %v738_v21, 1  ;;  %v724_v30 = vadd.f32 %v723_v24, %v722_v18  ;;  %v5981_v18 = vmov 1983009808  }
 0x271   :  { %v729_v25 = vadd.f32 %v728_v22, %v727_v19  ;;  %v745_v26 = vrot.slane %v744_v23, 2  ;;  %v1195_v19 = vunpack.c.l.s4 %v5981_v18 }
 0x272   :  { %v740_v33 = vadd.f32 %v739_v27, %v738_v21 }
 0x273   :  { %v730_v28 = vrot.slane %v729_v25, 1  ;;  %v746_v29 = vadd.f32 %v745_v26, %v744_v23  ;;  %v5169_v23 = vld.sshfl [vmem:[%s7616_s4 + $0x4] sm:$0x33 pattern:$0x76325410] }
 0x275   :  { %v731_v31 = vadd.f32 %v730_v28, %v729_v25  ;;  %v747_v32 = vrot.slane %v746_v29, 1  ;;  %v1172_v25 = vcombine.high %v5168_v17, %v5168_v17 }
 0x277   :  { %v748_v34 = vadd.f32 %v747_v32, %v746_v29  ;;  %v732_v35 = vadd.f32 %v731_v31, %v724_v30  ;;  %v1180_v31 = vcombine.high %v5169_v23, %v5169_v23  ;;  %v1196_v32 = vunpack.c.0.s8 %v1195_v19 }
 0x279   :  { %5495 = vmatmul.mubr.msk.f32.vlgmr.msra.gmra.mrb[4].mxu1 %vm183_vm3, %v732_v35  ;;  %v749_v36 = vadd.f32 %v748_v34, %v740_v33 }
 0x27a   :  { %5520 = vmatprep.mubr.msk.f32.mxu1 %vm5976_vm0, %v5977_v4  ;;  %5719 = vmatpush3.bf16.msra.mxu1 %v5718_v39 }
 0x27b   :  { %5514 = vmatmul.mubr.msk.f32.vlgmr.msra.gmra.mrb[2].mxu0 %vm183_vm3, %v749_v36 }
 0x27c   :  { %5527 = vmatprep.mubr.msk.f32.mxu0 %vm5976_vm0, %v5977_v4  ;;  %5722 = vmatpush3.bf16.msra.mxu0 %v5718_v39 }
 0x34c   :  { %v827_v40 = vpop.f32.mrb[4].mxu1 }
 0x34d   :  { %v905_v41 = vmul.f32 0.03125, %v827_v40  ;;  %v5496_v42 = vpop.f32.mrb[5].mxu1 }
 0x34e   :  { %v900_v43 = vpop.f32.mrb[2].mxu0 }
 0x34f   :  { %v907_v44 = vmul.f32 %v905_v41, %v905_v41  ;;  %v906_v45 = vmul.f32 0.03125, %v900_v43  ;;  %v5515_v46 = vpop.f32.mrb[3].mxu0  ;;  %v6368_v43 = vsub.s32 %v1196_v32, %v6248_v49  ;;  %v5878_v49 = vld [vmem:[%s7617_s7 + $0x60] sm:$0xff]  }
 0x351   :  { %v908_v47 = vsub.f32 %v906_v45, %v907_v44 }
 0x353   :  { %v909_v48 = vmax.f32 %v908_v47, 0.0 }
 0x355   :  { %v911_v50 = vadd.f32 1e-05, %v909_v48  ;;  %v5875_v48 = vld [vmem:[%s7617_s7] sm:$0xff]  }
 0x357   :  { %5943 = vrsqrt.f32 %v911_v50  ;;  %v5983_v50 = vmov 0  }
 0x358   :  { %1382 = vmatprep.subr.bf16.mxu1 %v5983_v50  ;;  %1568 = vmatprep.subr.bf16.mxu0 %v5983_v50 }
 0x361   :  { %v5944_v53 = vpop.eup %5943 }
 0x362   :  { %v913_v54 = vmul.f32 %v5944_v53, %v910_v51  ;;  %v5876_v51 = vld [vmem:[%s7617_s7 + $0x8] sm:$0xff]  }
 0x363   :  { %v5880_v53 = vld [vmem:[%s7617_s7 + $0x68] sm:$0xff]  }
 0x364   :  { %5521 = vmatmul.mubr.msk.f32.vlgmr.msra.gmra.mrb[6].mxu1 %vm98_vm1, %v913_v54  ;;  %v915_v56 = vmul.f32 %v913_v54, %v905_v41  ;;  %v5877_v54 = vld [vmem:[%s7617_s7 + $0x10] sm:$0xff]  }
 0x365   :  { %1383 = vmatpush1.bf16.msra.mxu1 %v5875_v48 }
 0x366   :  { %v916_v58 = vsub.f32 %v914_v55, %v915_v56  ;;  %1384 = vmatprep.subr.bf16.mxu1 %v5983_v50  ;;  %v5882_v55 = vld [vmem:[%s7617_s7 + $0x70] sm:$0xff]   ;;  %v5879_v56 = vld [vmem:[%s7617_s7 + $0x18] sm:$0xff]  }
 0x368   :  { %5528 = vmatmul.mubr.msk.f32.vlgmr.msra.gmra.mrb[8].mxu0 %vm98_vm1, %v916_v58  ;;  %v5884_v58 = vld [vmem:[%s7617_s7 + $0x78] sm:$0xff]  }
 0x369   :  { %1569 = vmatpush1.bf16.msra.mxu0 %v5878_v49  ;;  %1385 = vmatpush1.bf16.msra.mxu1 %v5876_v51 }
 0x36a   :  { %1570 = vmatprep.subr.bf16.mxu0 %v5983_v50  ;;  %1386 = vmatprep.subr.bf16.mxu1 %v5983_v50 }
 0x36d   :  { %1571 = vmatpush1.bf16.msra.mxu0 %v5880_v53  ;;  %1387 = vmatpush1.bf16.msra.mxu1 %v5877_v54 }
 0x36e   :  { %1572 = vmatprep.subr.bf16.mxu0 %v5983_v50  ;;  %1388 = vmatprep.subr.bf16.mxu1 %v5983_v50 }
 0x371   :  { %1573 = vmatpush1.bf16.msra.mxu0 %v5882_v55  ;;  %1389 = vmatpush1.bf16.msra.mxu1 %v5879_v56 }
 0x372   :  { %1574 = vmatprep.subr.bf16.mxu0 %v5983_v50  ;;  %1390 = vmatprep.subr.bf16.mxu1 %v5983_v50 }
 0x375   :  { %1575 = vmatpush1.bf16.msra.mxu0 %v5884_v58 }
 0x376   :  { %1576 = vmatprep.subr.bf16.mxu0 %v5983_v50 }
 0x437   :  { %v988_v60 = vpop.f32.mrb[6].mxu1 }
 0x438   :  { %v1068_v61 = vrot.slane %v988_v60, %v6258_v57  ;;  %v5522_v62 = vpop.f32.mrb[7].mxu1  ;;  %v5881_v60 = vld [vmem:[%s7617_s7 + $0x20] sm:$0xff]  }
 0x439   :  { %1391 = vmatpush1.bf16.msra.mxu1 %v5881_v60  ;;  %v5883_v62 = vld [vmem:[%s7617_s7 + $0x28] sm:$0xff]  }
 0x43a   :  { %v1069_v0 = vmul.f32 %v6315_v59, %v1068_v61  ;;  %v1075_v1 = vmul.f32 %v5369_v8, %v1068_v61  ;;  %v5886_v61 = vld [vmem:[%s7617_s7 + $0x80] sm:$0xff]   ;;  %1392 = vmatprep.subr.bf16.mxu1 %v5983_v50 }
 0x43b   :  { %v1061_v63 = vpop.f32.mrb[8].mxu0  ;;  %1577 = vmatpush1.bf16.msra.mxu0 %v5886_v61 }
 0x43c   :  { %v1073_v3 = vrot.slane %v1061_v63, %v6258_v57  ;;  %v5529_v5 = vpop.f32.mrb[9].mxu0  ;;  %v5888_v63 = vld [vmem:[%s7617_s7 + $0x88] sm:$0xff]   ;;  %1578 = vmatprep.subr.bf16.mxu0 %v5983_v50 }
 0x43d   :  { %1393 = vmatpush1.bf16.msra.mxu1 %v5883_v62  ;;  %v5889_v5 = vld [vmem:[%s7617_s7 + $0x40] sm:$0xff]  }
 0x43e   :  { %v1074_v6 = vadd.f32 %v1073_v3, %v1069_v0  ;;  %v1076_v7 = vadd.f32 %v1075_v1, %v1073_v3  ;;  %v5885_v0 = vld [vmem:[%s7617_s7 + $0x30] sm:$0xff]   ;;  %1394 = vmatprep.subr.bf16.mxu1 %v5983_v50  ;;  %v5887_v3 = vld [vmem:[%s7617_s7 + $0x38] sm:$0xff]  }
 0x43f   :  { %1579 = vmatpush1.bf16.msra.mxu0 %v5888_v63  ;;  %v5890_v1 = vld [vmem:[%s7617_s7 + $0x90] sm:$0xff]  }
 0x440   :  { %vm1077_vm15 = vcmp.ge.f32.partialorder %v1074_v6, 0.0  ;;  %v1078_v9 = vmul.f32 0.2, %v1074_v6  ;;  %vm1080_vm7 = vcmp.ge.f32.partialorder %v1076_v7, 0.0  ;;  %v1081_v10 = vmul.f32 0.2, %v1076_v7  ;;  %1580 = vmatprep.subr.bf16.mxu0 %v5983_v50 }
 0x441   :  { %1395 = vmatpush1.bf16.msra.mxu1 %v5885_v0 }
 0x442   :  { %v1079_v11 = vsel %vm1077_vm15, %v1074_v6, %v1078_v9  ;;  %v1082_v12 = vsel %vm1080_vm7, %v1076_v7, %v1081_v10  ;;  %1396 = vmatprep.subr.bf16.mxu1 %v5983_v50 }
 0x443   :  { %v1090_v13 = vrot.slane %v1079_v11, %v6252_v52  ;;  %v1119_v14 = vrot.slane %v1082_v12, %v6252_v52  ;;  %1581 = vmatpush1.bf16.msra.mxu0 %v5890_v1 }
 0x444   :  { %1582 = vmatprep.subr.bf16.mxu0 %v5983_v50 }
 0x445   :  { %v1091_v15 = vcombine.high %v1090_v13, %v1090_v13  ;;  %v1098_v16 = vrot.slane %v1090_v13, %v6252_v52  ;;  %v1120_v59 = vcombine.high %v1119_v14, %v1119_v14  ;;  %v1127_v8 = vrot.slane %v1119_v14, %v6252_v52  ;;  %1397 = vmatpush1.bf16.msra.mxu1 %v5887_v3  ;;  %v5891_v14 = vld [vmem:[%s7617_s7 + $0x48] sm:$0xff]  }
 0x446   :  { %1398 = vmatprep.subr.bf16.mxu1 %v5983_v50 }
 0x447   :  { %v1105_v20 = vrot.slane %v1091_v15, %v6252_v52  ;;  %v1134_v21 = vrot.slane %v1120_v59, %v6252_v52  ;;  %v1135_v22 = vcombine.high %v1127_v8, %v1127_v8  ;;  %v1140_v24 = vrot.slane %v1127_v8, %v6258_v57  ;;  %v5892_v59 = vld [vmem:[%s7617_s7 + $0x98] sm:$0xff]  }
 0x448   :  { %v1106_v26 = vcombine.high %v1098_v16, %v1098_v16  ;;  %1583 = vmatpush1.bf16.msra.mxu0 %v5892_v59  ;;  %v1642_v59 = vld [vmem:[%s7573_s13 + $0x10] sm:$0xff] }
 0x449   :  { %v1136_v27 = vcombine.high %v1134_v21, %v1134_v21  ;;  %v1144_v28 = vrot.slane %v1134_v21, %v6258_v57  ;;  %v1148_v29 = vrot.slane %v1135_v22, %v6258_v57  ;;  %v1157_v30 = vsel %vm217_vm5, %v1098_v16, %v1140_v24  ;;  %1399 = vmatpush1.bf16.msra.mxu1 %v5889_v5 }
 0x44a   :  { %v1107_v33 = vcombine.high %v1105_v20, %v1105_v20  ;;  %v1185_v37 = vmul.f32 %v5168_v17, %v1157_v30  ;;  %1400 = vmatprep.subr.bf16.mxu1 %v5983_v50  ;;  %1584 = vmatprep.subr.bf16.mxu0 %v5983_v50 }
 0x44b   :  { %v1152_v34 = vrot.slane %v1136_v27, %v6258_v57  ;;  %v1158_v35 = vsel %vm217_vm5, %v1105_v20, %v1144_v28  ;;  %v1159_v36 = vsel %vm217_vm5, %v1106_v26, %v1148_v29  ;;  %v5893_v20 = vld [vmem:[%s7617_s7 + $0x50] sm:$0xff]   ;;  %v5895_v26 = vld [vmem:[%s7617_s7 + $0x58] sm:$0xff]  }
 0x44c   :  { %v1186_v38 = vmul.f32 %v1172_v25, %v1158_v35  ;;  %v1187_v40 = vmul.f32 %v5169_v23, %v1159_v36  ;;  %v5894_v23 = vld [vmem:[%s7617_s7 + $0xa0] sm:$0xff]   ;;  %v5898_v35 = vld [vmem:[%s7617_s7 + $0xb8] sm:$0xff]  }
 0x44d   :  { %v1160_v39 = vsel %vm217_vm5, %v1107_v33, %v1152_v34  ;;  %1401 = vmatpush1.bf16.msra.mxu1 %v5891_v14  ;;  %1585 = vmatpush1.bf16.msra.mxu0 %v5894_v23  ;;  %v5897_v34 = vld [vmem:[%s7617_s7 + $0xb0] sm:$0xff]   ;;  %v1640_v14 = vld [vmem:[%s7573_s13] sm:$0xff] }
 0x44e   :  { %v1188_v41 = vmul.f32 %v1180_v31, %v1160_v39  ;;  %v1193_v42 = vcombine.low %v1185_v37, %v1186_v38  ;;  %1402 = vmatprep.subr.bf16.mxu1 %v5983_v50  ;;  %1586 = vmatprep.subr.bf16.mxu0 %v5983_v50  ;;  %v5896_v31 = vld [vmem:[%s7617_s7 + $0xa8] sm:$0xff]  }
 0x450   :  { %v1201_v44 = vcombine.low %v1187_v40, %v1188_v41  ;;  %v1200_v45 = vrot.slane %v1193_v42, %v6368_v43 }
 0x451   :  { %1403 = vmatpush1.bf16.msra.mxu1 %v5893_v20  ;;  %1587 = vmatpush1.bf16.msra.mxu0 %v5896_v31 }
 0x452   :  { %v1208_v46 = vrot.slane %v1201_v44, %v6368_v43  ;;  %1404 = vmatprep.subr.bf16.mxu1 %v5983_v50  ;;  %1588 = vmatprep.subr.bf16.mxu0 %v5983_v50 }
 0x454   :  { %v5823_v47 = vpack.i.bf16 %v1208_v46, %v1200_v45 }
 0x455   :  { %1405 = vmatpush1.bf16.msra.mxu1 %v5895_v26  ;;  %1589 = vmatpush1.bf16.msra.mxu0 %v5897_v34 }
 0x456   :  { %5824 = vrot.lane.b32.xlu1 %v5823_v47, %s5982_s11  ;;  %5723 = vmatprep.subr.bf16.mxu1 %v5975_v2 }
 0x457   :  { %1590 = vmatprep.subr.bf16.mxu0 %v5983_v50 }
 0x459   :  { %1591 = vmatpush1.bf16.msra.mxu0 %v5898_v35 }
 0x45a   :  { %5735 = vmatprep.subr.bf16.mxu0 %v5975_v2 }
 0x4c8   :  { %v5825_v6 = vpop.permute.xlu1 %5824 }
 0x4c9   :  { %v5827_v7 = vunpack.i.h.bf16 %v5825_v6  ;;  %v5826_v9 = vunpack.i.l.bf16 %v5825_v6 }
 0x4cb   :  { %v1216_v10 = vsel %vm98_vm1, 0.0, %v5827_v7  ;;  %v1215_v11 = vsel %vm98_vm1, 0.0, %v5826_v9 }
 0x4cc   :  { %v1219_v12 = vsel %vm1217_vm6, %v1216_v10, 0.0  ;;  %v1218_v13 = vsel %vm1217_vm6, %v1215_v11, 0.0 }
 0x4cd   :  { %v1223_v15 = vrot.slane %v1219_v12, 7  ;;  %v1222_v16 = vrot.slane %v1218_v13, 7 }
 0x4cf   :  { %v1227_v8 = vsel %vm217_vm5, 0.0, %v1223_v15  ;;  %v1226_v17 = vsel %vm217_vm5, 0.0, %v1222_v16  ;;  %v1641_v15 = vld [vmem:[%s7573_s13 + $0x8] sm:$0xff] }
 0x4d0   :  { %v1230_v18 = vsel %vm1228_vm10, %v1227_v8, 0.0  ;;  %v1229_v19 = vsel %vm1228_vm10, %v1226_v17, 0.0  ;;  %v5724_v16 = vpack.c.bf16 %v1641_v15, %v1640_v14  ;;  %v1643_v8 = vld [vmem:[%s7573_s13 + $0x18] sm:$0xff]  ;;  %vm2233_vm10 = vcmask 588800  }
 0x4d1   :  { %v1232_v21 = vpack.c.bf16 %v1230_v18, %v1230_v18  ;;  %v1231_v22 = vpack.c.bf16 %v1229_v19, %v1229_v19  ;;  %v5727_v17 = vpack.c.bf16 %v1643_v8, %v1642_v59  ;;  %v1644_v18 = vld [vmem:[%s7573_s13 + $0x20] sm:$0xff]  ;;  %v1645_v19 = vld [vmem:[%s7573_s13 + $0x28] sm:$0xff] }
 0x4d2   :  { %v5730_v20 = vpack.c.bf16 %v1645_v19, %v1644_v18 }
 0x4d3   :  { %v1243_v24 = vshll.u32 %v1232_v21, 16  ;;  %v1236_v25 = vshll.u32 %v1231_v22, 16  ;;  %v1241_v27 = vshrl.u32 %v1232_v21, 16  ;;  %v1234_v29 = vshrl.u32 %v1231_v22, 16 }
 0x4d5   :  { %v1245_v28 = vrot.slane %v1243_v24, 1  ;;  %v1238_v30 = vrot.slane %v1236_v25, 1 }
 0x4d7   :  { %v1246_v32 = vor.u32 %v1245_v28, %v1241_v27  ;;  %v1239_v33 = vor.u32 %v1238_v30, %v1234_v29 }
 0x4d9   :  { %1249 = vrot.lane.b32.xlu0 %v1246_v32, %s5984_s8  ;;  %1247 = vrot.lane.b32.xlu1 %v1239_v33, %s5984_s8 }
 0x54b   :  { %v1250_v36 = vpop.permute.xlu0 %1249  ;;  %v1248_v37 = vpop.permute.xlu1 %1247 }
 0x54c   :  { %v1254_v38 = vsel %vm185_vm4, %v1232_v21, %v1250_v36  ;;  %v1252_v39 = vsel %vm185_vm4, %v1231_v22, %v1248_v37  ;;  %v1646_v21 = vld [vmem:[%s7573_s13 + $0x30] sm:$0xff]  ;;  %v1647_v22 = vld [vmem:[%s7573_s13 + $0x38] sm:$0xff] }
 0x54d   :  { %v1265_v40 = vcombine.low %v1254_v38, %v1250_v36  ;;  %v1257_v41 = vcombine.low %v1252_v39, %v1248_v37  ;;  %v5733_v23 = vpack.c.bf16 %v1647_v22, %v1646_v21 }
 0x54f   :  { %v1272_v42 = vrot.slane %v1265_v40, %v6368_v43  ;;  %v1264_v44 = vrot.slane %v1257_v41, %v6368_v43 }
 0x551   :  { %v1423_v45 = vcombine.high %v1272_v42, %v1272_v42  ;;  %v1445_v46 = vshrl.u32 %v1272_v42, 16  ;;  %v1448_v47 = vshll.u32 %v1272_v42, 16  ;;  %v1422_v48 = vcombine.high %v1264_v44, %v1264_v44 }
 0x552   :  { %v1431_v49 = vshrl.u32 %v1264_v44, 16  ;;  %v1434_v51 = vshll.u32 %v1264_v44, 16  ;;  %v1297_v53 = vcombine.low %v1264_v44, %v1272_v42 }
 0x553   :  { %v1447_v54 = vrot.slane %v1445_v46, 6  ;;  %v1450_v55 = vrot.slane %v1448_v47, 7  ;;  %v1454_v56 = vshll.u32 %v1423_v45, 16  ;;  %v1440_v61 = vshll.u32 %v1422_v48, 16 }
 0x554   :  { %v1433_v58 = vrot.slane %v1431_v49, 6  ;;  %v1436_v60 = vrot.slane %v1434_v51, 7  ;;  %v1304_v62 = vrot.slane %v1297_v53, %v6368_v43 }
 0x555   :  { %v1451_v63 = vor.u32 %v1450_v55, %v1447_v54  ;;  %v1456_v5 = vrot.slane %v1454_v56, 7  ;;  %v1442_v7 = vrot.slane %v1440_v61, 7 }
 0x556   :  { %v1437_v0 = vor.u32 %v1436_v60, %v1433_v58  ;;  %v1305_v1 = vcombine.high %v1304_v62, %v1304_v62 }
 0x557   :  { %v1452_v3 = vrot.slane %v1451_v63, 2 }
 0x558   :  { %v1438_v6 = vrot.slane %v1437_v0, 2  ;;  %5182 = vmatprep.mubr.msk.bf16.mxu1 %vm183_vm3, %v1305_v1 }
 0x559   :  { %1415 = vmatmul.mubr.bf16.vlgmr.msra.gmra.mrb[8].mxu1 %v1304_v62  ;;  %v1457_v9 = vsel %vm1429_vm8, %v1452_v3, %v1456_v5 }
 0x55a   :  { %v1443_v10 = vsel %vm1429_vm8, %v1438_v6, %v1442_v7  ;;  %5546 = vmatprep.mubr.msk.f32.mxu1 %vm5976_vm0, %v5977_v4  ;;  %5725 = vmatpush3.bf16.msra.mxu1 %v5724_v16  ;;  %v1807_v7 = vld [vmem:[%s7574_s14] sm:$0xff]  ;;  %s7618_s14 = sld [smem:[#allocation16_spill]] }
 0x55b   :  { %v1483_v11 = vcombine.low %v1443_v10, %v1457_v9  ;;  %5726 = vmatprep.subr.bf16.mxu1 %v5975_v2 }
 0x55d   :  { %v1490_v12 = vrot.slane %v1483_v11, %v6368_v43 }
 0x55e   :  { %5728 = vmatpush3.bf16.msra.mxu1 %v5727_v17 }
 0x55f   :  { %v1491_v13 = vcombine.high %v1490_v12, %v1490_v12  ;;  %5729 = vmatprep.subr.bf16.mxu1 %v5975_v2 }
 0x561   :  { %5219 = vmatprep.mubr.msk.bf16.mxu0 %vm183_vm3, %v1491_v13 }
 0x562   :  { %1601 = vmatmul.mubr.bf16.vlgmr.msra.gmra.mrb[12].mxu0 %v1490_v12  ;;  %5731 = vmatpush3.bf16.msra.mxu1 %v5730_v20 }
 0x563   :  { %5565 = vmatprep.mubr.msk.f32.mxu0 %vm5976_vm0, %v5977_v4  ;;  %5737 = vmatpush3.bf16.msra.mxu0 %v5724_v16 }
 0x564   :  { %5738 = vmatprep.subr.bf16.mxu0 %v5975_v2  ;;  %5732 = vmatprep.subr.bf16.mxu1 %v5975_v2 }
 0x566   :  { %5734 = vmatpush3.bf16.msra.mxu1 %v5733_v23 }
 0x567   :  { %5740 = vmatpush3.bf16.msra.mxu0 %v5727_v17  ;;  %5568 = vmatprep.subr.mxu1 %v5977_v4  ;;  %v1800_v17 = vld [vmem:[%s7618_s14] sm:$0x1] }
 0x568   :  { %5741 = vmatprep.subr.bf16.mxu0 %v5975_v2 }
 0x56b   :  { %5743 = vmatpush3.bf16.msra.mxu0 %v5730_v20  ;;  %v1804_v20 = vld [vmem:[%s7572_s12] sm:$0x1] }
 0x56c   :  { %5744 = vmatprep.subr.bf16.mxu0 %v5975_v2 }
 0x56f   :  { %5746 = vmatpush3.bf16.msra.mxu0 %v5733_v23 }
 0x570   :  { %5573 = vmatprep.subr.mxu0 %v5977_v4 }
 0x62c   :  { %v6521_v24 = vpop.f32.mrb[8].mxu1 }
 0x62d   :  { %v1608_v25 = vsel %vm183_vm3, %v6521_v24, 0.0  ;;  %v1623_v26 = vmul.f32 %v6521_v24, %v6521_v24  ;;  %v1418_v27 = vpop.f32.mrb[9].mxu1 }
 0x62e   :  { %v1609_v28 = vrot.slane %v1608_v25, 4  ;;  %v1419_v29 = vpop.f32.mrb[10].mxu1 }
 0x62f   :  { %v1624_v30 = vsel %vm183_vm3, %v1623_v26, 0.0  ;;  %v1420_v31 = vpop.f32.mrb[11].mxu1  ;;  %v2129_v29 = vld [vmem:[%s7575_s15] sm:$0xff] }
 0x630   :  { %v1625_v32 = vrot.slane %v1624_v30, 4  ;;  %v1610_v33 = vadd.f32 %v1609_v28, %v1608_v25  ;;  %v2130_v31 = vld [vmem:[%s7575_s15 + $0x8] sm:$0xff]  ;;  %s5985_s15 = smov 8  }
 0x632   :  { %v1626_v34 = vadd.f32 %v1625_v32, %v1624_v30  ;;  %v1611_v35 = vrot.slane %v1610_v33, 2 }
 0x634   :  { %v1627_v40 = vrot.slane %v1626_v34, 2  ;;  %v1612_v46 = vadd.f32 %v1611_v35, %v1610_v33 }
 0x635   :  { %v1602_v36 = vpop.f32.mrb[12].mxu0 }
 0x636   :  { %v1615_v37 = vsel %vm183_vm3, %v1602_v36, 0.0  ;;  %v1631_v38 = vmul.f32 %v1602_v36, %v1602_v36  ;;  %v1604_v39 = vpop.f32.mrb[13].mxu0  ;;  %v1628_v49 = vadd.f32 %v1627_v40, %v1626_v34  ;;  %v1613_v54 = vrot.slane %v1612_v46, 1 }
 0x637   :  { %v1616_v41 = vrot.slane %v1615_v37, 4  ;;  %v1605_v42 = vpop.f32.mrb[14].mxu0  ;;  %v2133_v34 = vcombine.high %v2129_v29, %v2129_v29  ;;  %v2140_v39 = vrot.slane %v2129_v29, %v6368_v43 }
 0x638   :  { %v1632_v44 = vsel %vm183_vm3, %v1631_v38, 0.0  ;;  %v1606_v45 = vpop.f32.mrb[15].mxu0  ;;  %v1629_v58 = vrot.slane %v1628_v49, 1  ;;  %v1614_v62 = vadd.f32 %v1613_v54, %v1612_v46  ;;  %v2150_v38 = vcombine.high %v2130_v31, %v2130_v31 }
 0x639   :  { %v1617_v47 = vadd.f32 %v1616_v41, %v1615_v37  ;;  %v1633_v48 = vrot.slane %v1632_v44, 4  ;;  %v2147_v40 = vrot.slane %v2133_v34, %v6368_v43 }
 0x63a   :  { %v1630_v1 = vadd.f32 %v1629_v58, %v1628_v49  ;;  %v2164_v45 = vrot.slane %v2150_v38, %v6368_v43 }
 0x63b   :  { %v1618_v51 = vrot.slane %v1617_v47, 2  ;;  %v1634_v53 = vadd.f32 %v1633_v48, %v1632_v44  ;;  %v2157_v44 = vrot.slane %v2130_v31, %v6368_v43 }
 0x63d   :  { %v1619_v55 = vadd.f32 %v1618_v51, %v1617_v47  ;;  %v1635_v56 = vrot.slane %v1634_v53, 2  ;;  %v2148_v51 = vcombine.high %v2140_v39, %v2140_v39 }
 0x63f   :  { %v1620_v60 = vrot.slane %v1619_v55, 1  ;;  %v1636_v61 = vadd.f32 %v1635_v56, %v1634_v53 }
 0x641   :  { %v1621_v63 = vadd.f32 %v1620_v60, %v1619_v55  ;;  %v1637_v0 = vrot.slane %v1636_v61, 1 }
 0x643   :  { %v1622_v3 = vadd.f32 %v1621_v63, %v1614_v62  ;;  %v1638_v5 = vadd.f32 %v1637_v0, %v1636_v61  ;;  %v2149_v61 = vcombine.high %v2147_v40, %v2147_v40  ;;  %v2165_v62 = vcombine.high %v2157_v44, %v2157_v44 }
 0x645   :  { %5547 = vmatmul.mubr.msk.f32.vlgmr.msra.gmra.mrb[12].mxu1 %vm183_vm3, %v1622_v3  ;;  %v1639_v6 = vadd.f32 %v1638_v5, %v1630_v1  ;;  %v2166_v3 = vcombine.high %v2164_v45, %v2164_v45 }
 0x646   :  { %5570 = vmatprep.mubr.msk.f32.mxu1 %vm5976_vm0, %v5977_v4  ;;  %5569 = vmatpush3.msra.mxu1 %v1807_v7 }
 0x647   :  { %5566 = vmatmul.mubr.msk.f32.vlgmr.msra.gmra.mrb[10].mxu0 %vm183_vm3, %v1639_v6  ;;  %2362 = vmatprep.subr.bf16.mxu1 %v5983_v50 }
 0x648   :  { %5575 = vmatprep.mubr.msk.f32.mxu0 %vm5976_vm0, %v5977_v4  ;;  %5574 = vmatpush3.msra.mxu0 %v1807_v7 }
 0x649   :  { %2533 = vmatprep.subr.bf16.mxu0 %v5983_v50 }
 0x718   :  { %v1717_v9 = vpop.f32.mrb[12].mxu1 }
 0x719   :  { %v1795_v10 = vmul.f32 0.0078125, %v1717_v9  ;;  %v5548_v11 = vpop.f32.mrb[13].mxu1 }
 0x71a   :  { %v1790_v12 = vpop.f32.mrb[10].mxu0 }
 0x71b   :  { %v1797_v13 = vmul.f32 %v1795_v10, %v1795_v10  ;;  %v1796_v14 = vmul.f32 0.0078125, %v1790_v12  ;;  %v5567_v15 = vpop.f32.mrb[11].mxu0 }
 0x71d   :  { %v1798_v16 = vsub.f32 %v1796_v14, %v1797_v13 }
 0x71f   :  { %v1799_v59 = vmax.f32 %v1798_v16, 0.0 }
 0x721   :  { %v1801_v8 = vadd.f32 1e-05, %v1799_v59 }
 0x723   :  { %5945 = vrsqrt.f32 %v1801_v8 }
 0x72d   :  { %v5946_v18 = vpop.eup %5945 }
 0x72e   :  { %v1803_v19 = vmul.f32 %v5946_v18, %v1800_v17 }
 0x730   :  { %5571 = vmatmul.mubr.msk.f32.vlgmr.msra.gmra.mrb[14].mxu1 %vm1808_vm14, %v1803_v19  ;;  %v1805_v21 = vmul.f32 %v1803_v19, %v1795_v10 }
 0x732   :  { %v1806_v22 = vsub.f32 %v1804_v20, %v1805_v21 }
 0x734   :  { %5576 = vmatmul.mubr.msk.f32.vlgmr.msra.gmra.mrb[16].mxu0 %vm1808_vm14, %v1806_v22 }
 0x803   :  { %v1878_v23 = vpop.f32.mrb[14].mxu1 }
 0x804   :  { %v1958_v25 = vrot.slane %v1878_v23, %v6258_v57  ;;  %v5572_v26 = vpop.f32.mrb[15].mxu1 }
 0x806   :  { %v1959_v27 = vmul.f32 %v1958_v25, %v6521_v24  ;;  %v1965_v28 = vmul.f32 %v1958_v25, %v1602_v36 }
 0x807   :  { %v1951_v30 = vpop.f32.mrb[16].mxu0 }
 0x808   :  { %v1963_v32 = vrot.slane %v1951_v30, %v6258_v57  ;;  %v5577_v33 = vpop.f32.mrb[17].mxu0 }
 0x80a   :  { %v1964_v35 = vadd.f32 %v1963_v32, %v1959_v27  ;;  %v1966_v37 = vadd.f32 %v1965_v28, %v1963_v32 }
 0x80c   :  { %vm1967_vm15 = vcmp.ge.f32.partialorder %v1964_v35, 0.0  ;;  %v1968_v24 = vmul.f32 0.2, %v1964_v35  ;;  %vm1970_vm7 = vcmp.ge.f32.partialorder %v1966_v37, 0.0  ;;  %v1971_v36 = vmul.f32 0.2, %v1966_v37 }
 0x80e   :  { %v1969_v41 = vsel %vm1967_vm15, %v1964_v35, %v1968_v24  ;;  %v1972_v42 = vsel %vm1970_vm7, %v1966_v37, %v1971_v36 }
 0x80f   :  { %v1974_v46 = vcombine.high %v1969_v41, %v1969_v41  ;;  %v1981_v47 = vrot.slane %v1969_v41, %v6252_v52  ;;  %v2032_v48 = vcombine.high %v1972_v42, %v1972_v42  ;;  %v2039_v49 = vrot.slane %v1972_v42, %v6252_v52 }
 0x811   :  { %v1988_v53 = vrot.slane %v1974_v46, %v6252_v52  ;;  %v1989_v54 = vcombine.high %v1981_v47, %v1981_v47  ;;  %v1997_v55 = vrot.slane %v1981_v47, %v6252_v52  ;;  %v2046_v56 = vrot.slane %v2032_v48, %v6252_v52 }
 0x812   :  { %v2047_v58 = vcombine.high %v2039_v49, %v2039_v49  ;;  %v2055_v60 = vrot.slane %v2039_v49, %v6252_v52 }
 0x813   :  { %v1990_v63 = vcombine.high %v1988_v53, %v1988_v53  ;;  %v2004_v0 = vrot.slane %v1988_v53, %v6252_v52  ;;  %v2011_v1 = vrot.slane %v1989_v54, %v6252_v52  ;;  %v2048_v5 = vcombine.high %v2046_v56, %v2046_v56 }
 0x814   :  { %v2062_v6 = vrot.slane %v2046_v56, %v6252_v52  ;;  %v2069_v7 = vrot.slane %v2047_v58, %v6252_v52  ;;  %v2077_v9 = vcombine.high %v2055_v60, %v2055_v60  ;;  %v2019_v11 = vcombine.high %v1997_v55, %v1997_v55  ;;  %v5902_v58 = vld [vmem:[%s7576_s16 + $0x8] sm:$0xff]  }
 0x815   :  { %v2018_v10 = vrot.slane %v1990_v63, %v6252_v52  ;;  %v2020_v12 = vcombine.high %v2004_v0, %v2004_v0  ;;  %v2084_v13 = vrot.slane %v2055_v60, %v6258_v57  ;;  %v2076_v14 = vrot.slane %v2048_v5, %v6252_v52  ;;  %v5907_v60 = vld [vmem:[%s7576_s16 + $0x58] sm:$0xff]   ;;  %v5908_v5 = vld [vmem:[%s7576_s16 + $0x28] sm:$0xff]  }
 0x816   :  { %v2078_v15 = vcombine.high %v2062_v6, %v2062_v6  ;;  %v2079_v16 = vcombine.high %v2069_v7, %v2069_v7  ;;  %v2088_v59 = vrot.slane %v2069_v7, %v6258_v57  ;;  %v2021_v8 = vcombine.high %v2011_v1, %v2011_v1  ;;  %v5904_v63 = vld [vmem:[%s7576_s16 + $0x18] sm:$0xff]   ;;  %v5910_v7 = vld [vmem:[%s7576_s16 + $0x30] sm:$0xff]  }
 0x817   :  { %v2092_v17 = vrot.slane %v2077_v9, %v6258_v57  ;;  %v2100_v18 = vrot.slane %v2062_v6, %v6258_v57  ;;  %v2121_v19 = vsel %vm217_vm5, %v1997_v55, %v2084_v13  ;;  %v2080_v20 = vcombine.high %v2076_v14, %v2076_v14  ;;  %v5915_v6 = vld [vmem:[%s7576_s16 + $0x78] sm:$0xff]  }
 0x818   :  { %v2096_v21 = vrot.slane %v2079_v16, %v6258_v57  ;;  %v2104_v22 = vrot.slane %v2076_v14, %v6258_v57  ;;  %v2108_v23 = vrot.slane %v2078_v15, %v6258_v57  ;;  %v2022_v25 = vcombine.high %v2018_v10, %v2018_v10  ;;  %v5912_v9 = vld [vmem:[%s7576_s16 + $0x38] sm:$0xff]   ;;  %v5916_v16 = vld [vmem:[%s7576_s16 + $0x48] sm:$0xff]  }
 0x819   :  { %v2122_v26 = vsel %vm217_vm5, %v2011_v1, %v2088_v59  ;;  %v2123_v27 = vsel %vm217_vm5, %v2019_v11, %v2092_v17  ;;  %v2125_v28 = vsel %vm217_vm5, %v2004_v0, %v2100_v18  ;;  %v2112_v29 = vrot.slane %v2080_v20, %v6258_v57  ;;  %v5911_v0 = vld [vmem:[%s7576_s16 + $0x68] sm:$0xff]   ;;  %v5906_v1 = vld [vmem:[%s7576_s16 + $0x20] sm:$0xff]  }
 0x81a   :  { %v2124_v30 = vsel %vm217_vm5, %v2021_v8, %v2096_v21  ;;  %v2126_v31 = vsel %vm217_vm5, %v2018_v10, %v2104_v22  ;;  %v2127_v32 = vsel %vm217_vm5, %v2020_v12, %v2108_v23  ;;  %v2175_v33 = vmul.f32 %v2140_v39, %v2121_v19  ;;  %v5914_v10 = vld [vmem:[%s7576_s16 + $0x40] sm:$0xff]  }
 0x81b   :  { %v2176_v34 = vmul.f32 %v2148_v51, %v2122_v26  ;;  %v2177_v35 = vmul.f32 %v2147_v40, %v2123_v27  ;;  %v2178_v37 = vmul.f32 %v2149_v61, %v2124_v30  ;;  %v2128_v38 = vsel %vm217_vm5, %v2022_v25, %v2112_v29  ;;  %v5903_v61 = vld [vmem:[%s7576_s16 + $0x10] sm:$0xff]   ;;  %v5917_v59 = vld [vmem:[%s7576_s16 + $0x80] sm:$0xff]   ;;  %v5918_v25 = vld [vmem:[%s7576_s16 + $0x88] sm:$0xff]  }
 0x81c   :  { %v2179_v24 = vmul.f32 %v2157_v44, %v2125_v28  ;;  %v2180_v36 = vmul.f32 %v2165_v62, %v2126_v31  ;;  %v2181_v41 = vmul.f32 %v2164_v45, %v2127_v32  ;;  %v2182_v42 = vmul.f32 %v2166_v3, %v2128_v38  ;;  %v5901_v44 = vld [vmem:[%s7576_s16] sm:$0xff]   ;;  %v5905_v45 = vld [vmem:[%s7576_s16 + $0x50] sm:$0xff]  }
 0x81d   :  { %v2191_v46 = vcombine.low %v2175_v33, %v2176_v34  ;;  %v2192_v47 = vcombine.low %v2177_v35, %v2178_v37  ;;  %2363 = vmatpush1.bf16.msra.mxu1 %v5901_v44  ;;  %2534 = vmatpush1.bf16.msra.mxu0 %v5905_v45  ;;  %v5909_v62 = vld [vmem:[%s7576_s16 + $0x60] sm:$0xff]   ;;  %v5913_v3 = vld [vmem:[%s7576_s16 + $0x70] sm:$0xff]   ;;  %v5920_v35 = vld [vmem:[%s7576_s16 + $0x98] sm:$0xff]  }
 0x81e   :  { %v2208_v48 = vcombine.low %v2179_v24, %v2180_v36  ;;  %v2209_v54 = vcombine.low %v2181_v41, %v2182_v42  ;;  %2364 = vmatprep.subr.bf16.mxu1 %v5983_v50  ;;  %2535 = vmatprep.subr.bf16.mxu0 %v5983_v50  ;;  %v5919_v30 = vld [vmem:[%s7576_s16 + $0x90] sm:$0xff]  }
 0x81f   :  { %v2199_v49 = vrot.slane %v2191_v46, %v6368_v43  ;;  %v2206_v53 = vrot.slane %v2192_v47, %v6368_v43 }
 0x820   :  { %v2216_v39 = vrot.slane %v2208_v48, %v6368_v43  ;;  %v2223_v40 = vrot.slane %v2209_v54, %v6368_v43 }
 0x821   :  { %v2207_v55 = vcombine.low %v2199_v49, %v2206_v53  ;;  %2365 = vmatpush1.bf16.msra.mxu1 %v5902_v58  ;;  %2536 = vmatpush1.bf16.msra.mxu0 %v5907_v60 }
 0x822   :  { %v2224_v51 = vcombine.low %v2216_v39, %v2223_v40  ;;  %2366 = vmatprep.subr.bf16.mxu1 %v5983_v50  ;;  %2537 = vmatprep.subr.bf16.mxu0 %v5983_v50 }
 0x824   :  { %v5828_v56 = vpack.i.bf16 %v2224_v51, %v2207_v55 }
 0x825   :  { %2367 = vmatpush1.bf16.msra.mxu1 %v5903_v61  ;;  %2538 = vmatpush1.bf16.msra.mxu0 %v5909_v62 }
 0x826   :  { %5829 = vrot.lane.b32.xlu1 %v5828_v56, %s5985_s15  ;;  %2368 = vmatprep.subr.bf16.mxu1 %v5983_v50 }
 0x827   :  { %2539 = vmatprep.subr.bf16.mxu0 %v5983_v50 }
 0x829   :  { %2369 = vmatpush1.bf16.msra.mxu1 %v5904_v63  ;;  %2540 = vmatpush1.bf16.msra.mxu0 %v5911_v0 }
 0x82a   :  { %2370 = vmatprep.subr.bf16.mxu1 %v5983_v50  ;;  %2541 = vmatprep.subr.bf16.mxu0 %v5983_v50 }
 0x82d   :  { %2371 = vmatpush1.bf16.msra.mxu1 %v5906_v1  ;;  %2542 = vmatpush1.bf16.msra.mxu0 %v5913_v3 }
 0x82e   :  { %2372 = vmatprep.subr.bf16.mxu1 %v5983_v50  ;;  %2543 = vmatprep.subr.bf16.mxu0 %v5983_v50 }
 0x831   :  { %2373 = vmatpush1.bf16.msra.mxu1 %v5908_v5  ;;  %2544 = vmatpush1.bf16.msra.mxu0 %v5915_v6 }
 0x832   :  { %2374 = vmatprep.subr.bf16.mxu1 %v5983_v50  ;;  %2545 = vmatprep.subr.bf16.mxu0 %v5983_v50 }
 0x835   :  { %2375 = vmatpush1.bf16.msra.mxu1 %v5910_v7  ;;  %2546 = vmatpush1.bf16.msra.mxu0 %v5917_v59  ;;  %v2620_v59 = vld [vmem:[%s7579_s19 + $0x20] sm:$0xff] }
 0x836   :  { %2376 = vmatprep.subr.bf16.mxu1 %v5983_v50  ;;  %2547 = vmatprep.subr.bf16.mxu0 %v5983_v50 }
 0x839   :  { %2377 = vmatpush1.bf16.msra.mxu1 %v5912_v9  ;;  %2548 = vmatpush1.bf16.msra.mxu0 %v5918_v25 }
 0x83a   :  { %2378 = vmatprep.subr.bf16.mxu1 %v5983_v50  ;;  %2549 = vmatprep.subr.bf16.mxu0 %v5983_v50 }
 0x83d   :  { %2379 = vmatpush1.bf16.msra.mxu1 %v5914_v10  ;;  %2550 = vmatpush1.bf16.msra.mxu0 %v5919_v30 }
 0x83e   :  { %2380 = vmatprep.subr.bf16.mxu1 %v5983_v50  ;;  %2551 = vmatprep.subr.bf16.mxu0 %v5983_v50 }
 0x841   :  { %2381 = vmatpush1.bf16.msra.mxu1 %v5916_v16  ;;  %2552 = vmatpush1.bf16.msra.mxu0 %v5920_v35 }
 0x842   :  { %5747 = vmatprep.subr.bf16.mxu1 %v5975_v2  ;;  %5759 = vmatprep.subr.bf16.mxu0 %v5975_v2 }
 0x898   :  { %v5830_v11 = vpop.permute.xlu1 %5829 }
 0x899   :  { %v5832_v12 = vunpack.i.h.bf16 %v5830_v11  ;;  %v5831_v13 = vunpack.i.l.bf16 %v5830_v11  ;;  %v2616_v11 = vld [vmem:[%s7579_s19] sm:$0xff] }
 0x89b   :  { %v2232_v14 = vsel %vm1808_vm14, 0.0, %v5832_v12  ;;  %v2231_v15 = vsel %vm1808_vm14, 0.0, %v5831_v13  ;;  %v2617_v12 = vld [vmem:[%s7579_s19 + $0x8] sm:$0xff] }
 0x89c   :  { %v2235_v8 = vsel %vm2233_vm10, %v2232_v14, 0.0  ;;  %v2234_v17 = vsel %vm2233_vm10, %v2231_v15, 0.0  ;;  %v5748_v13 = vpack.c.bf16 %v2617_v12, %v2616_v11  ;;  %v2618_v14 = vld [vmem:[%s7579_s19 + $0x10] sm:$0xff]  ;;  %v2619_v15 = vld [vmem:[%s7579_s19 + $0x18] sm:$0xff] }
 0x89d   :  { %v2239_v18 = vrot.slane %v2235_v8, 7  ;;  %v2238_v19 = vrot.slane %v2234_v17, 7  ;;  %v5751_v16 = vpack.c.bf16 %v2619_v15, %v2618_v14  ;;  %v2621_v8 = vld [vmem:[%s7579_s19 + $0x28] sm:$0xff]  ;;  %v2783_v15 = vld [vmem:[%s7580_s20] sm:$0xf]  ;;  %s5988_s20 = smov 72  }
 0x89e   :  { %v5754_v17 = vpack.c.bf16 %v2621_v8, %v2620_v59 }
 0x89f   :  { %v2243_v20 = vsel %vm217_vm5, 0.0, %v2239_v18  ;;  %v2245_v21 = vsel %vm217_vm5, %v2239_v18, 0.0  ;;  %v2242_v22 = vsel %vm217_vm5, 0.0, %v2238_v19  ;;  %v2244_v23 = vsel %vm217_vm5, %v2238_v19, 0.0  ;;  %v2622_v18 = vld [vmem:[%s7579_s19 + $0x30] sm:$0xff]  ;;  %v2623_v19 = vld [vmem:[%s7579_s19 + $0x38] sm:$0xff] }
 0x8a0   :  { %v2247_v26 = vpack.c.bf16 %v2245_v21, %v2243_v20  ;;  %v2246_v27 = vpack.c.bf16 %v2244_v23, %v2242_v22  ;;  %v5757_v20 = vpack.c.bf16 %v2623_v19, %v2622_v18 }
 0x8a2   :  { %v2258_v28 = vshll.u32 %v2247_v26, 16  ;;  %v2251_v29 = vshll.u32 %v2246_v27, 16  ;;  %v2256_v31 = vshrl.u32 %v2247_v26, 16  ;;  %v2249_v33 = vshrl.u32 %v2246_v27, 16 }
 0x8a4   :  { %v2260_v32 = vrot.slane %v2258_v28, 1  ;;  %v2253_v34 = vrot.slane %v2251_v29, 1 }
 0x8a6   :  { %v2261_v37 = vor.u32 %v2260_v32, %v2256_v31  ;;  %v2254_v38 = vor.u32 %v2253_v34, %v2249_v33 }
 0x8a8   :  { %2264 = vrot.lane.b32.xlu1 %v2261_v37, %s5986_s5  ;;  %2262 = vrot.lane.b32.xlu0 %v2254_v38, %s5986_s5 }
 0x91a   :  { %v2265_v24 = vpop.permute.xlu1 %2264  ;;  %v2263_v36 = vpop.permute.xlu0 %2262 }
 0x91b   :  { %v2269_v41 = vsel %vm1217_vm6, %v2247_v26, %v2265_v24  ;;  %v2267_v42 = vsel %vm1217_vm6, %v2246_v27, %v2263_v36  ;;  %v5225_v46 = vcombine.low %v2263_v36, %v2265_v24  ;;  %vm2413_vm6 = vmor %vm2411_vm12, %vm2412_vm11  ;;  %vm3512_vm12 = vsmask.f32 7424 }
 0x91c   :  { %v5239_v47 = vcombine.low %v2269_v41, %v2265_v24  ;;  %v5240_v48 = vcombine.high %v2269_v41, %v2265_v24  ;;  %v5237_v49 = vcombine.low %v2267_v42, %v2263_v36  ;;  %v5238_v53 = vcombine.high %v2267_v42, %v2263_v36 }
 0x91d   :  { %5236 = vmatprep.mubr.msk.bf16.mxu1 %vm7619_vm9, %v5225_v46  ;;  %v5224_v54 = vcombine.low %v2267_v42, %v2269_v41  ;;  %vm3483_vm9 = vcmask 556032  }
 0x91e   :  { %v2429_v55 = vshrl.u32 %v5239_v47, 16  ;;  %v2432_v39 = vshll.u32 %v5239_v47, 16  ;;  %v2415_v40 = vshrl.u32 %v5237_v49, 16  ;;  %v2418_v51 = vshll.u32 %v5237_v49, 16 }
 0x91f   :  { %2395 = vmatmul.mubr.bf16.vlgmr.msra.gmra.mrb[16].mxu1 %v5224_v54  ;;  %v2438_v45 = vshll.u32 %v5240_v48, 16  ;;  %v2424_v61 = vshll.u32 %v5238_v53, 16 }
 0x920   :  { %v2431_v56 = vrot.slane %v2429_v55, 4  ;;  %v2434_v44 = vrot.slane %v2432_v39, 5  ;;  %v2417_v58 = vrot.slane %v2415_v40, 4  ;;  %5594 = vmatprep.mubr.msk.f32.mxu1 %vm5976_vm0, %v5977_v4  ;;  %v2420_v60 = vrot.slane %v2418_v51, 5  ;;  %5749 = vmatpush3.bf16.msra.mxu1 %v5748_v13 }
 0x921   :  { %v2440_v1 = vrot.slane %v2438_v45, 5  ;;  %v2426_v5 = vrot.slane %v2424_v61, 5  ;;  %5750 = vmatprep.subr.bf16.mxu1 %v5975_v2 }
 0x922   :  { %v2435_v62 = vor.u32 %v2434_v44, %v2431_v56  ;;  %v2421_v63 = vor.u32 %v2420_v60, %v2417_v58 }
 0x924   :  { %v2436_v0 = vrot.slane %v2435_v62, 4  ;;  %v2422_v3 = vrot.slane %v2421_v63, 4  ;;  %5752 = vmatpush3.bf16.msra.mxu1 %v5751_v16 }
 0x925   :  { %5753 = vmatprep.subr.bf16.mxu1 %v5975_v2 }
 0x926   :  { %v2441_v6 = vsel %vm2413_vm6, %v2436_v0, %v2440_v1  ;;  %v2427_v7 = vsel %vm2413_vm6, %v2422_v3, %v2426_v5 }
 0x927   :  { %v5262_v9 = vcombine.high %v2427_v7, %v2441_v6  ;;  %v5261_v10 = vcombine.low %v2427_v7, %v2441_v6 }
 0x928   :  { %5755 = vmatpush3.bf16.msra.mxu1 %v5754_v17 }
 0x929   :  { %5273 = vmatprep.mubr.msk.bf16.mxu0 %vm7620_vm13, %v5262_v9  ;;  %5756 = vmatprep.subr.bf16.mxu1 %v5975_v2 }
 0x92a   :  { %2566 = vmatmul.mubr.bf16.vlgmr.msra.gmra.mrb[20].mxu0 %v5261_v10 }
 0x92b   :  { %5613 = vmatprep.mubr.msk.f32.mxu0 %vm5976_vm0, %v5977_v4  ;;  %5761 = vmatpush3.bf16.msra.mxu0 %v5748_v13 }
 0x92c   :  { %5762 = vmatprep.subr.bf16.mxu0 %v5975_v2  ;;  %5758 = vmatpush3.bf16.msra.mxu1 %v5757_v20 }
 0x92d   :  { %5616 = vmatprep.subr.mxu1 %v5977_v4 }
 0x92f   :  { %5764 = vmatpush3.bf16.msra.mxu0 %v5751_v16 }
 0x930   :  { %5765 = vmatprep.subr.bf16.mxu0 %v5975_v2 }
 0x933   :  { %5767 = vmatpush3.bf16.msra.mxu0 %v5754_v17 }
 0x934   :  { %5768 = vmatprep.subr.bf16.mxu0 %v5975_v2 }
 0x937   :  { %5770 = vmatpush3.bf16.msra.mxu0 %v5757_v20 }
 0x938   :  { %5621 = vmatprep.subr.mxu0 %v5977_v4 }
 0x9f2   :  { %v6723_v21 = vpop.f32.mrb[16].mxu1 }
 0x9f3   :  { %v2593_v22 = vmul.f32 %v6723_v21, %v6723_v21  ;;  %v2398_v23 = vpop.f32.mrb[17].mxu1  ;;  %v2574_v26 = vsel %vm183_vm3, %v6723_v21, 0.0 }
 0x9f4   :  { %v6727_v25 = vpop.f32.mrb[18].mxu1 }
 0x9f5   :  { %v2575_v27 = vsel %vm183_vm3, %v6727_v25, 0.0  ;;  %v2594_v28 = vmul.f32 %v6727_v25, %v6727_v25  ;;  %v2401_v29 = vpop.f32.mrb[19].mxu1  ;;  %v2595_v31 = vsel %vm183_vm3, %v2593_v22, 0.0 }
 0x9f6   :  { %v2576_v30 = vadd.f32 %v2575_v27, %v2574_v26  ;;  %v2776_v27 = vld [vmem:[%s7577_s17] sm:$0x1] }
 0x9f7   :  { %v2596_v32 = vsel %vm183_vm3, %v2594_v28, 0.0 }
 0x9f8   :  { %v2597_v33 = vadd.f32 %v2596_v32, %v2595_v31  ;;  %v2577_v34 = vrot.slane %v2576_v30, 4 }
 0x9fa   :  { %v2598_v35 = vrot.slane %v2597_v33, 4  ;;  %v2578_v37 = vadd.f32 %v2577_v34, %v2576_v30  ;;  %v2780_v30 = vld [vmem:[%s7578_s18] sm:$0x1]  ;;  %v3278_v34 = vld [vmem:[%s7581_s21 + $0x18] sm:$0xff] }
 0x9fc   :  { %v2599_v41 = vadd.f32 %v2598_v35, %v2597_v33  ;;  %v2579_v53 = vrot.slane %v2578_v37, 2  ;;  %v3277_v33 = vld [vmem:[%s7581_s21 + $0x10] sm:$0xff]  ;;  %v3275_v35 = vld [vmem:[%s7581_s21] sm:$0xff] }
 0x9fd   :  { %v6737_v38 = vpop.f32.mrb[20].mxu0 }
 0x9fe   :  { %v2604_v24 = vmul.f32 %v6737_v38, %v6737_v38  ;;  %v2569_v36 = vpop.f32.mrb[21].mxu0  ;;  %v2583_v46 = vsel %vm183_vm3, %v6737_v38, 0.0  ;;  %v2600_v40 = vrot.slane %v2599_v41, 2  ;;  %v2580_v44 = vadd.f32 %v2579_v53, %v2578_v37 }
 0x9ff   :  { %v6741_v42 = vpop.f32.mrb[22].mxu0  ;;  %v3317_v37 = vcombine.high %v3277_v33, %v3277_v33 }
 0xa00   :  { %v2584_v47 = vsel %vm183_vm3, %v6741_v42, 0.0  ;;  %v2605_v48 = vmul.f32 %v6741_v42, %v6741_v42  ;;  %v2572_v49 = vpop.f32.mrb[23].mxu0  ;;  %v2606_v55 = vsel %vm183_vm3, %v2604_v24, 0.0  ;;  %v2601_v60 = vadd.f32 %v2600_v40, %v2599_v41  ;;  %v3276_v24 = vld [vmem:[%s7581_s21 + $0x8] sm:$0xff]  ;;  %s5987_s21 = smov 4  }
 0xa01   :  { %v2585_v54 = vadd.f32 %v2584_v47, %v2583_v46  ;;  %v2581_v63 = vrot.slane %v2580_v44, 1  ;;  %v3334_v41 = vcombine.high %v3278_v34, %v3278_v34  ;;  %v3283_v46 = vcombine.high %v3275_v35, %v3275_v35 }
 0xa02   :  { %v2607_v39 = vsel %vm183_vm3, %v2605_v48, 0.0  ;;  %v2602_v3 = vrot.slane %v2601_v60, 1  ;;  %v6784_v49 = vrot.slane %v3277_v33, %v6368_v43  ;;  %v6787_v53 = vrot.slane %v3317_v37, %v6368_v43 }
 0xa03   :  { %v2586_v51 = vrot.slane %v2585_v54, 4  ;;  %v2608_v56 = vadd.f32 %v2607_v39, %v2606_v55  ;;  %v2582_v7 = vadd.f32 %v2581_v63, %v2580_v44  ;;  %v6794_v44 = vrot.slane %v3278_v34, %v6368_v43 }
 0xa04   :  { %v2603_v11 = vadd.f32 %v2602_v3, %v2601_v60  ;;  %v6803_v60 = vrot.slane %v3283_v46, %v6368_v43 }
 0xa05   :  { %v2587_v45 = vadd.f32 %v2586_v51, %v2585_v54  ;;  %v2609_v58 = vrot.slane %v2608_v56, 4  ;;  %v3300_v54 = vcombine.high %v3276_v24, %v3276_v24 }
 0xa07   :  { %v2588_v61 = vrot.slane %v2587_v45, 2  ;;  %v2610_v62 = vadd.f32 %v2609_v58, %v2608_v56  ;;  %v6800_v58 = vrot.slane %v3275_v35, %v6368_v43 }
 0xa09   :  { %v2589_v0 = vadd.f32 %v2588_v61, %v2587_v45  ;;  %v2611_v1 = vrot.slane %v2610_v62, 2  ;;  %v6797_v45 = vrot.slane %v3334_v41, %v6368_v43  ;;  %v6811_v61 = vrot.slane %v3276_v24, %v6368_v43 }
 0xa0b   :  { %v2590_v5 = vrot.slane %v2589_v0, 1  ;;  %v2612_v6 = vadd.f32 %v2611_v1, %v2610_v62  ;;  %v6814_v62 = vrot.slane %v3300_v54, %v6368_v43 }
 0xa0d   :  { %v2591_v9 = vadd.f32 %v2590_v5, %v2589_v0  ;;  %v2613_v10 = vrot.slane %v2612_v6, 1  ;;  %v3349_v5 = vcombine.high %v6794_v44, %v6794_v44 }
 0xa0f   :  { %v2614_v12 = vadd.f32 %v2613_v10, %v2612_v6  ;;  %v2592_v13 = vadd.f32 %v2591_v9, %v2582_v7  ;;  %v3350_v6 = vcombine.high %v6797_v45, %v6797_v45  ;;  %v3298_v7 = vcombine.high %v6800_v58, %v6800_v58 }
 0xa10   :  { %v3299_v9 = vcombine.high %v6803_v60, %v6803_v60 }
 0xa11   :  { %5595 = vmatmul.mubr.msk.f32.vlgmr.msra.gmra.mrb[20].mxu1 %vm183_vm3, %v2592_v13  ;;  %v2615_v14 = vadd.f32 %v2614_v12, %v2603_v11 }
 0xa12   :  { %5618 = vmatprep.mubr.msk.f32.mxu1 %vm5976_vm0, %v5977_v4  ;;  %5617 = vmatpush3.msk.msra.mxu1 %vm2788_vm2, %v2783_v15 }
 0xa13   :  { %5614 = vmatmul.mubr.msk.f32.vlgmr.msra.gmra.mrb[18].mxu0 %vm183_vm3, %v2615_v14  ;;  %3623 = vmatprep.subr.bf16.mxu1 %v5983_v50  ;;  %vm2784_vm3 = vcmask 31744  }
 0xa14   :  { %5623 = vmatprep.mubr.msk.f32.mxu0 %vm5976_vm0, %v5977_v4  ;;  %5622 = vmatpush3.msk.msra.mxu0 %vm2788_vm2, %v2783_v15 }
 0xa15   :  { %3805 = vmatprep.subr.bf16.mxu0 %v5983_v50 }
 0xae4   :  { %v2693_v16 = vpop.f32.mrb[20].mxu1 }
 0xae5   :  { %v2771_v59 = vmul.f32 0.001953125, %v2693_v16  ;;  %v5596_v8 = vpop.f32.mrb[21].mxu1  ;;  %v3315_v16 = vcombine.high %v6811_v61, %v6811_v61 }
 0xae6   :  { %v2766_v17 = vpop.f32.mrb[18].mxu0 }
 0xae7   :  { %v2773_v18 = vmul.f32 %v2771_v59, %v2771_v59  ;;  %v2772_v19 = vmul.f32 0.001953125, %v2766_v17  ;;  %v5615_v20 = vpop.f32.mrb[19].mxu0 }
 0xae9   :  { %v2774_v22 = vsub.f32 %v2772_v19, %v2773_v18 }
 0xaeb   :  { %v2775_v23 = vmax.f32 %v2774_v22, 0.0 }
 0xaed   :  { %v2777_v26 = vadd.f32 1e-05, %v2775_v23 }
 0xaef   :  { %5947 = vrsqrt.f32 %v2777_v26 }
 0xaf9   :  { %v5948_v28 = vpop.eup %5947 }
 0xafa   :  { %v2779_v29 = vmul.f32 %v5948_v28, %v2776_v27 }
 0xafc   :  { %5619 = vmatmul.mubr.msk.f32.vlgmr.msra.gmra.mrb[22].mxu1 %vm2784_vm3, %v2779_v29  ;;  %v2781_v31 = vmul.f32 %v2779_v29, %v2771_v59  ;;  %v3316_v59 = vcombine.high %v6814_v62, %v6814_v62 }
 0xafe   :  { %v2782_v32 = vsub.f32 %v2780_v30, %v2781_v31 }
 0xb00   :  { %5624 = vmatmul.mubr.msk.f32.vlgmr.msra.gmra.mrb[24].mxu0 %vm2784_vm3, %v2782_v32 }
 0xbcf   :  { %v2858_v36 = vpop.f32.mrb[22].mxu1 }
 0xbd0   :  { %v2938_v47 = vrot.slane %v2858_v36, %v6258_v57  ;;  %v5620_v48 = vpop.f32.mrb[23].mxu1 }
 0xbd2   :  { %v2939_v55 = vmul.f32 %v2938_v47, %v6723_v21  ;;  %v2940_v39 = vmul.f32 %v2938_v47, %v6727_v25  ;;  %v2947_v40 = vmul.f32 %v2938_v47, %v6737_v38  ;;  %v2948_v51 = vmul.f32 %v2938_v47, %v6741_v42 }
 0xbd3   :  { %v2931_v56 = vpop.f32.mrb[24].mxu0  ;;  %v3332_v38 = vcombine.high %v6784_v49, %v6784_v49  ;;  %v3333_v42 = vcombine.high %v6787_v53, %v6787_v53 }
 0xbd4   :  { %v2944_v21 = vrot.slane %v2931_v56, %v6258_v57  ;;  %v5625_v25 = vpop.f32.mrb[25].mxu0 }
 0xbd6   :  { %v2945_v63 = vadd.f32 %v2944_v21, %v2939_v55  ;;  %v2946_v0 = vadd.f32 %v2944_v21, %v2940_v39  ;;  %v2949_v1 = vadd.f32 %v2947_v40, %v2944_v21  ;;  %v2950_v3 = vadd.f32 %v2948_v51, %v2944_v21 }
 0xbd8   :  { %vm2951_vm8 = vcmp.ge.f32.partialorder %v2945_v63, 0.0  ;;  %vm2952_vm14 = vcmp.ge.f32.partialorder %v2946_v0, 0.0  ;;  %v2953_v10 = vmul.f32 0.2, %v2945_v63  ;;  %v2954_v11 = vmul.f32 0.2, %v2946_v0 }
 0xbd9   :  { %vm2957_vm15 = vcmp.ge.f32.partialorder %v2949_v1, 0.0  ;;  %vm2958_vm7 = vcmp.ge.f32.partialorder %v2950_v3, 0.0  ;;  %v2959_v12 = vmul.f32 0.2, %v2949_v1  ;;  %v2960_v13 = vmul.f32 0.2, %v2950_v3 }
 0xbda   :  { %v2955_v14 = vsel %vm2951_vm8, %v2945_v63, %v2953_v10  ;;  %v2956_v15 = vsel %vm2952_vm14, %v2946_v0, %v2954_v11 }
 0xbdb   :  { %v2961_v8 = vsel %vm2957_vm15, %v2949_v1, %v2959_v12  ;;  %v2962_v17 = vsel %vm2958_vm7, %v2950_v3, %v2960_v13  ;;  %v2965_v18 = vcombine.high %v2955_v14, %v2955_v14  ;;  %v6829_v19 = vrot.slane %v2955_v14, %v6252_v52 }
 0xbdc   :  { %v3014_v20 = vcombine.high %v2956_v15, %v2956_v15  ;;  %v3021_v22 = vrot.slane %v2956_v15, %v6252_v52  ;;  %v3081_v23 = vcombine.high %v2961_v8, %v2961_v8  ;;  %v3088_v26 = vrot.slane %v2961_v8, %v6252_v52 }
 0xbdd   :  { %v6834_v27 = vrot.slane %v2965_v18, %v6252_v52  ;;  %v2980_v28 = vcombine.high %v6829_v19, %v6829_v19  ;;  %v6840_v29 = vrot.slane %v6829_v19, %v6252_v52  ;;  %v3130_v30 = vcombine.high %v2962_v17, %v2962_v17 }
 0xbde   :  { %v3028_v31 = vrot.slane %v3014_v20, %v6252_v52  ;;  %v3029_v32 = vcombine.high %v3021_v22, %v3021_v22  ;;  %v3037_v33 = vrot.slane %v3021_v22, %v6252_v52  ;;  %v6845_v34 = vrot.slane %v3081_v23, %v6252_v52 }
 0xbdf   :  { %v2981_v35 = vcombine.high %v6834_v27, %v6834_v27  ;;  %v3096_v37 = vcombine.high %v3088_v26, %v3088_v26  ;;  %v6850_v24 = vrot.slane %v3088_v26, %v6252_v52  ;;  %v3137_v36 = vrot.slane %v2962_v17, %v6252_v52 }
 0xbe0   :  { %v3030_v41 = vcombine.high %v3028_v31, %v3028_v31  ;;  %v3097_v46 = vcombine.high %v6845_v34, %v6845_v34  ;;  %v6857_v47 = vrot.slane %v6845_v34, %v6252_v52  ;;  %v3144_v48 = vrot.slane %v3130_v30, %v6252_v52 }
 0xbe1   :  { %v6861_v54 = vrot.slane %v3096_v37, %v6252_v52  ;;  %v3126_v55 = vcombine.high %v6850_v24, %v6850_v24  ;;  %v3145_v39 = vcombine.high %v3137_v36, %v3137_v36  ;;  %v3153_v40 = vrot.slane %v3137_v36, %v6252_v52 }
 0xbe2   :  { %v3146_v51 = vcombine.high %v3144_v48, %v3144_v48  ;;  %v3160_v56 = vrot.slane %v3144_v48, %v6252_v52  ;;  %v3044_v21 = vrot.slane %v3028_v31, %v6252_v52  ;;  %v3051_v25 = vrot.slane %v3029_v32, %v6252_v52 }
 0xbe3   :  { %v3167_v63 = vrot.slane %v3145_v39, %v6252_v52  ;;  %v3175_v0 = vcombine.high %v3153_v40, %v3153_v40  ;;  %v3058_v1 = vrot.slane %v3030_v41, %v6252_v52  ;;  %v3059_v3 = vcombine.high %v3037_v33, %v3037_v33 }
 0xbe4   :  { %v3060_v10 = vcombine.high %v3044_v21, %v3044_v21  ;;  %v3061_v11 = vcombine.high %v3051_v25, %v3051_v25  ;;  %v3174_v12 = vrot.slane %v3146_v51, %v6252_v52  ;;  %v3176_v13 = vcombine.high %v3160_v56, %v3160_v56 }
 0xbe5   :  { %v3062_v14 = vcombine.high %v3058_v1, %v3058_v1  ;;  %v3177_v15 = vcombine.high %v3167_v63, %v3167_v63  ;;  %v3214_v8 = vrot.slane %v3153_v40, %v6258_v57  ;;  %v3218_v17 = vrot.slane %v3167_v63, %v6258_v57 }
 0xbe6   :  { %v3178_v18 = vcombine.high %v3174_v12, %v3174_v12  ;;  %v3222_v19 = vrot.slane %v3175_v0, %v6258_v57  ;;  %v3230_v20 = vrot.slane %v3160_v56, %v6258_v57  ;;  %v3234_v22 = vrot.slane %v3174_v12, %v6258_v57 }
 0xbe7   :  { %v3226_v23 = vrot.slane %v3177_v15, %v6258_v57  ;;  %v3238_v26 = vrot.slane %v3176_v13, %v6258_v57  ;;  %v3267_v30 = vsel %vm217_vm5, %v3037_v33, %v3214_v8  ;;  %v3268_v31 = vsel %vm217_vm5, %v3051_v25, %v3218_v17 }
 0xbe8   :  { %v3242_v32 = vrot.slane %v3178_v18, %v6258_v57  ;;  %v3269_v34 = vsel %vm217_vm5, %v3059_v3, %v3222_v19  ;;  %v3271_v37 = vsel %vm217_vm5, %v3044_v21, %v3230_v20  ;;  %v3272_v36 = vsel %vm217_vm5, %v3058_v1, %v3234_v22 }
 0xbe9   :  { %v3270_v41 = vsel %vm217_vm5, %v3061_v11, %v3226_v23  ;;  %v3273_v48 = vsel %vm217_vm5, %v3060_v10, %v3238_v26  ;;  %v3375_v39 = vmul.f32 %v6784_v49, %v3267_v30  ;;  %v3376_v33 = vmul.f32 %v3332_v38, %v3268_v31 }
 0xbea   :  { %v3274_v40 = vsel %vm217_vm5, %v3062_v14, %v3242_v32  ;;  %v3377_v51 = vmul.f32 %v6787_v53, %v3269_v34  ;;  %v3378_v56 = vmul.f32 %v3333_v42, %v3270_v41  ;;  %v3379_v21 = vmul.f32 %v6794_v44, %v3271_v37 }
 0xbeb   :  { %v3380_v25 = vmul.f32 %v3349_v5, %v3272_v36  ;;  %v3381_v63 = vmul.f32 %v6797_v45, %v3273_v48  ;;  %v3382_v49 = vmul.f32 %v3350_v6, %v3274_v40  ;;  %v3433_v38 = vcombine.low %v3375_v39, %v3376_v33 }
 0xbec   :  { %v3434_v0 = vcombine.low %v3377_v51, %v3378_v56  ;;  %v2995_v1 = vrot.slane %v6834_v27, %v6252_v52  ;;  %v3002_v53 = vrot.slane %v2980_v28, %v6252_v52  ;;  %v3009_v42 = vrot.slane %v2981_v35, %v6252_v52 }
 0xbed   :  { %v3441_v3 = vrot.slane %v3433_v38, %v6368_v43  ;;  %v3450_v10 = vcombine.low %v3379_v21, %v3380_v25  ;;  %v3451_v44 = vcombine.low %v3381_v63, %v3382_v49  ;;  %v3010_v5 = vcombine.high %v6840_v29, %v6840_v29 }
 0xbee   :  { %v3448_v11 = vrot.slane %v3434_v0, %v6368_v43  ;;  %v3011_v45 = vcombine.high %v2995_v1, %v2995_v1  ;;  %v3012_v6 = vcombine.high %v3002_v53, %v3002_v53  ;;  %v3013_v12 = vcombine.high %v3009_v42, %v3009_v42  ;;  %v5926_v0 = vld [vmem:[%s7582_s22 + $0x8] sm:$0xff]  }
 0xbef   :  { %v3458_v13 = vrot.slane %v3450_v10, %v6368_v43  ;;  %v3465_v27 = vrot.slane %v3451_v44, %v6368_v43  ;;  %v3125_v28 = vrot.slane %v3097_v46, %v6252_v52  ;;  %v3127_v35 = vcombine.high %v6857_v47, %v6857_v47  ;;  %v5933_v10 = vld [vmem:[%s7582_s22 + $0x60] sm:$0xff]  }
 0xbf0   :  { %v3449_v14 = vcombine.low %v3441_v3, %v3448_v11  ;;  %v3128_v15 = vcombine.high %v6861_v54, %v6861_v54  ;;  %v3182_v8 = vrot.slane %v6850_v24, %v6258_v57  ;;  %v3186_v17 = vrot.slane %v6861_v54, %v6258_v57  ;;  %v5930_v3 = vld [vmem:[%s7582_s22 + $0x18] sm:$0xff]   ;;  %v5932_v44 = vld [vmem:[%s7582_s22 + $0x20] sm:$0xff]   ;;  %v5934_v11 = vld [vmem:[%s7582_s22 + $0x28] sm:$0xff]  }
 0xbf1   :  { %v3466_v18 = vcombine.low %v3458_v13, %v3465_v27  ;;  %v3129_v19 = vcombine.high %v3125_v28, %v3125_v28  ;;  %v3190_v46 = vrot.slane %v3126_v55, %v6258_v57  ;;  %v3198_v20 = vrot.slane %v6857_v47, %v6258_v57 }
 0xbf2   :  { %v3194_v22 = vrot.slane %v3128_v15, %v6258_v57  ;;  %v3202_v23 = vrot.slane %v3125_v28, %v6258_v57  ;;  %v3206_v26 = vrot.slane %v3127_v35, %v6258_v57  ;;  %v3259_v30 = vsel %vm217_vm5, %v6840_v29, %v3182_v8 }
 0xbf3   :  { %v5838_v54 = vpack.i.bf16 %v3466_v18, %v3449_v14  ;;  %v3210_v31 = vrot.slane %v3129_v19, %v6258_v57  ;;  %v3260_v32 = vsel %vm217_vm5, %v3002_v53, %v3186_v17  ;;  %v3261_v24 = vsel %vm217_vm5, %v3010_v5, %v3190_v46  ;;  %v5928_v53 = vld [vmem:[%s7582_s22 + $0x10] sm:$0xff]   ;;  %v5935_v5 = vld [vmem:[%s7582_s22 + $0x68] sm:$0xff]  }
 0xbf4   :  { %v3262_v55 = vsel %vm217_vm5, %v3012_v6, %v3194_v22  ;;  %v3263_v47 = vsel %vm217_vm5, %v2995_v1, %v3198_v20  ;;  %v3264_v34 = vsel %vm217_vm5, %v3009_v42, %v3202_v23  ;;  %v3265_v37 = vsel %vm217_vm5, %v3011_v45, %v3206_v26  ;;  %v5929_v1 = vld [vmem:[%s7582_s22 + $0x50] sm:$0xff]   ;;  %v5931_v42 = vld [vmem:[%s7582_s22 + $0x58] sm:$0xff]  }
 0xbf5   :  { %5839 = vrot.lane.b32.xlu1 %v5838_v54, %s5987_s21  ;;  %v3266_v36 = vsel %vm217_vm5, %v3013_v12, %v3210_v31  ;;  %v3367_v29 = vmul.f32 %v6800_v58, %v3259_v30  ;;  %v3368_v41 = vmul.f32 %v3298_v7, %v3260_v32  ;;  %v3369_v48 = vmul.f32 %v6803_v60, %v3261_v24  ;;  %v5937_v45 = vld [vmem:[%s7582_s22 + $0x70] sm:$0xff]   ;;  %v5938_v12 = vld [vmem:[%s7582_s22 + $0x38] sm:$0xff]   ;;  %v5940_v30 = vld [vmem:[%s7582_s22 + $0x40] sm:$0xff]  }
 0xbf6   :  { %v3370_v39 = vmul.f32 %v3299_v9, %v3262_v55  ;;  %v3371_v33 = vmul.f32 %v6811_v61, %v3263_v47  ;;  %v3372_v40 = vmul.f32 %v3315_v16, %v3264_v34  ;;  %v3373_v51 = vmul.f32 %v6814_v62, %v3265_v37  ;;  %v5925_v62 = vld [vmem:[%s7582_s22] sm:$0xff]   ;;  %v5936_v6 = vld [vmem:[%s7582_s22 + $0x30] sm:$0xff]   ;;  %v5939_v26 = vld [vmem:[%s7582_s22 + $0x78] sm:$0xff]  }
 0xbf7   :  { %v3374_v56 = vmul.f32 %v3316_v59, %v3266_v36  ;;  %v3399_v58 = vcombine.low %v3367_v29, %v3368_v41  ;;  %v5927_v59 = vld [vmem:[%s7582_s22 + $0x48] sm:$0xff]   ;;  %3624 = vmatpush1.bf16.msra.mxu1 %v5925_v62 }
 0xbf8   :  { %v3400_v7 = vcombine.low %v3369_v48, %v3370_v39  ;;  %v3416_v21 = vcombine.low %v3371_v33, %v3372_v40  ;;  %3806 = vmatpush1.bf16.msra.mxu0 %v5927_v59  ;;  %3625 = vmatprep.subr.bf16.mxu1 %v5983_v50  ;;  %v5941_v48 = vld [vmem:[%s7582_s22 + $0x80] sm:$0xff]  }
 0xbf9   :  { %v3417_v25 = vcombine.low %v3373_v51, %v3374_v56  ;;  %v3407_v63 = vrot.slane %v3399_v58, %v6368_v43  ;;  %3807 = vmatprep.subr.bf16.mxu0 %v5983_v50 }
 0xbfa   :  { %v3414_v60 = vrot.slane %v3400_v7, %v6368_v43  ;;  %v3424_v9 = vrot.slane %v3416_v21, %v6368_v43  ;;  %v5942_v21 = vld [vmem:[%s7582_s22 + $0x88] sm:$0xff]  }
 0xbfb   :  { %v3431_v49 = vrot.slane %v3417_v25, %v6368_v43  ;;  %3626 = vmatpush1.bf16.msra.mxu1 %v5926_v0 }
 0xbfc   :  { %v3415_v61 = vcombine.low %v3407_v63, %v3414_v60  ;;  %3808 = vmatpush1.bf16.msra.mxu0 %v5929_v1  ;;  %3627 = vmatprep.subr.bf16.mxu1 %v5983_v50 }
 0xbfd   :  { %v3432_v16 = vcombine.low %v3424_v9, %v3431_v49  ;;  %3809 = vmatprep.subr.bf16.mxu0 %v5983_v50 }
 0xbff   :  { %v5833_v38 = vpack.i.bf16 %v3432_v16, %v3415_v61  ;;  %3628 = vmatpush1.bf16.msra.mxu1 %v5928_v53 }
 0xc00   :  { %3810 = vmatpush1.bf16.msra.mxu0 %v5931_v42  ;;  %3629 = vmatprep.subr.bf16.mxu1 %v5983_v50 }
 0xc01   :  { %5834 = vrot.lane.b32.xlu0 %v5833_v38, %s5987_s21  ;;  %3811 = vmatprep.subr.bf16.mxu0 %v5983_v50 }
 0xc03   :  { %3630 = vmatpush1.bf16.msra.mxu1 %v5930_v3 }
 0xc04   :  { %3812 = vmatpush1.bf16.msra.mxu0 %v5933_v10  ;;  %3631 = vmatprep.subr.bf16.mxu1 %v5983_v50 }
 0xc05   :  { %3813 = vmatprep.subr.bf16.mxu0 %v5983_v50 }
 0xc07   :  { %3632 = vmatpush1.bf16.msra.mxu1 %v5932_v44 }
 0xc08   :  { %3814 = vmatpush1.bf16.msra.mxu0 %v5935_v5  ;;  %3633 = vmatprep.subr.bf16.mxu1 %v5983_v50 }
 0xc09   :  { %3815 = vmatprep.subr.bf16.mxu0 %v5983_v50 }
 0xc0b   :  { %3634 = vmatpush1.bf16.msra.mxu1 %v5934_v11 }
 0xc0c   :  { %3816 = vmatpush1.bf16.msra.mxu0 %v5937_v45  ;;  %3635 = vmatprep.subr.bf16.mxu1 %v5983_v50 }
 0xc0d   :  { %3817 = vmatprep.subr.bf16.mxu0 %v5983_v50 }
 0xc0f   :  { %3636 = vmatpush1.bf16.msra.mxu1 %v5936_v6 }
 0xc10   :  { %3637 = vmatprep.subr.bf16.mxu1 %v5983_v50  ;;  %3818 = vmatpush1.bf16.msra.mxu0 %v5939_v26 }
 0xc11   :  { %3819 = vmatprep.subr.bf16.mxu0 %v5983_v50 }
 0xc13   :  { %3638 = vmatpush1.bf16.msra.mxu1 %v5938_v12 }
 0xc14   :  { %3639 = vmatprep.subr.bf16.mxu1 %v5983_v50  ;;  %3820 = vmatpush1.bf16.msra.mxu0 %v5941_v48 }
 0xc15   :  { %3821 = vmatprep.subr.bf16.mxu0 %v5983_v50 }
 0xc17   :  { %3640 = vmatpush1.bf16.msra.mxu1 %v5940_v30 }
 0xc18   :  { %5771 = vmatprep.subr.bf16.mxu1 %v5975_v2  ;;  %3822 = vmatpush1.bf16.msra.mxu0 %v5942_v21  ;;  %v3923_v21 = vld [vmem:[%s7585_s25 + $0x38] sm:$0xff] }
 0xc19   :  { %5789 = vmatprep.subr.bf16.mxu0 %v5975_v2 }
 0xc67   :  { %v5840_v13 = vpop.permute.xlu1 %5839 }
 0xc68   :  { %v5842_v27 = vunpack.i.h.bf16 %v5840_v13  ;;  %v5841_v28 = vunpack.i.l.bf16 %v5840_v13 }
 0xc6a   :  { %v3482_v35 = vsel %vm2784_vm3, 0.0, %v5842_v27  ;;  %v3481_v14 = vsel %vm2784_vm3, 0.0, %v5841_v28 }
 0xc6b   :  { %v3487_v15 = vsel %vm3483_vm9, %v3482_v35, 0.0  ;;  %v3486_v8 = vsel %vm3483_vm9, %v3481_v14, 0.0 }
 0xc6c   :  { %v3496_v17 = vrot.slane %v3487_v15, 7  ;;  %v3495_v18 = vrot.slane %v3486_v8, 7 }
 0xc6e   :  { %v3497_v46 = vsel %vm217_vm5, %v3495_v18, %v3496_v17  ;;  %v3505_v20 = vsel %vm217_vm5, 0.0, %v3495_v18  ;;  %v3507_v37 = vsel %vm217_vm5, %v3496_v17, 0.0 }
 0xc6f   :  { %v7032_v32 = vpack.c.bf16 %v3497_v46, %v3505_v20  ;;  %v3511_v51 = vpack.c.bf16 %v3507_v37, %v3507_v37 }
 0xc71   :  { %v3528_v40 = vshll.u32 %v7032_v32, 16  ;;  %v3674_v9 = vshrl.u32 %v3511_v51, 16  ;;  %v3526_v16 = vshrl.u32 %v7032_v32, 16  ;;  %v3533_v38 = vshll.u32 %v3511_v51, 16 }
 0xc73   :  { %v5835_v19 = vpop.permute.xlu0 %5834  ;;  %v3530_v60 = vrot.slane %v3528_v40, 1  ;;  %v3535_v59 = vrot.slane %v3533_v38, 1 }
 0xc74   :  { %v5837_v22 = vunpack.i.h.bf16 %v5835_v19  ;;  %v5836_v23 = vunpack.i.l.bf16 %v5835_v19 }
 0xc75   :  { %v3531_v62 = vor.u32 %v3530_v60, %v3526_v16  ;;  %v3925_v60 = vld [vmem:[%s7585_s25 + $0x48] sm:$0xff] }
 0xc76   :  { %v3480_v54 = vsel %vm2784_vm3, 0.0, %v5837_v22  ;;  %v3479_v31 = vsel %vm2784_vm3, 0.0, %v5836_v23 }
 0xc77   :  { %v3485_v24 = vsel %vm3483_vm9, %v3480_v54, 0.0  ;;  %v3484_v55 = vsel %vm3483_vm9, %v3479_v31, 0.0  ;;  %v3536_v0 = vsel %vm3512_vm12, %v3531_v62, %v3535_v59 }
 0xc78   :  { %v3493_v47 = vrot.slane %v3485_v24, 7  ;;  %v3492_v34 = vrot.slane %v3484_v55, 7 }
 0xc7a   :  { %v3506_v36 = vsel %vm217_vm5, %v3493_v47, 0.0  ;;  %v3494_v29 = vsel %vm217_vm5, %v3492_v34, %v3493_v47  ;;  %v3504_v41 = vsel %vm217_vm5, 0.0, %v3492_v34 }
 0xc7b   :  { %v3509_v39 = vpack.c.bf16 %v3506_v36, %v3506_v36  ;;  %v3508_v33 = vpack.c.bf16 %v3494_v29, %v3504_v41  ;;  %v3916_v29 = vld [vmem:[%s7585_s25] sm:$0xff]  ;;  %v3917_v41 = vld [vmem:[%s7585_s25 + $0x8] sm:$0xff] }
 0xc7c   :  { %v5772_v48 = vpack.c.bf16 %v3917_v41, %v3916_v29 }
 0xc7d   :  { %v3672_v56 = vshrl.u32 %v3509_v39, 16  ;;  %v3516_v58 = vshll.u32 %v3508_v33, 16  ;;  %v3521_v7 = vshll.u32 %v3509_v39, 16  ;;  %v3514_v25 = vshrl.u32 %v3508_v33, 16 }
 0xc7f   :  { %3676 = vrot.lane.b32.xlu1 %v3672_v56, %s5988_s20  ;;  %v3518_v63 = vrot.slane %v3516_v58, 1  ;;  %v3523_v61 = vrot.slane %v3521_v7, 1  ;;  %v3921_v56 = vld [vmem:[%s7585_s25 + $0x28] sm:$0xff]  ;;  %v3922_v7 = vld [vmem:[%s7585_s25 + $0x30] sm:$0xff] }
 0xc81   :  { %v3519_v49 = vor.u32 %v3518_v63, %v3514_v25  ;;  %v5781_v25 = vpack.c.bf16 %v3923_v21, %v3922_v7  ;;  %v3924_v63 = vld [vmem:[%s7585_s25 + $0x40] sm:$0xff] }
 0xc83   :  { %3678 = vrot.lane.b32.xlu1 %v3674_v9, %s5988_s20  ;;  %v3524_v50 = vsel %vm3512_vm12, %v3519_v49, %v3523_v61  ;;  %v5784_v9 = vpack.c.bf16 %v3925_v60, %v3924_v63  ;;  %v3926_v49 = vld [vmem:[%s7585_s25 + $0x50] sm:$0xff]  ;;  %v3927_v61 = vld [vmem:[%s7585_s25 + $0x58] sm:$0xff] }
 0xc84   :  { %3537 = vrot.lane.b32.xlu0 %v3524_v50, %s5988_s20  ;;  %v5787_v16 = vpack.c.bf16 %v3927_v61, %v3926_v49 }
 0xc88   :  { %3539 = vrot.lane.b32.xlu0 %v3536_v0, %s5988_s20 }
 0xcf1   :  { %v3677_v1 = vpop.permute.xlu1 %3676 }
 0xcf2   :  { %v3681_v53 = vsel %vm2233_vm10, %v3509_v39, %v3677_v1  ;;  %v3700_v42 = vshll.u32 %v3677_v1, 16  ;;  %v3918_v39 = vld [vmem:[%s7585_s25 + $0x10] sm:$0xff] }
 0xcf3   :  { %v3690_v5 = vshll.u32 %v3681_v53, 16 }
 0xcf4   :  { %v3702_v13 = vrot.slane %v3700_v42, 1 }
 0xcf5   :  { %v3679_v11 = vpop.permute.xlu1 %3678  ;;  %v3692_v18 = vrot.slane %v3690_v5, 1 }
 0xcf6   :  { %v3538_v3 = vpop.permute.xlu0 %3537  ;;  %v3720_v14 = vshll.u32 %v3679_v11, 16  ;;  %v3683_v20 = vsel %vm2233_vm10, %v3511_v51, %v3679_v11  ;;  %v3920_v51 = vld [vmem:[%s7585_s25 + $0x20] sm:$0xff] }
 0xcf7   :  { %v3696_v10 = vshll.u32 %v3538_v3, 16  ;;  %5289 = vmatprep.mubr.msk.bf16.mxu1 %vm98_vm1, %v3538_v3  ;;  %v3542_v44 = vsel %vm2233_vm10, %v3508_v33, %v3538_v3  ;;  %v3694_v6 = vshrl.u32 %v3538_v3, 16  ;;  %v3710_v55 = vshll.u32 %v3683_v20, 16  ;;  %v3919_v33 = vld [vmem:[%s7585_s25 + $0x18] sm:$0xff] }
 0xcf8   :  { %3656 = vmatmul.mubr.bf16.vlgmr.msra.gmra.mrb[24].mxu1 %v3542_v44  ;;  %v3686_v45 = vshll.u32 %v3542_v44, 16  ;;  %v3684_v27 = vshrl.u32 %v3542_v44, 16  ;;  %v3722_v31 = vrot.slane %v3720_v14, 1  ;;  %v5775_v40 = vpack.c.bf16 %v3919_v33, %v3918_v39 }
 0xcf9   :  { %v3698_v12 = vrot.slane %v3696_v10, 1  ;;  %v3712_v37 = vrot.slane %v3710_v55, 1  ;;  %5773 = vmatpush3.bf16.msra.mxu1 %v5772_v48  ;;  %v5778_v58 = vpack.c.bf16 %v3921_v56, %v3920_v51 }
 0xcfa   :  { %v3688_v28 = vrot.slane %v3686_v45, 1  ;;  %v3540_v35 = vpop.permute.xlu0 %3539  ;;  %5774 = vmatprep.subr.bf16.mxu1 %v5975_v2 }
 0xcfb   :  { %v3699_v15 = vor.u32 %v3698_v12, %v3694_v6  ;;  %v3716_v8 = vshll.u32 %v3540_v35, 16  ;;  %5290 = vmatprep.mubr.msk.bf16.mxu1 %vm98_vm1, %v3540_v35  ;;  %v3545_v17 = vsel %vm2233_vm10, %v7032_v32, %v3540_v35  ;;  %v3714_v22 = vshrl.u32 %v3540_v35, 16 }
 0xcfc   :  { %v3689_v19 = vor.u32 %v3688_v28, %v3684_v27  ;;  %v3706_v46 = vshll.u32 %v3545_v17, 16  ;;  %v3704_v32 = vshrl.u32 %v3545_v17, 16 }
 0xcfd   :  { %v3718_v23 = vrot.slane %v3716_v8, 1  ;;  %v3703_v26 = vsel %vm3512_vm12, %v3699_v15, %v3702_v13  ;;  %5776 = vmatpush3.bf16.msra.mxu1 %v5775_v40 }
 0xcfe   :  { %5318 = vmatprep.mubr.msk.bf16.mxu0 %vm98_vm1, %v3703_v26  ;;  %v3693_v30 = vsel %vm3512_vm12, %v3689_v19, %v3692_v18  ;;  %v3708_v54 = vrot.slane %v3706_v46, 1  ;;  %5777 = vmatprep.subr.bf16.mxu1 %v5975_v2 }
 0xcff   :  { %v3719_v24 = vor.u32 %v3718_v23, %v3714_v22  ;;  %3838 = vmatmul.mubr.bf16.vlgmr.msra.gmra.mrb[28].mxu0 %v3693_v30 }
 0xd00   :  { %3664 = vmatmul.mubr.bf16.gmra.mrb[28].mxu1 %v3545_v17  ;;  %v3709_v34 = vor.u32 %v3708_v54, %v3704_v32  ;;  %5791 = vmatpush3.bf16.msra.mxu0 %v5772_v48 }
 0xd01   :  { %v3723_v47 = vsel %vm3512_vm12, %v3719_v24, %v3722_v31  ;;  %5650 = vmatprep.mubr.msk.f32.mxu1 %vm5976_vm0, %v5977_v4  ;;  %5792 = vmatprep.subr.bf16.mxu0 %v5975_v2 }
 0xd02   :  { %5319 = vmatprep.mubr.msk.bf16.mxu0 %vm98_vm1, %v3723_v47  ;;  %v3713_v36 = vsel %vm3512_vm12, %v3709_v34, %v3712_v37  ;;  %5779 = vmatpush3.bf16.msra.mxu1 %v5778_v58  ;;  %vm4092_vm1 = vcmask 1042432  }
 0xd03   :  { %5780 = vmatprep.subr.bf16.mxu1 %v5975_v2 }
 0xd04   :  { %5794 = vmatpush3.bf16.msra.mxu0 %v5775_v40 }
 0xd05   :  { %5795 = vmatprep.subr.bf16.mxu0 %v5975_v2 }
 0xd06   :  { %5782 = vmatpush3.bf16.msra.mxu1 %v5781_v25 }
 0xd07   :  { %3846 = vmatmul.mubr.bf16.gmra.mrb[32].mxu0 %v3713_v36  ;;  %5783 = vmatprep.subr.bf16.mxu1 %v5975_v2 }
 0xd08   :  { %5677 = vmatprep.mubr.msk.f32.mxu0 %vm5976_vm0, %v5977_v4  ;;  %5797 = vmatpush3.bf16.msra.mxu0 %v5778_v58 }
 0xd09   :  { %5798 = vmatprep.subr.bf16.mxu0 %v5975_v2 }
 0xd0a   :  { %5785 = vmatpush3.bf16.msra.mxu1 %v5784_v9 }
 0xd0b   :  { %5786 = vmatprep.subr.bf16.mxu1 %v5975_v2 }
 0xd0c   :  { %5800 = vmatpush3.bf16.msra.mxu0 %v5781_v25 }
 0xd0d   :  { %5801 = vmatprep.subr.bf16.mxu0 %v5975_v2 }
 0xd0e   :  { %5788 = vmatpush3.bf16.msra.mxu1 %v5787_v16 }
 0xd0f   :  { %5680 = vmatprep.subr.mxu1 %v5977_v4 }
 0xd10   :  { %5803 = vmatpush3.bf16.msra.mxu0 %v5784_v9 }
 0xd11   :  { %5804 = vmatprep.subr.bf16.mxu0 %v5975_v2 }
 0xd14   :  { %5806 = vmatpush3.bf16.msra.mxu0 %v5787_v16 }
 0xd15   :  { %5685 = vmatprep.subr.mxu0 %v5977_v4 }
 0xdcb   :  { %v7119_v38 = vpop.f32.mrb[24].mxu1 }
 0xdcc   :  { %v3881_v50 = vmul.f32 %v7119_v38, %v7119_v38  ;;  %v3659_v62 = vpop.f32.mrb[25].mxu1  ;;  %v3854_v0 = vsel %vm185_vm4, %v7119_v38, 0.0 }
 0xdcd   :  { %v7123_v59 = vpop.f32.mrb[26].mxu1 }
 0xdce   :  { %v3855_v2 = vsel %vm185_vm4, %v7123_v59, 0.0  ;;  %v3882_v1 = vmul.f32 %v7123_v59, %v7123_v59  ;;  %v3662_v53 = vpop.f32.mrb[27].mxu1  ;;  %v3885_v3 = vsel %vm185_vm4, %v3881_v50, 0.0 }
 0xdcf   :  { %v3856_v42 = vadd.f32 %v3855_v2, %v3854_v0 }
 0xdd0   :  { %v3886_v10 = vsel %vm185_vm4, %v3882_v1, 0.0 }
 0xdd1   :  { %v3887_v44 = vadd.f32 %v3886_v10, %v3885_v3 }
 0xdd2   :  { %v7133_v5 = vpop.f32.mrb[28].mxu0 }
 0xdd3   :  { %v3898_v11 = vmul.f32 %v7133_v5, %v7133_v5  ;;  %v7137_v45 = vpop.f32.mrb[28].mxu1  ;;  %v3841_v6 = vpop.f32.mrb[29].mxu0  ;;  %v3867_v35 = vsel %vm185_vm4, %v7133_v5, 0.0 }
 0xdd4   :  { %v3857_v12 = vsel %vm185_vm4, %v7137_v45, 0.0  ;;  %v3883_v13 = vmul.f32 %v7137_v45, %v7137_v45  ;;  %v3667_v27 = vpop.f32.mrb[29].mxu1  ;;  %v7143_v28 = vpop.f32.mrb[30].mxu0 }
 0xdd5   :  { %v3858_v14 = vadd.f32 %v3857_v12, %v3856_v42  ;;  %v3868_v15 = vsel %vm185_vm4, %v7143_v28, 0.0  ;;  %v3899_v8 = vmul.f32 %v7143_v28, %v7143_v28  ;;  %v7151_v17 = vpop.f32.mrb[30].mxu1  ;;  %v3844_v18 = vpop.f32.mrb[31].mxu0  ;;  %v3902_v26 = vsel %vm185_vm4, %v3898_v11, 0.0 }
 0xdd6   :  { %v3888_v19 = vsel %vm185_vm4, %v3883_v13, 0.0  ;;  %v3869_v46 = vadd.f32 %v3868_v15, %v3867_v35  ;;  %v3859_v20 = vsel %vm185_vm4, %v7151_v17, 0.0  ;;  %v3884_v22 = vmul.f32 %v7151_v17, %v7151_v17  ;;  %v3670_v23 = vpop.f32.mrb[31].mxu1 }
 0xdd7   :  { %v3889_v30 = vadd.f32 %v3888_v19, %v3887_v44  ;;  %v3903_v54 = vsel %vm185_vm4, %v3899_v8, 0.0  ;;  %v3860_v31 = vadd.f32 %v3859_v20, %v3858_v14  ;;  %v4087_v8 = vld [vmem:[%s7586_s26] sm:$0x7] }
 0xdd8   :  { %v3904_v24 = vadd.f32 %v3903_v54, %v3902_v26  ;;  %v3890_v55 = vsel %vm185_vm4, %v3884_v22, 0.0 }
 0xdd9   :  { %v3861_v32 = vrot.slane %v3860_v31, 4  ;;  %v3891_v47 = vadd.f32 %v3890_v55, %v3889_v30 }
 0xdda   :  { %v7161_v34 = vpop.f32.mrb[32].mxu0 }
 0xddb   :  { %v3862_v37 = vadd.f32 %v3861_v32, %v3860_v31  ;;  %v3892_v36 = vrot.slane %v3891_v47, 4  ;;  %v3870_v29 = vsel %vm185_vm4, %v7161_v34, 0.0  ;;  %v3900_v41 = vmul.f32 %v7161_v34, %v7161_v34  ;;  %v3849_v48 = vpop.f32.mrb[33].mxu0  ;;  %v4084_v32 = vld [vmem:[%s7584_s24] sm:$0x1] }
 0xddc   :  { %v3871_v39 = vadd.f32 %v3870_v29, %v3869_v46  ;;  %v7167_v33 = vpop.f32.mrb[34].mxu0 }
 0xddd   :  { %v3893_v40 = vadd.f32 %v3892_v36, %v3891_v47  ;;  %v3905_v51 = vsel %vm185_vm4, %v3900_v41, 0.0  ;;  %v3872_v56 = vsel %vm185_vm4, %v7167_v33, 0.0  ;;  %v3852_v58 = vpop.f32.mrb[35].mxu0  ;;  %v3863_v7 = vrot.slane %v3862_v37, 2 }
 0xdde   :  { %v3906_v21 = vadd.f32 %v3905_v51, %v3904_v24  ;;  %v3873_v25 = vadd.f32 %v3872_v56, %v3871_v39  ;;  %v3901_v63 = vmul.f32 %v7167_v33, %v7167_v33 }
 0xddf   :  { %v3894_v49 = vrot.slane %v3893_v40, 2  ;;  %v3864_v16 = vadd.f32 %v3863_v7, %v3862_v37 }
 0xde0   :  { %v3874_v60 = vrot.slane %v3873_v25, 4  ;;  %v3907_v9 = vsel %vm185_vm4, %v3901_v63, 0.0 }
 0xde1   :  { %v3908_v61 = vadd.f32 %v3907_v9, %v3906_v21  ;;  %v3895_v2 = vadd.f32 %v3894_v49, %v3893_v40  ;;  %v3865_v53 = vrot.slane %v3864_v16, 1 }
 0xde2   :  { %v3875_v50 = vadd.f32 %v3874_v60, %v3873_v25 }
 0xde3   :  { %v3909_v62 = vrot.slane %v3908_v61, 4  ;;  %v3896_v44 = vrot.slane %v3895_v2, 1  ;;  %v3866_v6 = vadd.f32 %v3865_v53, %v3864_v16 }
 0xde4   :  { %v3876_v0 = vrot.slane %v3875_v50, 2 }
 0xde5   :  { %v3910_v1 = vadd.f32 %v3909_v62, %v3908_v61  ;;  %v3897_v35 = vadd.f32 %v3896_v44, %v3895_v2 }
 0xde6   :  { %v3877_v42 = vadd.f32 %v3876_v0, %v3875_v50 }
 0xde7   :  { %v3911_v3 = vrot.slane %v3910_v1, 2 }
 0xde8   :  { %v3878_v10 = vrot.slane %v3877_v42, 1 }
 0xde9   :  { %v3912_v11 = vadd.f32 %v3911_v3, %v3910_v1 }
 0xdea   :  { %v3879_v12 = vadd.f32 %v3878_v10, %v3877_v42 }
 0xdeb   :  { %v3913_v13 = vrot.slane %v3912_v11, 1 }
 0xdec   :  { %v3880_v27 = vadd.f32 %v3879_v12, %v3866_v6 }
 0xded   :  { %v3914_v14 = vadd.f32 %v3913_v13, %v3912_v11 }
 0xdee   :  { %5651 = vmatmul.mubr.msk.f32.vlgmr.msra.gmra.mrb[32].mxu1 %vm185_vm4, %v3880_v27 }
 0xdef   :  { %v3915_v15 = vadd.f32 %v3914_v14, %v3897_v35  ;;  %5682 = vmatprep.mubr.msk.f32.mxu1 %vm5976_vm0, %v5977_v4  ;;  %5681 = vmatpush3.msk.msra.mxu1 %vm4092_vm1, %v4087_v8 }
 0xdf1   :  { %5678 = vmatmul.mubr.msk.f32.vlgmr.msra.gmra.mrb[26].mxu0 %vm185_vm4, %v3915_v15 }
 0xdf2   :  { %5687 = vmatprep.mubr.msk.f32.mxu0 %vm5976_vm0, %v5977_v4  ;;  %5686 = vmatpush3.msk.msra.mxu0 %vm4092_vm1, %v4087_v8  ;;  %v4080_v4 = vld [vmem:[%s7583_s23] sm:$0x1]  ;;  %vm4088_vm0 = vcmask 23552   ;;  %s5989_s23 = smov [#allocation2]  }
 0xdf3   :  { %s5084_s24 = sshll.u32 %s5989_s23, 4  ;;  %s5085_s24 = int_to_ptr.vmem [resolvable:$true] %s5084_s24 }
 0xdf4   :  { %s5951_s28 = scalar_lea.vmem %s5085_s24, 1024  ;;  %p5956_p1 = scmp.lt.s32.totalorder %s5085_s24, %s5085_s24 }
 0xdf5   :  { %p5952_p0 = scmp.ne.s32.totalorder %s5085_s24, %s5951_s28  ;;  %p5957_p2 = scmp.lt.s32.totalorder %s5951_s28, %s5951_s28 }
 0xdf7   :  { %p5958_p3 = por %p5957_p2, %p5956_p1 }
 0xdf9   :  { %p5959_p4 = pnand %p5958_p3, %p5952_p0 }
 0xec1   :  { %v3997_v18 = vpop.f32.mrb[32].mxu1 }
 0xec2   :  { %v4075_v19 = vmul.f32 0.00048828125, %v3997_v18  ;;  %v5652_v46 = vpop.f32.mrb[33].mxu1 }
 0xec4   :  { %v4077_v20 = vmul.f32 %v4075_v19, %v4075_v19  ;;  %v4070_v22 = vpop.f32.mrb[26].mxu0 }
 0xec5   :  { %v4076_v23 = vmul.f32 0.00048828125, %v4070_v22  ;;  %v5679_v26 = vpop.f32.mrb[27].mxu0 }
 0xec7   :  { %v4078_v30 = vsub.f32 %v4076_v23, %v4077_v20 }
 0xec9   :  { %v4079_v54 = vmax.f32 %v4078_v30, 0.0 }
 0xecb   :  { %v4081_v31 = vadd.f32 1e-05, %v4079_v54 }
 0xecd   :  { %5949 = vrsqrt.f32 %v4081_v31 }
 0xed7   :  { %v5950_v24 = vpop.eup %5949 }
 0xed8   :  { %v4083_v55 = vmul.f32 %v5950_v24, %v4080_v4 }
 0xeda   :  { %5683 = vmatmul.mubr.msk.f32.vlgmr.msra.gmra.mrb[34].mxu1 %vm4088_vm0, %v4083_v55  ;;  %v4085_v47 = vmul.f32 %v4083_v55, %v4075_v19 }
 0xedc   :  { %v4086_v37 = vsub.f32 %v4084_v32, %v4085_v47 }
 0xede   :  { %5688 = vmatmul.mubr.msk.f32.vlgmr.msra.gmra.mrb[36].mxu0 %vm4088_vm0, %v4086_v37 }
 0xfad   :  { %v4162_v36 = vpop.f32.mrb[34].mxu1 }
 0xfae   :  { %v4242_v29 = vrot.slane %v4162_v36, %v6258_v57  ;;  %v5684_v41 = vpop.f32.mrb[35].mxu1 }
 0xfb0   :  { %v4243_v48 = vmul.f32 %v4242_v29, %v7119_v38  ;;  %v4244_v39 = vmul.f32 %v4242_v29, %v7123_v59  ;;  %v4245_v40 = vmul.f32 %v4242_v29, %v7137_v45  ;;  %v4246_v51 = vmul.f32 %v4242_v29, %v7151_v17 }
 0xfb1   :  { %v4255_v56 = vmul.f32 %v4242_v29, %v7133_v5  ;;  %v4256_v58 = vmul.f32 %v4242_v29, %v7143_v28  ;;  %v4257_v7 = vmul.f32 %v4242_v29, %v7161_v34  ;;  %v4258_v21 = vmul.f32 %v4242_v29, %v7167_v33  ;;  %v4235_v25 = vpop.f32.mrb[36].mxu0 }
 0xfb2   :  { %v4250_v63 = vrot.slane %v4235_v25, %v6258_v57  ;;  %v5689_v60 = vpop.f32.mrb[37].mxu0 }
 0xfb4   :  { %v4251_v9 = vadd.f32 %v4250_v63, %v4243_v48  ;;  %v4252_v38 = vadd.f32 %v4250_v63, %v4244_v39  ;;  %v4253_v49 = vadd.f32 %v4250_v63, %v4245_v40  ;;  %v4254_v59 = vadd.f32 %v4250_v63, %v4246_v51 }
 0xfb5   :  { %v4259_v61 = vadd.f32 %v4255_v56, %v4250_v63  ;;  %v4260_v45 = vadd.f32 %v4256_v58, %v4250_v63  ;;  %v4261_v16 = vadd.f32 %v4257_v7, %v4250_v63  ;;  %v4262_v17 = vadd.f32 %v4258_v21, %v4250_v63 }
 0xfb6   :  { %v4263_v50 = vmax.f32 %v4251_v9, 0.0  ;;  %v4264_v5 = vmax.f32 %v4252_v38, 0.0  ;;  %v4265_v62 = vmax.f32 %v4253_v49, 0.0  ;;  %v4266_v28 = vmax.f32 %v4254_v59, 0.0 }
 0xfb7   :  { %v4267_v0 = vmax.f32 %v4259_v61, 0.0  ;;  %v4268_v34 = vmax.f32 %v4260_v45, 0.0  ;;  %v7200_v2 = vmax.f32 %v4261_v16, 0.0  ;;  %v7202_v33 = vmax.f32 %v4262_v17, 0.0 }
 0xfb8   :  { %v4275_v1 = vcombine.high %v4263_v50, %v4263_v50  ;;  %v4282_v53 = vrot.slane %v4263_v50, %v6252_v52  ;;  %v4324_v42 = vcombine.high %v4264_v5, %v4264_v5  ;;  %v4331_v3 = vrot.slane %v4264_v5, %v6252_v52 }
 0xfb9   :  { %v4373_v10 = vcombine.high %v4265_v62, %v4265_v62  ;;  %v4380_v44 = vrot.slane %v4265_v62, %v6252_v52  ;;  %v4422_v11 = vcombine.high %v4266_v28, %v4266_v28  ;;  %v4429_v6 = vrot.slane %v4266_v28, %v6252_v52 }
 0xfba   :  { %v4289_v12 = vrot.slane %v4275_v1, %v6252_v52  ;;  %v4290_v13 = vcombine.high %v4282_v53, %v4282_v53  ;;  %v7210_v27 = vrot.slane %v4282_v53, %v6252_v52  ;;  %v4338_v35 = vrot.slane %v4324_v42, %v6252_v52 }
 0xfbb   :  { %v4339_v14 = vcombine.high %v4331_v3, %v4331_v3  ;;  %v7214_v15 = vrot.slane %v4331_v3, %v6252_v52  ;;  %v4387_v8 = vrot.slane %v4373_v10, %v6252_v52  ;;  %v4388_v18 = vcombine.high %v4380_v44, %v4380_v44 }
 0xfbc   :  { %v4291_v19 = vcombine.high %v4289_v12, %v4289_v12  ;;  %v7218_v46 = vrot.slane %v4289_v12, %v6252_v52  ;;  %v7221_v20 = vrot.slane %v4290_v13, %v6252_v52  ;;  %v4320_v22 = vcombine.high %v7210_v27, %v7210_v27 }
 0xfbd   :  { %v4340_v23 = vcombine.high %v4338_v35, %v4338_v35  ;;  %v7226_v26 = vrot.slane %v4338_v35, %v6252_v52  ;;  %v7229_v30 = vrot.slane %v4339_v14, %v6252_v52  ;;  %v4369_v54 = vcombine.high %v7214_v15, %v7214_v15 }
 0xfbe   :  { %v7234_v31 = vrot.slane %v4291_v19, %v6252_v52  ;;  %v4321_v4 = vcombine.high %v7218_v46, %v7218_v46  ;;  %v4322_v24 = vcombine.high %v7221_v20, %v7221_v20  ;;  %v4389_v55 = vcombine.high %v4387_v8, %v4387_v8 }
 0xfbf   :  { %v7241_v32 = vrot.slane %v4340_v23, %v6252_v52  ;;  %v7248_v36 = vrot.slane %v4380_v44, %v6252_v52  ;;  %v7253_v41 = vrot.slane %v4387_v8, %v6252_v52  ;;  %v7256_v48 = vrot.slane %v4388_v18, %v6252_v52 }
 0xfc0   :  { %v4323_v29 = vcombine.high %v7234_v31, %v7234_v31  ;;  %v7259_v39 = vrot.slane %v4389_v55, %v6252_v52  ;;  %v4436_v56 = vrot.slane %v4422_v11, %v6252_v52  ;;  %v4437_v58 = vcombine.high %v4429_v6, %v4429_v6 }
 0xfc1   :  { %v7273_v63 = vrot.slane %v4429_v6, %v6252_v52  ;;  %v4507_v49 = vcombine.high %v4267_v0, %v4267_v0  ;;  %v4514_v61 = vrot.slane %v4267_v0, %v6252_v52  ;;  %v4556_v45 = vcombine.high %v4268_v34, %v4268_v34 }
 0xfc2   :  { %v4438_v60 = vcombine.high %v4436_v56, %v4436_v56  ;;  %v7276_v9 = vrot.slane %v4436_v56, %v6252_v52  ;;  %v7279_v38 = vrot.slane %v4437_v58, %v6252_v52  ;;  %v4563_v16 = vrot.slane %v4268_v34, %v6252_v52 }
 0xfc3   :  { %v4521_v62 = vrot.slane %v4507_v49, %v6252_v52  ;;  %v4522_v28 = vcombine.high %v4514_v61, %v4514_v61  ;;  %v7294_v1 = vrot.slane %v4514_v61, %v6252_v52  ;;  %v4570_v0 = vrot.slane %v4556_v45, %v6252_v52 }
 0xfc4   :  { %v7286_v17 = vrot.slane %v4438_v60, %v6252_v52  ;;  %v4571_v53 = vcombine.high %v4563_v16, %v4563_v16  ;;  %v7303_v10 = vrot.slane %v4563_v16, %v6252_v52  ;;  %v4605_v55 = vcombine.high %v7200_v2, %v7200_v2 }
 0xfc5   :  { %v4523_v42 = vcombine.high %v4521_v62, %v4521_v62  ;;  %v7300_v3 = vrot.slane %v4521_v62, %v6252_v52  ;;  %v7306_v44 = vrot.slane %v4522_v28, %v6252_v52  ;;  %v4552_v11 = vcombine.high %v7294_v1, %v7294_v1 }
 0xfc6   :  { %v4572_v6 = vcombine.high %v4570_v0, %v4570_v0  ;;  %v7311_v12 = vrot.slane %v4570_v0, %v6252_v52  ;;  %v7319_v14 = vrot.slane %v4571_v53, %v6252_v52  ;;  %v4601_v8 = vcombine.high %v7303_v10, %v7303_v10 }
 0xfc7   :  { %v7314_v13 = vrot.slane %v4523_v42, %v6252_v52  ;;  %v4553_v35 = vcombine.high %v7300_v3, %v7300_v3  ;;  %v4554_v18 = vcombine.high %v7306_v44, %v7306_v44  ;;  %v4612_v60 = vrot.slane %v7200_v2, %v6252_v52 }
 0xfc8   :  { %v7326_v19 = vrot.slane %v4572_v6, %v6252_v52  ;;  %v4602_v23 = vcombine.high %v7311_v12, %v7311_v12  ;;  %v4603_v58 = vcombine.high %v7319_v14, %v7319_v14  ;;  %v4654_v49 = vcombine.high %v7202_v33, %v7202_v33 }
 0xfc9   :  { %v4555_v56 = vcombine.high %v7314_v13, %v7314_v13  ;;  %v4619_v45 = vrot.slane %v4605_v55, %v6252_v52  ;;  %v4661_v16 = vrot.slane %v7202_v33, %v6252_v52  ;;  %v4706_v62 = vrot.slane %v7294_v1, %v6258_v57 }
 0xfca   :  { %v4604_v61 = vcombine.high %v7326_v19, %v7326_v19  ;;  %v4620_v28 = vcombine.high %v4612_v60, %v4612_v60  ;;  %v4628_v0 = vrot.slane %v4612_v60, %v6252_v52  ;;  %v4668_v53 = vrot.slane %v4654_v49, %v6252_v52 }
 0xfcb   :  { %v4710_v2 = vrot.slane %v7306_v44, %v6258_v57  ;;  %v4621_v42 = vcombine.high %v4619_v45, %v4619_v45  ;;  %v7352_v6 = vrot.slane %v4619_v45, %v6252_v52  ;;  %v4669_v34 = vcombine.high %v4661_v16, %v4661_v16 }
 0xfcc   :  { %v4677_v55 = vrot.slane %v4661_v16, %v6252_v52  ;;  %v7356_v33 = vrot.slane %v4620_v28, %v6252_v52  ;;  %v4650_v50 = vcombine.high %v4628_v0, %v4628_v0  ;;  %v4670_v1 = vcombine.high %v4668_v53, %v4668_v53 }
 0xfcd   :  { %v7359_v5 = vrot.slane %v4668_v53, %v6252_v52  ;;  %v7362_v60 = vrot.slane %v4621_v42, %v6252_v52  ;;  %v4651_v44 = vcombine.high %v7352_v6, %v7352_v6  ;;  %v7367_v49 = vrot.slane %v4669_v34, %v6252_v52 }
 0xfce   :  { %v4699_v45 = vcombine.high %v4677_v55, %v4677_v55  ;;  %v4652_v16 = vcombine.high %v7356_v33, %v7356_v33  ;;  %v7372_v28 = vrot.slane %v4670_v1, %v6252_v52  ;;  %v4714_v59 = vrot.slane %v4552_v11, %v6258_v57 }
 0xfcf   :  { %v4700_v53 = vcombine.high %v7359_v5, %v7359_v5  ;;  %v4653_v42 = vcombine.high %v7362_v60, %v7362_v60  ;;  %v4701_v25 = vcombine.high %v7367_v49, %v7367_v49  ;;  %v4718_v34 = vrot.slane %v4554_v18, %v6258_v57 }
 0xfd0   :  { %v4722_v7 = vrot.slane %v7300_v3, %v6258_v57  ;;  %v4702_v52 = vcombine.high %v7372_v28, %v7372_v28  ;;  %v4726_v1 = vrot.slane %v7314_v13, %v6258_v57  ;;  %v4730_v21 = vrot.slane %v4553_v35, %v6258_v57 }
 0xfd1   :  { %v4734_v11 = vrot.slane %v4555_v56, %v6258_v57  ;;  %v4738_v51 = vrot.slane %v7303_v10, %v6258_v57  ;;  %v4742_v40 = vrot.slane %v7319_v14, %v6258_v57  ;;  %v4746_v18 = vrot.slane %v4601_v8, %v6258_v57 }
 0xfd2   :  { %v4750_v3 = vrot.slane %v4603_v58, %v6258_v57  ;;  %v4754_v47 = vrot.slane %v7311_v12, %v6258_v57  ;;  %v4758_v13 = vrot.slane %v7326_v19, %v6258_v57  ;;  %v4762_v35 = vrot.slane %v4602_v23, %v6258_v57 }
 0xfd3   :  { %v4766_v56 = vrot.slane %v4604_v61, %v6258_v57  ;;  %v4770_v37 = vrot.slane %v4628_v0, %v6258_v57  ;;  %v4774_v10 = vrot.slane %v7356_v33, %v6258_v57  ;;  %v4778_v14 = vrot.slane %v4650_v50, %v6258_v57 }
 0xfd4   :  { %v4782_v8 = vrot.slane %v4652_v16, %v6258_v57  ;;  %v4786_v58 = vrot.slane %v7352_v6, %v6258_v57  ;;  %v4790_v12 = vrot.slane %v7362_v60, %v6258_v57  ;;  %v4794_v19 = vrot.slane %v4651_v44, %v6258_v57 }
 0xfd5   :  { %v4798_v23 = vrot.slane %v4653_v42, %v6258_v57  ;;  %v4802_v61 = vrot.slane %v4677_v55, %v6258_v57  ;;  %v4806_v0 = vrot.slane %v7367_v49, %v6258_v57  ;;  %v4810_v33 = vrot.slane %v4699_v45, %v6258_v57 }
 0xfd6   :  { %v4814_v50 = vrot.slane %v4701_v25, %v6258_v57  ;;  %v4818_v16 = vrot.slane %v7359_v5, %v6258_v57  ;;  %v4822_v6 = vrot.slane %v7372_v28, %v6258_v57  ;;  %v4826_v60 = vrot.slane %v4700_v53, %v6258_v57 }
 0xfd7   :  { %v4830_v44 = vrot.slane %v4702_v52, %v6258_v57  ;;  %v4863_v55 = vsel %vm217_vm5, %v7210_v27, %v4706_v62  ;;  %v4871_v49 = vsel %vm217_vm5, %v7214_v15, %v4738_v51  ;;  %v4879_v45 = vsel %vm217_vm5, %v7248_v36, %v4770_v37 }
 0xfd8   :  { %v7432_v25 = vsel %vm217_vm5, %v7273_v63, %v4802_v61  ;;  %v4864_v5 = vsel %vm217_vm5, %v7221_v20, %v4710_v2  ;;  %v4865_v57 = vsel %vm217_vm5, %v4320_v22, %v4714_v59  ;;  %v4866_v51 = vsel %vm217_vm5, %v4322_v24, %v4718_v34 }
 0xfd9   :  { %v4867_v37 = vsel %vm217_vm5, %v7218_v46, %v4722_v7  ;;  %v4868_v62 = vsel %vm217_vm5, %v7234_v31, %v4726_v1  ;;  %v4869_v2 = vsel %vm217_vm5, %v4321_v4, %v4730_v21  ;;  %v4870_v27 = vsel %vm217_vm5, %v4323_v29, %v4734_v11 }
 0xfda   :  { %v4872_v20 = vsel %vm217_vm5, %v7229_v30, %v4742_v40  ;;  %v4873_v22 = vsel %vm217_vm5, %v4369_v54, %v4746_v18  ;;  %v7621_v24 = vcombine.high %v7229_v30, %v7229_v30  ;;  %v4875_v4 = vsel %vm217_vm5, %v7226_v26, %v4754_v47 }
 0xfdb   :  { %v4876_v31 = vsel %vm217_vm5, %v7241_v32, %v4758_v13  ;;  %v7622_v29 = vcombine.high %v7226_v26, %v7226_v26  ;;  %v7623_v15 = vcombine.high %v7241_v32, %v7241_v32  ;;  %v4880_v30 = vsel %vm217_vm5, %v7256_v48, %v4774_v10 }
 0xfdc   :  { %v4874_v46 = vsel %vm217_vm5, %v7621_v24, %v4750_v3  ;;  %v7624_v7 = vcombine.high %v7248_v36, %v7248_v36  ;;  %v7625_v21 = vcombine.high %v7256_v48, %v7256_v48  ;;  %v4883_v59 = vsel %vm217_vm5, %v7253_v41, %v4786_v58 }
 0xfdd   :  { %v4877_v40 = vsel %vm217_vm5, %v7622_v29, %v4762_v35  ;;  %v4878_v54 = vsel %vm217_vm5, %v7623_v15, %v4766_v56  ;;  %v4884_v32 = vsel %vm217_vm5, %v7259_v39, %v4790_v12  ;;  %v7626_v28 = vcombine.high %v7253_v41, %v7253_v41 }
 0xfde   :  { %v4881_v47 = vsel %vm217_vm5, %v7624_v7, %v4778_v14  ;;  %v4882_v26 = vsel %vm217_vm5, %v7625_v21, %v4782_v8  ;;  %v7627_v36 = vcombine.high %v7259_v39, %v7259_v39  ;;  %v4888_v48 = vsel %vm217_vm5, %v7279_v38, %v4806_v0 }
 0xfdf   :  { %v4885_v53 = vsel %vm217_vm5, %v7626_v28, %v4794_v19  ;;  %v7628_v34 = vcombine.high %v7273_v63, %v7273_v63  ;;  %v7629_v1 = vcombine.high %v7279_v38, %v7279_v38  ;;  %v4891_v11 = vsel %vm217_vm5, %v7276_v9, %v4818_v16 }
 0xfe0   :  { %v4886_v42 = vsel %vm217_vm5, %v7627_v36, %v4798_v23  ;;  %v4892_v39 = vsel %vm217_vm5, %v7286_v17, %v4822_v6  ;;  %v7630_v18 = vcombine.high %v7276_v9, %v7276_v9  ;;  %v7631_v63 = vcombine.high %v7286_v17, %v7286_v17 }
 0xfe1   :  { %v4889_v52 = vsel %vm217_vm5, %v7628_v34, %v4810_v33  ;;  %v4890_v41 = vsel %vm217_vm5, %v7629_v1, %v4814_v50  ;;  %v4927_v35 = vcombine.low %v4863_v55, %v4864_v5  ;;  %v4928_v38 = vcombine.low %v4865_v57, %v4866_v51 }
 0xfe2   :  { %v4893_v3 = vsel %vm217_vm5, %v7630_v18, %v4826_v60  ;;  %v4894_v13 = vsel %vm217_vm5, %v7631_v63, %v4830_v44  ;;  %v4944_v56 = vcombine.low %v4867_v37, %v4868_v62  ;;  %v4945_v10 = vcombine.low %v4869_v2, %v4870_v27 }
 0xfe3   :  { %v4961_v14 = vcombine.low %v4871_v49, %v4872_v20  ;;  %v4962_v8 = vcombine.low %v4873_v22, %v4874_v46  ;;  %v4978_v58 = vcombine.low %v4875_v4, %v4876_v31  ;;  %v4979_v12 = vcombine.low %v4877_v40, %v4878_v54 }
 0xfe4   :  { %v4935_v19 = vrot.slane %v4927_v35, %v6368_v43  ;;  %v4942_v23 = vrot.slane %v4928_v38, %v6368_v43  ;;  %v4952_v9 = vrot.slane %v4944_v56, %v6368_v43  ;;  %v4959_v61 = vrot.slane %v4945_v10, %v6368_v43 }
 0xfe5   :  { %v4969_v17 = vrot.slane %v4961_v14, %v6368_v43  ;;  %v4976_v0 = vrot.slane %v4962_v8, %v6368_v43  ;;  %v4986_v33 = vrot.slane %v4978_v58, %v6368_v43  ;;  %v4993_v50 = vrot.slane %v4979_v12, %v6368_v43 }
 0xfe6   :  { %v4943_v16 = vcombine.low %v4935_v19, %v4942_v23  ;;  %v4960_v6 = vcombine.low %v4952_v9, %v4959_v61  ;;  %v4995_v60 = vcombine.low %v4879_v45, %v4880_v30  ;;  %v4996_v44 = vcombine.low %v4881_v47, %v4882_v26 }
 0xfe7   :  { %v4977_v55 = vcombine.low %v4969_v17, %v4976_v0  ;;  %v4994_v49 = vcombine.low %v4986_v33, %v4993_v50  ;;  %v5012_v5 = vcombine.low %v4883_v59, %v4884_v32  ;;  %v5013_v57 = vcombine.low %v4885_v53, %v4886_v42 }
 0xfe8   :  { %v5003_v51 = vrot.slane %v4995_v60, %v6368_v43  ;;  %v5010_v37 = vrot.slane %v4996_v44, %v6368_v43  ;;  %v5029_v62 = vcombine.low %v7432_v25, %v4888_v48  ;;  %v5030_v2 = vcombine.low %v4889_v52, %v4890_v41  ;;  %5071 = vst.msk [vmem:[#allocation2] sm:$0xff] %vm185_vm4, %v4943_v16 }
 0xfe9   :  { %5072 = vst.msk [vmem:[#allocation2 + $0x8] sm:$0xff] %vm185_vm4, %v4960_v6  ;;  %v5020_v27 = vrot.slane %v5012_v5, %v6368_v43  ;;  %v5027_v45 = vrot.slane %v5013_v57, %v6368_v43  ;;  %v5046_v20 = vcombine.low %v4891_v11, %v4892_v39  ;;  %v5047_v22 = vcombine.low %v4893_v3, %v4894_v13 }
 0xfea   :  { %5073 = vst.msk [vmem:[#allocation2 + $0x10] sm:$0xff] %vm185_vm4, %v4977_v55  ;;  %5074 = vst.msk [vmem:[#allocation2 + $0x18] sm:$0xff] %vm185_vm4, %v4994_v49  ;;  %v5011_v24 = vcombine.low %v5003_v51, %v5010_v37  ;;  %v5037_v46 = vrot.slane %v5029_v62, %v6368_v43  ;;  %v5044_v25 = vrot.slane %v5030_v2, %v6368_v43 }
 0xfeb   :  { %v5028_v4 = vcombine.low %v5020_v27, %v5027_v45  ;;  %v5054_v31 = vrot.slane %v5046_v20, %v6368_v43  ;;  %v5061_v29 = vrot.slane %v5047_v22, %v6368_v43 }
 0xfec   :  { %v5045_v40 = vcombine.low %v5037_v46, %v5044_v25  ;;  %5075 = vst.msk [vmem:[#allocation2 + $0x20] sm:$0xff] %vm185_vm4, %v5011_v24 }
 0xfed   :  { %v5062_v15 = vcombine.low %v5054_v31, %v5061_v29  ;;  %5076 = vst.msk [vmem:[#allocation2 + $0x28] sm:$0xff] %vm185_vm4, %v5028_v4 }
 0xfee   :  { %5077 = vst.msk [vmem:[#allocation2 + $0x30] sm:$0xff] %vm185_vm4, %v5045_v40 }
 0xfef   :  { %5078 = vst.msk [vmem:[#allocation2 + $0x38] sm:$0xff] %vm185_vm4, %v5062_v15 }
 0xff0   :  { %5962 = shalt.err (!%p5959_p4)
}
 0xff1   :  { %s5963_s0 = scalar_lea.hbm %s7587_s27, 1024 }
 0xff2   :  { %p5964_p5 = scmp.ne.s32.totalorder %s7587_s27, %s5963_s0  ;;  %p5967_p6 = scmp.lt.u32.totalorder %s5963_s0, %s7587_s27 }
 0xff4   :  { %p5969_p7 = pnand %p5967_p6, %p5964_p5 }
 0xff6   :  { %5972 = shalt.err (!%p5969_p7)
}
 0xff7   :  { %s5990_s21 = smov 128  }
 0xff8   :  { %5090 = dma.vmem_to_hbm [thread:$0]  %s5085_s24, 1024, %s7587_s27, [#allocation3], %s5990_s21, %s5990_s21, %s5985_s15  }
 0xff9   :  { %5973 = dma.done.wait [#allocation3], 1024  }
 0xffa   :  { %5974 = vsyncadd [#allocation3], 4294966272 }
 0xffb   :  { %5094 = vsyncpa [#allocation3], 1 }

</bundles_post_ra>
